<compile_context>
chip_gen: v6e
topology: v6e:2x2x1
jax: 0.10.0
libtpu: 0.0.40
codegen_flags: <defaults>
</compile_context>

<pallas_src>
import numpy as np

import jax
import jax.numpy as jnp
from jax.experimental import pallas as pl
from jax.experimental.pallas import tpu as pltpu

KERNEL_SIZE = 3
PADDING = 1
# Tap order matches the (kh, kw) reshape order of the HWIO weights.
_TAPS = tuple((dh, dw) for dh in (-1, 0, 1) for dw in (-1, 0, 1))


def _build_tap_masks(H, W):
    """(9, 1, H*W) f32 masks: 1.0 where the shifted pixel (i+dh, j+dw) is inside
    the image (i.e. where 'SAME' zero-padding does NOT apply)."""
    pos = np.arange(H * W)
    row, col = pos // W, pos % W
    masks = np.ones((len(_TAPS), 1, H * W), np.float32)
    for t, (dh, dw) in enumerate(_TAPS):
        valid = ((row + dh >= 0) & (row + dh < H) &
                 (col + dw >= 0) & (col + dw < W))
        masks[t, 0, :] = valid.astype(np.float32)
    return masks


def _make_encoder_kernel(H, W, num_layers):
    """Fused 6-layer conv+ReLU kernel, channel-major / lane-dense."""
    L = num_layers
    HW = H * W

    def encoder_kernel(*refs):
        x_ref = refs[0]                     # (1, cin0, HW)
        masks_ref = refs[1]                 # (9, 1, HW)
        wb = refs[2:2 + 2 * L]              # w_l: (9, cout, cin), b_l: (cout, 1)
        o_ref = refs[2 + 2 * L]             # (1, cout_last, HW)

        # Load the per-tap border masks once; reused by all 6 layers.
        tap_masks = [masks_ref[t] for t in range(len(_TAPS))]

        a = x_ref[0].astype(jnp.float32)    # (cin0, HW), lane-dense
        for l in range(L):
            w_ref, b_ref = wb[2 * l], wb[2 * l + 1]
            acc = None
            for t, (dh, dw) in enumerate(_TAPS):
                delta = dh * W + dw
                if delta == 0:
                    s = a                                   # center tap: no shift/mask
                else:
                    # Shift so that s[:, p] = a[:, p + delta] (XLU lane rotate),
                    # then zero the positions that fall outside the image.
                    s = pltpu.roll(a, shift=(-delta) % HW, axis=1)
                    s = s * tap_masks[t]
                part = jnp.dot(w_ref[t], s, preferred_element_type=jnp.float32)
                acc = part if acc is None else acc + part
            # bias (cout, 1) lane-broadcast + ReLU (all 6 layers use ReLU).
            a = jnp.maximum(acc + b_ref[...], 0.0)

        o_ref[0] = a.astype(o_ref.dtype)    # (cout_last, HW), full-lane store

    return encoder_kernel


@jax.jit
def encoder_forward(params, x_nchw):
    """Fused Encoder forward.  x_nchw: (N, Cin, H, W) -> (N, Cout, H, W)."""
    N, Cin, H, W = x_nchw.shape
    HW = H * W
    couts = tuple(int(w.shape[3]) for (w, _) in params)
    cout_last = couts[-1]
    L = len(params)

    x_flat = x_nchw.reshape(N, Cin, HW)                 # NCHW flattened (free)
    masks = jnp.asarray(_build_tap_masks(H, W))         # trace-time constant

    flat_args = [x_flat, masks]
    in_specs = [
        pl.BlockSpec((1, Cin, HW), lambda n: (n, 0, 0)),
        pl.BlockSpec((len(_TAPS), 1, HW), lambda n: (0, 0, 0)),
    ]
    for (w, b) in params:
        ci, co = int(w.shape[2]), int(w.shape[3])
        # HWIO -> tap-major channel-major (9, cout, cin); constant index_map
        # so weights are DMA'd once.
        w_cm = jnp.transpose(w, (0, 1, 3, 2)).reshape(
            KERNEL_SIZE * KERNEL_SIZE, co, ci)
        flat_args.append(w_cm)
        flat_args.append(b.reshape(co, 1))
        in_specs.append(pl.BlockSpec((KERNEL_SIZE * KERNEL_SIZE, co, ci),
                                     lambda n: (0, 0, 0)))
        in_specs.append(pl.BlockSpec((co, 1), lambda n: (0, 0)))

    out_spec = pl.BlockSpec((1, cout_last, HW), lambda n: (n, 0, 0))

    kernel = _make_encoder_kernel(H, W, L)

    out_flat = pl.pallas_call(
        kernel,
        out_shape=jax.ShapeDtypeStruct((N, cout_last, HW), x_nchw.dtype),
        grid_spec=pltpu.PrefetchScalarGridSpec(
            num_scalar_prefetch=0,
            grid=(N,),                       # batch axis: one image per TC on v7x
            in_specs=in_specs,
            out_specs=out_spec),
        compiler_params=pltpu.CompilerParams(
            dimension_semantics=("parallel",)),
    )(*flat_args)

    return out_flat.reshape(N, cout_last, H, W)          # free reshape (NCHW)


def init_conv_params(key, cin, cout):
    """Deterministic synthetic init (roughly Kaiming-scaled normal), HWIO."""
    kw, kb = jax.random.split(key)
    fan_in = cin * KERNEL_SIZE * KERNEL_SIZE
    w = jax.random.normal(kw, (KERNEL_SIZE, KERNEL_SIZE, cin, cout),
                          dtype=jnp.float32) * (2.0 / fan_in) ** 0.5
    b = jax.random.normal(kb, (cout,), dtype=jnp.float32) * 0.01
    return w, b


def init_encoder_params(key, in_channels, hidden_size):
    half = hidden_size // 2
    # (cin, cout) for the 6 convs:
    #   Conv_Block(start): in -> hidden/2 -> hidden
    #   Conv_Block(mid) x2: hidden -> hidden -> hidden
    channel_plan = [
        (in_channels, half), (half, hidden_size),
        (hidden_size, hidden_size), (hidden_size, hidden_size),
        (hidden_size, hidden_size), (hidden_size, hidden_size),
    ]
    keys = jax.random.split(key, len(channel_plan))
    return [init_conv_params(k, cin, cout)
            for k, (cin, cout) in zip(keys, channel_plan)]


def _reference_forward(params, x_nchw):
    """Pure-JAX reference (lax conv) for correctness check."""
    x = x_nchw
    for w, b in params:
        y = jax.lax.conv_general_dilated(
            x, w, window_strides=(1, 1), padding="SAME",
            dimension_numbers=("NCHW", "HWIO", "NCHW"))
        x = jnp.maximum(y + b[None, :, None, None], 0.0)
    return x


if __name__ == "__main__":
    key = jax.random.PRNGKey(0)
    k_params, k_x = jax.random.split(key)

    batch, in_channels, hidden_size, spatial = 2, 3, 32, 16
    params = init_encoder_params(k_params, in_channels, hidden_size)
    x = jax.random.normal(k_x, (batch, in_channels, spatial, spatial),
                          dtype=jnp.float32)

    out = encoder_forward(params, x)
    out = jax.block_until_ready(out)

    ref = _reference_forward(params, x)
    assert out.shape == (batch, hidden_size, spatial, spatial), out.shape
    assert jnp.allclose(out, ref, atol=1e-4, rtol=1e-4), "mismatch vs reference"

    print("KERNEL_OK")
</pallas_src>

<mosaic_0001>
module attributes {stable_mosaic.version = 11 : i64} {
  func.func @encoder_kernel(%arg0: i32, %arg1: memref<1x3x256xf32, #tpu.memory_space<vmem>>, %arg2: memref<9x1x256xf32, #tpu.memory_space<vmem>>, %arg3: memref<9x16x3xf32, #tpu.memory_space<vmem>>, %arg4: memref<16x1xf32, #tpu.memory_space<vmem>>, %arg5: memref<9x32x16xf32, #tpu.memory_space<vmem>>, %arg6: memref<32x1xf32, #tpu.memory_space<vmem>>, %arg7: memref<9x32x32xf32, #tpu.memory_space<vmem>>, %arg8: memref<32x1xf32, #tpu.memory_space<vmem>>, %arg9: memref<9x32x32xf32, #tpu.memory_space<vmem>>, %arg10: memref<32x1xf32, #tpu.memory_space<vmem>>, %arg11: memref<9x32x32xf32, #tpu.memory_space<vmem>>, %arg12: memref<32x1xf32, #tpu.memory_space<vmem>>, %arg13: memref<9x32x32xf32, #tpu.memory_space<vmem>>, %arg14: memref<32x1xf32, #tpu.memory_space<vmem>>, %arg15: memref<1x32x256xf32, #tpu.memory_space<vmem>>) attributes {dimension_semantics = [#tpu.dimension_semantics<parallel>], iteration_bounds = array<i64: 2>, scalar_prefetch = 0 : i64, scratch_operands = 0 : i64, tpu.core_type = #tpu.core_type<tc>, window_params = [{transform_indices = @transform_0, window_bounds = array<i64: 1, 3, 256>}, {pipeline_mode = #tpu.pipeline_mode<synchronous>, transform_indices = @transform_1, window_bounds = array<i64: 9, 1, 256>}, {pipeline_mode = #tpu.pipeline_mode<synchronous>, transform_indices = @transform_2, window_bounds = array<i64: 9, 16, 3>}, {pipeline_mode = #tpu.pipeline_mode<synchronous>, transform_indices = @transform_3, window_bounds = array<i64: 16, 1>}, {pipeline_mode = #tpu.pipeline_mode<synchronous>, transform_indices = @transform_4, window_bounds = array<i64: 9, 32, 16>}, {pipeline_mode = #tpu.pipeline_mode<synchronous>, transform_indices = @transform_5, window_bounds = array<i64: 32, 1>}, {pipeline_mode = #tpu.pipeline_mode<synchronous>, transform_indices = @transform_6, window_bounds = array<i64: 9, 32, 32>}, {pipeline_mode = #tpu.pipeline_mode<synchronous>, transform_indices = @transform_7, window_bounds = array<i64: 32, 1>}, {pipeline_mode = #tpu.pipeline_mode<synchronous>, transform_indices = @transform_8, window_bounds = array<i64: 9, 32, 32>}, {pipeline_mode = #tpu.pipeline_mode<synchronous>, transform_indices = @transform_9, window_bounds = array<i64: 32, 1>}, {pipeline_mode = #tpu.pipeline_mode<synchronous>, transform_indices = @transform_10, window_bounds = array<i64: 9, 32, 32>}, {pipeline_mode = #tpu.pipeline_mode<synchronous>, transform_indices = @transform_11, window_bounds = array<i64: 32, 1>}, {pipeline_mode = #tpu.pipeline_mode<synchronous>, transform_indices = @transform_12, window_bounds = array<i64: 9, 32, 32>}, {pipeline_mode = #tpu.pipeline_mode<synchronous>, transform_indices = @transform_13, window_bounds = array<i64: 32, 1>}, {transform_indices = @transform_14, window_bounds = array<i64: 1, 32, 256>}]} {
    %c0 = arith.constant 0 : index
    %c0_0 = arith.constant 0 : index
    %c0_1 = arith.constant 0 : index
    %0 = vector.load %arg2[%c0, %c0_0, %c0_1] : memref<9x1x256xf32, #tpu.memory_space<vmem>>, vector<1x1x256xf32>
    %1 = vector.shape_cast %0 : vector<1x1x256xf32> to vector<1x256xf32>
    %c1 = arith.constant 1 : index
    %c0_2 = arith.constant 0 : index
    %c0_3 = arith.constant 0 : index
    %2 = vector.load %arg2[%c1, %c0_2, %c0_3] : memref<9x1x256xf32, #tpu.memory_space<vmem>>, vector<1x1x256xf32>
    %3 = vector.shape_cast %2 : vector<1x1x256xf32> to vector<1x256xf32>
    %c2 = arith.constant 2 : index
    %c0_4 = arith.constant 0 : index
    %c0_5 = arith.constant 0 : index
    %4 = vector.load %arg2[%c2, %c0_4, %c0_5] : memref<9x1x256xf32, #tpu.memory_space<vmem>>, vector<1x1x256xf32>
    %5 = vector.shape_cast %4 : vector<1x1x256xf32> to vector<1x256xf32>
    %c3 = arith.constant 3 : index
    %c0_6 = arith.constant 0 : index
    %c0_7 = arith.constant 0 : index
    %6 = vector.load %arg2[%c3, %c0_6, %c0_7] : memref<9x1x256xf32, #tpu.memory_space<vmem>>, vector<1x1x256xf32>
    %7 = vector.shape_cast %6 : vector<1x1x256xf32> to vector<1x256xf32>
    %c5 = arith.constant 5 : index
    %c0_8 = arith.constant 0 : index
    %c0_9 = arith.constant 0 : index
    %8 = vector.load %arg2[%c5, %c0_8, %c0_9] : memref<9x1x256xf32, #tpu.memory_space<vmem>>, vector<1x1x256xf32>
    %9 = vector.shape_cast %8 : vector<1x1x256xf32> to vector<1x256xf32>
    %c6 = arith.constant 6 : index
    %c0_10 = arith.constant 0 : index
    %c0_11 = arith.constant 0 : index
    %10 = vector.load %arg2[%c6, %c0_10, %c0_11] : memref<9x1x256xf32, #tpu.memory_space<vmem>>, vector<1x1x256xf32>
    %11 = vector.shape_cast %10 : vector<1x1x256xf32> to vector<1x256xf32>
    %c7 = arith.constant 7 : index
    %c0_12 = arith.constant 0 : index
    %c0_13 = arith.constant 0 : index
    %12 = vector.load %arg2[%c7, %c0_12, %c0_13] : memref<9x1x256xf32, #tpu.memory_space<vmem>>, vector<1x1x256xf32>
    %13 = vector.shape_cast %12 : vector<1x1x256xf32> to vector<1x256xf32>
    %c8 = arith.constant 8 : index
    %c0_14 = arith.constant 0 : index
    %c0_15 = arith.constant 0 : index
    %14 = vector.load %arg2[%c8, %c0_14, %c0_15] : memref<9x1x256xf32, #tpu.memory_space<vmem>>, vector<1x1x256xf32>
    %15 = vector.shape_cast %14 : vector<1x1x256xf32> to vector<1x256xf32>
    %c0_16 = arith.constant 0 : index
    %c0_17 = arith.constant 0 : index
    %c0_18 = arith.constant 0 : index
    %16 = vector.load %arg1[%c0_16, %c0_17, %c0_18] : memref<1x3x256xf32, #tpu.memory_space<vmem>>, vector<1x3x256xf32>
    %17 = vector.shape_cast %16 : vector<1x3x256xf32> to vector<3x256xf32>
    %c17_i32 = arith.constant 17 : i32
    %18 = tpu.dynamic_rotate %17 by %c17_i32 dim 1 : vector<3x256xf32>, i32 -> vector<3x256xf32>
    %19 = vector.broadcast %1 : vector<1x256xf32> to vector<3x256xf32>
    %20 = arith.mulf %18, %19 : vector<3x256xf32>
    %c0_19 = arith.constant 0 : index
    %c0_20 = arith.constant 0 : index
    %c0_21 = arith.constant 0 : index
    %21 = vector.load %arg3[%c0_19, %c0_20, %c0_21] : memref<9x16x3xf32, #tpu.memory_space<vmem>>, vector<1x16x3xf32>
    %22 = vector.shape_cast %21 : vector<1x16x3xf32> to vector<16x3xf32>
    %cst = arith.constant dense<0.000000e+00> : vector<16x256xf32>
    %23 = tpu.matmul %22, %20, %cst {dimension_numbers = #tpu.dot_dimension_numbers<[1], [0], [0], [1], [0, 0, 1, 1], [], []>} : vector<16x3xf32>, vector<3x256xf32>, vector<16x256xf32> -> vector<16x256xf32>
    %c16_i32 = arith.constant 16 : i32
    %24 = tpu.dynamic_rotate %17 by %c16_i32 dim 1 : vector<3x256xf32>, i32 -> vector<3x256xf32>
    %25 = vector.broadcast %3 : vector<1x256xf32> to vector<3x256xf32>
    %26 = arith.mulf %24, %25 : vector<3x256xf32>
    %c1_22 = arith.constant 1 : index
    %c0_23 = arith.constant 0 : index
    %c0_24 = arith.constant 0 : index
    %27 = vector.load %arg3[%c1_22, %c0_23, %c0_24] : memref<9x16x3xf32, #tpu.memory_space<vmem>>, vector<1x16x3xf32>
    %28 = vector.shape_cast %27 : vector<1x16x3xf32> to vector<16x3xf32>
    %cst_25 = arith.constant dense<0.000000e+00> : vector<16x256xf32>
    %29 = tpu.matmul %28, %26, %cst_25 {dimension_numbers = #tpu.dot_dimension_numbers<[1], [0], [0], [1], [0, 0, 1, 1], [], []>} : vector<16x3xf32>, vector<3x256xf32>, vector<16x256xf32> -> vector<16x256xf32>
    %30 = arith.addf %23, %29 : vector<16x256xf32>
    %c15_i32 = arith.constant 15 : i32
    %31 = tpu.dynamic_rotate %17 by %c15_i32 dim 1 : vector<3x256xf32>, i32 -> vector<3x256xf32>
    %32 = vector.broadcast %5 : vector<1x256xf32> to vector<3x256xf32>
    %33 = arith.mulf %31, %32 : vector<3x256xf32>
    %c2_26 = arith.constant 2 : index
    %c0_27 = arith.constant 0 : index
    %c0_28 = arith.constant 0 : index
    %34 = vector.load %arg3[%c2_26, %c0_27, %c0_28] : memref<9x16x3xf32, #tpu.memory_space<vmem>>, vector<1x16x3xf32>
    %35 = vector.shape_cast %34 : vector<1x16x3xf32> to vector<16x3xf32>
    %cst_29 = arith.constant dense<0.000000e+00> : vector<16x256xf32>
    %36 = tpu.matmul %35, %33, %cst_29 {dimension_numbers = #tpu.dot_dimension_numbers<[1], [0], [0], [1], [0, 0, 1, 1], [], []>} : vector<16x3xf32>, vector<3x256xf32>, vector<16x256xf32> -> vector<16x256xf32>
    %37 = arith.addf %30, %36 : vector<16x256xf32>
    %c1_i32 = arith.constant 1 : i32
    %38 = tpu.dynamic_rotate %17 by %c1_i32 dim 1 : vector<3x256xf32>, i32 -> vector<3x256xf32>
    %39 = vector.broadcast %7 : vector<1x256xf32> to vector<3x256xf32>
    %40 = arith.mulf %38, %39 : vector<3x256xf32>
    %c3_30 = arith.constant 3 : index
    %c0_31 = arith.constant 0 : index
    %c0_32 = arith.constant 0 : index
    %41 = vector.load %arg3[%c3_30, %c0_31, %c0_32] : memref<9x16x3xf32, #tpu.memory_space<vmem>>, vector<1x16x3xf32>
    %42 = vector.shape_cast %41 : vector<1x16x3xf32> to vector<16x3xf32>
    %cst_33 = arith.constant dense<0.000000e+00> : vector<16x256xf32>
    %43 = tpu.matmul %42, %40, %cst_33 {dimension_numbers = #tpu.dot_dimension_numbers<[1], [0], [0], [1], [0, 0, 1, 1], [], []>} : vector<16x3xf32>, vector<3x256xf32>, vector<16x256xf32> -> vector<16x256xf32>
    %44 = arith.addf %37, %43 : vector<16x256xf32>
    %c4 = arith.constant 4 : index
    %c0_34 = arith.constant 0 : index
    %c0_35 = arith.constant 0 : index
    %45 = vector.load %arg3[%c4, %c0_34, %c0_35] : memref<9x16x3xf32, #tpu.memory_space<vmem>>, vector<1x16x3xf32>
    %46 = vector.shape_cast %45 : vector<1x16x3xf32> to vector<16x3xf32>
    %cst_36 = arith.constant dense<0.000000e+00> : vector<16x256xf32>
    %47 = tpu.matmul %46, %17, %cst_36 {dimension_numbers = #tpu.dot_dimension_numbers<[1], [0], [0], [1], [0, 0, 1, 1], [], []>} : vector<16x3xf32>, vector<3x256xf32>, vector<16x256xf32> -> vector<16x256xf32>
    %48 = arith.addf %44, %47 : vector<16x256xf32>
    %c255_i32 = arith.constant 255 : i32
    %49 = tpu.dynamic_rotate %17 by %c255_i32 dim 1 : vector<3x256xf32>, i32 -> vector<3x256xf32>
    %50 = vector.broadcast %9 : vector<1x256xf32> to vector<3x256xf32>
    %51 = arith.mulf %49, %50 : vector<3x256xf32>
    %c5_37 = arith.constant 5 : index
    %c0_38 = arith.constant 0 : index
    %c0_39 = arith.constant 0 : index
    %52 = vector.load %arg3[%c5_37, %c0_38, %c0_39] : memref<9x16x3xf32, #tpu.memory_space<vmem>>, vector<1x16x3xf32>
    %53 = vector.shape_cast %52 : vector<1x16x3xf32> to vector<16x3xf32>
    %cst_40 = arith.constant dense<0.000000e+00> : vector<16x256xf32>
    %54 = tpu.matmul %53, %51, %cst_40 {dimension_numbers = #tpu.dot_dimension_numbers<[1], [0], [0], [1], [0, 0, 1, 1], [], []>} : vector<16x3xf32>, vector<3x256xf32>, vector<16x256xf32> -> vector<16x256xf32>
    %55 = arith.addf %48, %54 : vector<16x256xf32>
    %c241_i32 = arith.constant 241 : i32
    %56 = tpu.dynamic_rotate %17 by %c241_i32 dim 1 : vector<3x256xf32>, i32 -> vector<3x256xf32>
    %57 = vector.broadcast %11 : vector<1x256xf32> to vector<3x256xf32>
    %58 = arith.mulf %56, %57 : vector<3x256xf32>
    %c6_41 = arith.constant 6 : index
    %c0_42 = arith.constant 0 : index
    %c0_43 = arith.constant 0 : index
    %59 = vector.load %arg3[%c6_41, %c0_42, %c0_43] : memref<9x16x3xf32, #tpu.memory_space<vmem>>, vector<1x16x3xf32>
    %60 = vector.shape_cast %59 : vector<1x16x3xf32> to vector<16x3xf32>
    %cst_44 = arith.constant dense<0.000000e+00> : vector<16x256xf32>
    %61 = tpu.matmul %60, %58, %cst_44 {dimension_numbers = #tpu.dot_dimension_numbers<[1], [0], [0], [1], [0, 0, 1, 1], [], []>} : vector<16x3xf32>, vector<3x256xf32>, vector<16x256xf32> -> vector<16x256xf32>
    %62 = arith.addf %55, %61 : vector<16x256xf32>
    %c240_i32 = arith.constant 240 : i32
    %63 = tpu.dynamic_rotate %17 by %c240_i32 dim 1 : vector<3x256xf32>, i32 -> vector<3x256xf32>
    %64 = vector.broadcast %13 : vector<1x256xf32> to vector<3x256xf32>
    %65 = arith.mulf %63, %64 : vector<3x256xf32>
    %c7_45 = arith.constant 7 : index
    %c0_46 = arith.constant 0 : index
    %c0_47 = arith.constant 0 : index
    %66 = vector.load %arg3[%c7_45, %c0_46, %c0_47] : memref<9x16x3xf32, #tpu.memory_space<vmem>>, vector<1x16x3xf32>
    %67 = vector.shape_cast %66 : vector<1x16x3xf32> to vector<16x3xf32>
    %cst_48 = arith.constant dense<0.000000e+00> : vector<16x256xf32>
    %68 = tpu.matmul %67, %65, %cst_48 {dimension_numbers = #tpu.dot_dimension_numbers<[1], [0], [0], [1], [0, 0, 1, 1], [], []>} : vector<16x3xf32>, vector<3x256xf32>, vector<16x256xf32> -> vector<16x256xf32>
    %69 = arith.addf %62, %68 : vector<16x256xf32>
    %c239_i32 = arith.constant 239 : i32
    %70 = tpu.dynamic_rotate %17 by %c239_i32 dim 1 : vector<3x256xf32>, i32 -> vector<3x256xf32>
    %71 = vector.broadcast %15 : vector<1x256xf32> to vector<3x256xf32>
    %72 = arith.mulf %70, %71 : vector<3x256xf32>
    %c8_49 = arith.constant 8 : index
    %c0_50 = arith.constant 0 : index
    %c0_51 = arith.constant 0 : index
    %73 = vector.load %arg3[%c8_49, %c0_50, %c0_51] : memref<9x16x3xf32, #tpu.memory_space<vmem>>, vector<1x16x3xf32>
    %74 = vector.shape_cast %73 : vector<1x16x3xf32> to vector<16x3xf32>
    %cst_52 = arith.constant dense<0.000000e+00> : vector<16x256xf32>
    %75 = tpu.matmul %74, %72, %cst_52 {dimension_numbers = #tpu.dot_dimension_numbers<[1], [0], [0], [1], [0, 0, 1, 1], [], []>} : vector<16x3xf32>, vector<3x256xf32>, vector<16x256xf32> -> vector<16x256xf32>
    %76 = arith.addf %69, %75 : vector<16x256xf32>
    %c0_53 = arith.constant 0 : index
    %c0_54 = arith.constant 0 : index
    %77 = vector.load %arg4[%c0_53, %c0_54] : memref<16x1xf32, #tpu.memory_space<vmem>>, vector<16x1xf32>
    %78 = vector.broadcast %77 : vector<16x1xf32> to vector<16x256xf32>
    %79 = arith.addf %76, %78 : vector<16x256xf32>
    %cst_55 = arith.constant 0.000000e+00 : f32
    %80 = vector.broadcast %cst_55 : f32 to vector<16x256xf32>
    %81 = arith.maximumf %79, %80 : vector<16x256xf32>
    %c17_i32_56 = arith.constant 17 : i32
    %82 = tpu.dynamic_rotate %81 by %c17_i32_56 dim 1 : vector<16x256xf32>, i32 -> vector<16x256xf32>
    %83 = vector.broadcast %1 : vector<1x256xf32> to vector<16x256xf32>
    %84 = arith.mulf %82, %83 : vector<16x256xf32>
    %c0_57 = arith.constant 0 : index
    %c0_58 = arith.constant 0 : index
    %c0_59 = arith.constant 0 : index
    %85 = vector.load %arg5[%c0_57, %c0_58, %c0_59] : memref<9x32x16xf32, #tpu.memory_space<vmem>>, vector<1x32x16xf32>
    %86 = vector.shape_cast %85 : vector<1x32x16xf32> to vector<32x16xf32>
    %cst_60 = arith.constant dense<0.000000e+00> : vector<32x256xf32>
    %87 = tpu.matmul %86, %84, %cst_60 {dimension_numbers = #tpu.dot_dimension_numbers<[1], [0], [0], [1], [0, 0, 1, 1], [], []>} : vector<32x16xf32>, vector<16x256xf32>, vector<32x256xf32> -> vector<32x256xf32>
    %c16_i32_61 = arith.constant 16 : i32
    %88 = tpu.dynamic_rotate %81 by %c16_i32_61 dim 1 : vector<16x256xf32>, i32 -> vector<16x256xf32>
    %89 = vector.broadcast %3 : vector<1x256xf32> to vector<16x256xf32>
    %90 = arith.mulf %88, %89 : vector<16x256xf32>
    %c1_62 = arith.constant 1 : index
    %c0_63 = arith.constant 0 : index
    %c0_64 = arith.constant 0 : index
    %91 = vector.load %arg5[%c1_62, %c0_63, %c0_64] : memref<9x32x16xf32, #tpu.memory_space<vmem>>, vector<1x32x16xf32>
    %92 = vector.shape_cast %91 : vector<1x32x16xf32> to vector<32x16xf32>
    %cst_65 = arith.constant dense<0.000000e+00> : vector<32x256xf32>
    %93 = tpu.matmul %92, %90, %cst_65 {dimension_numbers = #tpu.dot_dimension_numbers<[1], [0], [0], [1], [0, 0, 1, 1], [], []>} : vector<32x16xf32>, vector<16x256xf32>, vector<32x256xf32> -> vector<32x256xf32>
    %94 = arith.addf %87, %93 : vector<32x256xf32>
    %c15_i32_66 = arith.constant 15 : i32
    %95 = tpu.dynamic_rotate %81 by %c15_i32_66 dim 1 : vector<16x256xf32>, i32 -> vector<16x256xf32>
    %96 = vector.broadcast %5 : vector<1x256xf32> to vector<16x256xf32>
    %97 = arith.mulf %95, %96 : vector<16x256xf32>
    %c2_67 = arith.constant 2 : index
    %c0_68 = arith.constant 0 : index
    %c0_69 = arith.constant 0 : index
    %98 = vector.load %arg5[%c2_67, %c0_68, %c0_69] : memref<9x32x16xf32, #tpu.memory_space<vmem>>, vector<1x32x16xf32>
    %99 = vector.shape_cast %98 : vector<1x32x16xf32> to vector<32x16xf32>
    %cst_70 = arith.constant dense<0.000000e+00> : vector<32x256xf32>
    %100 = tpu.matmul %99, %97, %cst_70 {dimension_numbers = #tpu.dot_dimension_numbers<[1], [0], [0], [1], [0, 0, 1, 1], [], []>} : vector<32x16xf32>, vector<16x256xf32>, vector<32x256xf32> -> vector<32x256xf32>
    %101 = arith.addf %94, %100 : vector<32x256xf32>
    %c1_i32_71 = arith.constant 1 : i32
    %102 = tpu.dynamic_rotate %81 by %c1_i32_71 dim 1 : vector<16x256xf32>, i32 -> vector<16x256xf32>
    %103 = vector.broadcast %7 : vector<1x256xf32> to vector<16x256xf32>
    %104 = arith.mulf %102, %103 : vector<16x256xf32>
    %c3_72 = arith.constant 3 : index
    %c0_73 = arith.constant 0 : index
    %c0_74 = arith.constant 0 : index
    %105 = vector.load %arg5[%c3_72, %c0_73, %c0_74] : memref<9x32x16xf32, #tpu.memory_space<vmem>>, vector<1x32x16xf32>
    %106 = vector.shape_cast %105 : vector<1x32x16xf32> to vector<32x16xf32>
    %cst_75 = arith.constant dense<0.000000e+00> : vector<32x256xf32>
    %107 = tpu.matmul %106, %104, %cst_75 {dimension_numbers = #tpu.dot_dimension_numbers<[1], [0], [0], [1], [0, 0, 1, 1], [], []>} : vector<32x16xf32>, vector<16x256xf32>, vector<32x256xf32> -> vector<32x256xf32>
    %108 = arith.addf %101, %107 : vector<32x256xf32>
    %c4_76 = arith.constant 4 : index
    %c0_77 = arith.constant 0 : index
    %c0_78 = arith.constant 0 : index
    %109 = vector.load %arg5[%c4_76, %c0_77, %c0_78] : memref<9x32x16xf32, #tpu.memory_space<vmem>>, vector<1x32x16xf32>
    %110 = vector.shape_cast %109 : vector<1x32x16xf32> to vector<32x16xf32>
    %cst_79 = arith.constant dense<0.000000e+00> : vector<32x256xf32>
    %111 = tpu.matmul %110, %81, %cst_79 {dimension_numbers = #tpu.dot_dimension_numbers<[1], [0], [0], [1], [0, 0, 1, 1], [], []>} : vector<32x16xf32>, vector<16x256xf32>, vector<32x256xf32> -> vector<32x256xf32>
    %112 = arith.addf %108, %111 : vector<32x256xf32>
    %c255_i32_80 = arith.constant 255 : i32
    %113 = tpu.dynamic_rotate %81 by %c255_i32_80 dim 1 : vector<16x256xf32>, i32 -> vector<16x256xf32>
    %114 = vector.broadcast %9 : vector<1x256xf32> to vector<16x256xf32>
    %115 = arith.mulf %113, %114 : vector<16x256xf32>
    %c5_81 = arith.constant 5 : index
    %c0_82 = arith.constant 0 : index
    %c0_83 = arith.constant 0 : index
    %116 = vector.load %arg5[%c5_81, %c0_82, %c0_83] : memref<9x32x16xf32, #tpu.memory_space<vmem>>, vector<1x32x16xf32>
    %117 = vector.shape_cast %116 : vector<1x32x16xf32> to vector<32x16xf32>
    %cst_84 = arith.constant dense<0.000000e+00> : vector<32x256xf32>
    %118 = tpu.matmul %117, %115, %cst_84 {dimension_numbers = #tpu.dot_dimension_numbers<[1], [0], [0], [1], [0, 0, 1, 1], [], []>} : vector<32x16xf32>, vector<16x256xf32>, vector<32x256xf32> -> vector<32x256xf32>
    %119 = arith.addf %112, %118 : vector<32x256xf32>
    %c241_i32_85 = arith.constant 241 : i32
    %120 = tpu.dynamic_rotate %81 by %c241_i32_85 dim 1 : vector<16x256xf32>, i32 -> vector<16x256xf32>
    %121 = vector.broadcast %11 : vector<1x256xf32> to vector<16x256xf32>
    %122 = arith.mulf %120, %121 : vector<16x256xf32>
    %c6_86 = arith.constant 6 : index
    %c0_87 = arith.constant 0 : index
    %c0_88 = arith.constant 0 : index
    %123 = vector.load %arg5[%c6_86, %c0_87, %c0_88] : memref<9x32x16xf32, #tpu.memory_space<vmem>>, vector<1x32x16xf32>
    %124 = vector.shape_cast %123 : vector<1x32x16xf32> to vector<32x16xf32>
    %cst_89 = arith.constant dense<0.000000e+00> : vector<32x256xf32>
    %125 = tpu.matmul %124, %122, %cst_89 {dimension_numbers = #tpu.dot_dimension_numbers<[1], [0], [0], [1], [0, 0, 1, 1], [], []>} : vector<32x16xf32>, vector<16x256xf32>, vector<32x256xf32> -> vector<32x256xf32>
    %126 = arith.addf %119, %125 : vector<32x256xf32>
    %c240_i32_90 = arith.constant 240 : i32
    %127 = tpu.dynamic_rotate %81 by %c240_i32_90 dim 1 : vector<16x256xf32>, i32 -> vector<16x256xf32>
    %128 = vector.broadcast %13 : vector<1x256xf32> to vector<16x256xf32>
    %129 = arith.mulf %127, %128 : vector<16x256xf32>
    %c7_91 = arith.constant 7 : index
    %c0_92 = arith.constant 0 : index
    %c0_93 = arith.constant 0 : index
    %130 = vector.load %arg5[%c7_91, %c0_92, %c0_93] : memref<9x32x16xf32, #tpu.memory_space<vmem>>, vector<1x32x16xf32>
    %131 = vector.shape_cast %130 : vector<1x32x16xf32> to vector<32x16xf32>
    %cst_94 = arith.constant dense<0.000000e+00> : vector<32x256xf32>
    %132 = tpu.matmul %131, %129, %cst_94 {dimension_numbers = #tpu.dot_dimension_numbers<[1], [0], [0], [1], [0, 0, 1, 1], [], []>} : vector<32x16xf32>, vector<16x256xf32>, vector<32x256xf32> -> vector<32x256xf32>
    %133 = arith.addf %126, %132 : vector<32x256xf32>
    %c239_i32_95 = arith.constant 239 : i32
    %134 = tpu.dynamic_rotate %81 by %c239_i32_95 dim 1 : vector<16x256xf32>, i32 -> vector<16x256xf32>
    %135 = vector.broadcast %15 : vector<1x256xf32> to vector<16x256xf32>
    %136 = arith.mulf %134, %135 : vector<16x256xf32>
    %c8_96 = arith.constant 8 : index
    %c0_97 = arith.constant 0 : index
    %c0_98 = arith.constant 0 : index
    %137 = vector.load %arg5[%c8_96, %c0_97, %c0_98] : memref<9x32x16xf32, #tpu.memory_space<vmem>>, vector<1x32x16xf32>
    %138 = vector.shape_cast %137 : vector<1x32x16xf32> to vector<32x16xf32>
    %cst_99 = arith.constant dense<0.000000e+00> : vector<32x256xf32>
    %139 = tpu.matmul %138, %136, %cst_99 {dimension_numbers = #tpu.dot_dimension_numbers<[1], [0], [0], [1], [0, 0, 1, 1], [], []>} : vector<32x16xf32>, vector<16x256xf32>, vector<32x256xf32> -> vector<32x256xf32>
    %140 = arith.addf %133, %139 : vector<32x256xf32>
    %c0_100 = arith.constant 0 : index
    %c0_101 = arith.constant 0 : index
    %141 = vector.load %arg6[%c0_100, %c0_101] : memref<32x1xf32, #tpu.memory_space<vmem>>, vector<32x1xf32>
    %142 = vector.broadcast %141 : vector<32x1xf32> to vector<32x256xf32>
    %143 = arith.addf %140, %142 : vector<32x256xf32>
    %cst_102 = arith.constant 0.000000e+00 : f32
    %144 = vector.broadcast %cst_102 : f32 to vector<32x256xf32>
    %145 = arith.maximumf %143, %144 : vector<32x256xf32>
    %c17_i32_103 = arith.constant 17 : i32
    %146 = tpu.dynamic_rotate %145 by %c17_i32_103 dim 1 : vector<32x256xf32>, i32 -> vector<32x256xf32>
    %147 = vector.broadcast %1 : vector<1x256xf32> to vector<32x256xf32>
    %148 = arith.mulf %146, %147 : vector<32x256xf32>
    %c0_104 = arith.constant 0 : index
    %c0_105 = arith.constant 0 : index
    %c0_106 = arith.constant 0 : index
    %149 = vector.load %arg7[%c0_104, %c0_105, %c0_106] : memref<9x32x32xf32, #tpu.memory_space<vmem>>, vector<1x32x32xf32>
    %150 = vector.shape_cast %149 : vector<1x32x32xf32> to vector<32x32xf32>
    %cst_107 = arith.constant dense<0.000000e+00> : vector<32x256xf32>
    %151 = tpu.matmul %150, %148, %cst_107 {dimension_numbers = #tpu.dot_dimension_numbers<[1], [0], [0], [1], [0, 0, 1, 1], [], []>} : vector<32x32xf32>, vector<32x256xf32>, vector<32x256xf32> -> vector<32x256xf32>
    %c16_i32_108 = arith.constant 16 : i32
    %152 = tpu.dynamic_rotate %145 by %c16_i32_108 dim 1 : vector<32x256xf32>, i32 -> vector<32x256xf32>
    %153 = vector.broadcast %3 : vector<1x256xf32> to vector<32x256xf32>
    %154 = arith.mulf %152, %153 : vector<32x256xf32>
    %c1_109 = arith.constant 1 : index
    %c0_110 = arith.constant 0 : index
    %c0_111 = arith.constant 0 : index
    %155 = vector.load %arg7[%c1_109, %c0_110, %c0_111] : memref<9x32x32xf32, #tpu.memory_space<vmem>>, vector<1x32x32xf32>
    %156 = vector.shape_cast %155 : vector<1x32x32xf32> to vector<32x32xf32>
    %cst_112 = arith.constant dense<0.000000e+00> : vector<32x256xf32>
    %157 = tpu.matmul %156, %154, %cst_112 {dimension_numbers = #tpu.dot_dimension_numbers<[1], [0], [0], [1], [0, 0, 1, 1], [], []>} : vector<32x32xf32>, vector<32x256xf32>, vector<32x256xf32> -> vector<32x256xf32>
    %158 = arith.addf %151, %157 : vector<32x256xf32>
    %c15_i32_113 = arith.constant 15 : i32
    %159 = tpu.dynamic_rotate %145 by %c15_i32_113 dim 1 : vector<32x256xf32>, i32 -> vector<32x256xf32>
    %160 = vector.broadcast %5 : vector<1x256xf32> to vector<32x256xf32>
    %161 = arith.mulf %159, %160 : vector<32x256xf32>
    %c2_114 = arith.constant 2 : index
    %c0_115 = arith.constant 0 : index
    %c0_116 = arith.constant 0 : index
    %162 = vector.load %arg7[%c2_114, %c0_115, %c0_116] : memref<9x32x32xf32, #tpu.memory_space<vmem>>, vector<1x32x32xf32>
    %163 = vector.shape_cast %162 : vector<1x32x32xf32> to vector<32x32xf32>
    %cst_117 = arith.constant dense<0.000000e+00> : vector<32x256xf32>
    %164 = tpu.matmul %163, %161, %cst_117 {dimension_numbers = #tpu.dot_dimension_numbers<[1], [0], [0], [1], [0, 0, 1, 1], [], []>} : vector<32x32xf32>, vector<32x256xf32>, vector<32x256xf32> -> vector<32x256xf32>
    %165 = arith.addf %158, %164 : vector<32x256xf32>
    %c1_i32_118 = arith.constant 1 : i32
    %166 = tpu.dynamic_rotate %145 by %c1_i32_118 dim 1 : vector<32x256xf32>, i32 -> vector<32x256xf32>
    %167 = vector.broadcast %7 : vector<1x256xf32> to vector<32x256xf32>
    %168 = arith.mulf %166, %167 : vector<32x256xf32>
    %c3_119 = arith.constant 3 : index
    %c0_120 = arith.constant 0 : index
    %c0_121 = arith.constant 0 : index
    %169 = vector.load %arg7[%c3_119, %c0_120, %c0_121] : memref<9x32x32xf32, #tpu.memory_space<vmem>>, vector<1x32x32xf32>
    %170 = vector.shape_cast %169 : vector<1x32x32xf32> to vector<32x32xf32>
    %cst_122 = arith.constant dense<0.000000e+00> : vector<32x256xf32>
    %171 = tpu.matmul %170, %168, %cst_122 {dimension_numbers = #tpu.dot_dimension_numbers<[1], [0], [0], [1], [0, 0, 1, 1], [], []>} : vector<32x32xf32>, vector<32x256xf32>, vector<32x256xf32> -> vector<32x256xf32>
    %172 = arith.addf %165, %171 : vector<32x256xf32>
    %c4_123 = arith.constant 4 : index
    %c0_124 = arith.constant 0 : index
    %c0_125 = arith.constant 0 : index
    %173 = vector.load %arg7[%c4_123, %c0_124, %c0_125] : memref<9x32x32xf32, #tpu.memory_space<vmem>>, vector<1x32x32xf32>
    %174 = vector.shape_cast %173 : vector<1x32x32xf32> to vector<32x32xf32>
    %cst_126 = arith.constant dense<0.000000e+00> : vector<32x256xf32>
    %175 = tpu.matmul %174, %145, %cst_126 {dimension_numbers = #tpu.dot_dimension_numbers<[1], [0], [0], [1], [0, 0, 1, 1], [], []>} : vector<32x32xf32>, vector<32x256xf32>, vector<32x256xf32> -> vector<32x256xf32>
    %176 = arith.addf %172, %175 : vector<32x256xf32>
    %c255_i32_127 = arith.constant 255 : i32
    %177 = tpu.dynamic_rotate %145 by %c255_i32_127 dim 1 : vector<32x256xf32>, i32 -> vector<32x256xf32>
    %178 = vector.broadcast %9 : vector<1x256xf32> to vector<32x256xf32>
    %179 = arith.mulf %177, %178 : vector<32x256xf32>
    %c5_128 = arith.constant 5 : index
    %c0_129 = arith.constant 0 : index
    %c0_130 = arith.constant 0 : index
    %180 = vector.load %arg7[%c5_128, %c0_129, %c0_130] : memref<9x32x32xf32, #tpu.memory_space<vmem>>, vector<1x32x32xf32>
    %181 = vector.shape_cast %180 : vector<1x32x32xf32> to vector<32x32xf32>
    %cst_131 = arith.constant dense<0.000000e+00> : vector<32x256xf32>
    %182 = tpu.matmul %181, %179, %cst_131 {dimension_numbers = #tpu.dot_dimension_numbers<[1], [0], [0], [1], [0, 0, 1, 1], [], []>} : vector<32x32xf32>, vector<32x256xf32>, vector<32x256xf32> -> vector<32x256xf32>
    %183 = arith.addf %176, %182 : vector<32x256xf32>
    %c241_i32_132 = arith.constant 241 : i32
    %184 = tpu.dynamic_rotate %145 by %c241_i32_132 dim 1 : vector<32x256xf32>, i32 -> vector<32x256xf32>
    %185 = vector.broadcast %11 : vector<1x256xf32> to vector<32x256xf32>
    %186 = arith.mulf %184, %185 : vector<32x256xf32>
    %c6_133 = arith.constant 6 : index
    %c0_134 = arith.constant 0 : index
    %c0_135 = arith.constant 0 : index
    %187 = vector.load %arg7[%c6_133, %c0_134, %c0_135] : memref<9x32x32xf32, #tpu.memory_space<vmem>>, vector<1x32x32xf32>
    %188 = vector.shape_cast %187 : vector<1x32x32xf32> to vector<32x32xf32>
    %cst_136 = arith.constant dense<0.000000e+00> : vector<32x256xf32>
    %189 = tpu.matmul %188, %186, %cst_136 {dimension_numbers = #tpu.dot_dimension_numbers<[1], [0], [0], [1], [0, 0, 1, 1], [], []>} : vector<32x32xf32>, vector<32x256xf32>, vector<32x256xf32> -> vector<32x256xf32>
    %190 = arith.addf %183, %189 : vector<32x256xf32>
    %c240_i32_137 = arith.constant 240 : i32
    %191 = tpu.dynamic_rotate %145 by %c240_i32_137 dim 1 : vector<32x256xf32>, i32 -> vector<32x256xf32>
    %192 = vector.broadcast %13 : vector<1x256xf32> to vector<32x256xf32>
    %193 = arith.mulf %191, %192 : vector<32x256xf32>
    %c7_138 = arith.constant 7 : index
    %c0_139 = arith.constant 0 : index
    %c0_140 = arith.constant 0 : index
    %194 = vector.load %arg7[%c7_138, %c0_139, %c0_140] : memref<9x32x32xf32, #tpu.memory_space<vmem>>, vector<1x32x32xf32>
    %195 = vector.shape_cast %194 : vector<1x32x32xf32> to vector<32x32xf32>
    %cst_141 = arith.constant dense<0.000000e+00> : vector<32x256xf32>
    %196 = tpu.matmul %195, %193, %cst_141 {dimension_numbers = #tpu.dot_dimension_numbers<[1], [0], [0], [1], [0, 0, 1, 1], [], []>} : vector<32x32xf32>, vector<32x256xf32>, vector<32x256xf32> -> vector<32x256xf32>
    %197 = arith.addf %190, %196 : vector<32x256xf32>
    %c239_i32_142 = arith.constant 239 : i32
    %198 = tpu.dynamic_rotate %145 by %c239_i32_142 dim 1 : vector<32x256xf32>, i32 -> vector<32x256xf32>
    %199 = vector.broadcast %15 : vector<1x256xf32> to vector<32x256xf32>
    %200 = arith.mulf %198, %199 : vector<32x256xf32>
    %c8_143 = arith.constant 8 : index
    %c0_144 = arith.constant 0 : index
    %c0_145 = arith.constant 0 : index
    %201 = vector.load %arg7[%c8_143, %c0_144, %c0_145] : memref<9x32x32xf32, #tpu.memory_space<vmem>>, vector<1x32x32xf32>
    %202 = vector.shape_cast %201 : vector<1x32x32xf32> to vector<32x32xf32>
    %cst_146 = arith.constant dense<0.000000e+00> : vector<32x256xf32>
    %203 = tpu.matmul %202, %200, %cst_146 {dimension_numbers = #tpu.dot_dimension_numbers<[1], [0], [0], [1], [0, 0, 1, 1], [], []>} : vector<32x32xf32>, vector<32x256xf32>, vector<32x256xf32> -> vector<32x256xf32>
    %204 = arith.addf %197, %203 : vector<32x256xf32>
    %c0_147 = arith.constant 0 : index
    %c0_148 = arith.constant 0 : index
    %205 = vector.load %arg8[%c0_147, %c0_148] : memref<32x1xf32, #tpu.memory_space<vmem>>, vector<32x1xf32>
    %206 = vector.broadcast %205 : vector<32x1xf32> to vector<32x256xf32>
    %207 = arith.addf %204, %206 : vector<32x256xf32>
    %cst_149 = arith.constant 0.000000e+00 : f32
    %208 = vector.broadcast %cst_149 : f32 to vector<32x256xf32>
    %209 = arith.maximumf %207, %208 : vector<32x256xf32>
    %c17_i32_150 = arith.constant 17 : i32
    %210 = tpu.dynamic_rotate %209 by %c17_i32_150 dim 1 : vector<32x256xf32>, i32 -> vector<32x256xf32>
    %211 = vector.broadcast %1 : vector<1x256xf32> to vector<32x256xf32>
    %212 = arith.mulf %210, %211 : vector<32x256xf32>
    %c0_151 = arith.constant 0 : index
    %c0_152 = arith.constant 0 : index
    %c0_153 = arith.constant 0 : index
    %213 = vector.load %arg9[%c0_151, %c0_152, %c0_153] : memref<9x32x32xf32, #tpu.memory_space<vmem>>, vector<1x32x32xf32>
    %214 = vector.shape_cast %213 : vector<1x32x32xf32> to vector<32x32xf32>
    %cst_154 = arith.constant dense<0.000000e+00> : vector<32x256xf32>
    %215 = tpu.matmul %214, %212, %cst_154 {dimension_numbers = #tpu.dot_dimension_numbers<[1], [0], [0], [1], [0, 0, 1, 1], [], []>} : vector<32x32xf32>, vector<32x256xf32>, vector<32x256xf32> -> vector<32x256xf32>
    %c16_i32_155 = arith.constant 16 : i32
    %216 = tpu.dynamic_rotate %209 by %c16_i32_155 dim 1 : vector<32x256xf32>, i32 -> vector<32x256xf32>
    %217 = vector.broadcast %3 : vector<1x256xf32> to vector<32x256xf32>
    %218 = arith.mulf %216, %217 : vector<32x256xf32>
    %c1_156 = arith.constant 1 : index
    %c0_157 = arith.constant 0 : index
    %c0_158 = arith.constant 0 : index
    %219 = vector.load %arg9[%c1_156, %c0_157, %c0_158] : memref<9x32x32xf32, #tpu.memory_space<vmem>>, vector<1x32x32xf32>
    %220 = vector.shape_cast %219 : vector<1x32x32xf32> to vector<32x32xf32>
    %cst_159 = arith.constant dense<0.000000e+00> : vector<32x256xf32>
    %221 = tpu.matmul %220, %218, %cst_159 {dimension_numbers = #tpu.dot_dimension_numbers<[1], [0], [0], [1], [0, 0, 1, 1], [], []>} : vector<32x32xf32>, vector<32x256xf32>, vector<32x256xf32> -> vector<32x256xf32>
    %222 = arith.addf %215, %221 : vector<32x256xf32>
    %c15_i32_160 = arith.constant 15 : i32
    %223 = tpu.dynamic_rotate %209 by %c15_i32_160 dim 1 : vector<32x256xf32>, i32 -> vector<32x256xf32>
    %224 = vector.broadcast %5 : vector<1x256xf32> to vector<32x256xf32>
    %225 = arith.mulf %223, %224 : vector<32x256xf32>
    %c2_161 = arith.constant 2 : index
    %c0_162 = arith.constant 0 : index
    %c0_163 = arith.constant 0 : index
    %226 = vector.load %arg9[%c2_161, %c0_162, %c0_163] : memref<9x32x32xf32, #tpu.memory_space<vmem>>, vector<1x32x32xf32>
    %227 = vector.shape_cast %226 : vector<1x32x32xf32> to vector<32x32xf32>
    %cst_164 = arith.constant dense<0.000000e+00> : vector<32x256xf32>
    %228 = tpu.matmul %227, %225, %cst_164 {dimension_numbers = #tpu.dot_dimension_numbers<[1], [0], [0], [1], [0, 0, 1, 1], [], []>} : vector<32x32xf32>, vector<32x256xf32>, vector<32x256xf32> -> vector<32x256xf32>
    %229 = arith.addf %222, %228 : vector<32x256xf32>
    %c1_i32_165 = arith.constant 1 : i32
    %230 = tpu.dynamic_rotate %209 by %c1_i32_165 dim 1 : vector<32x256xf32>, i32 -> vector<32x256xf32>
    %231 = vector.broadcast %7 : vector<1x256xf32> to vector<32x256xf32>
    %232 = arith.mulf %230, %231 : vector<32x256xf32>
    %c3_166 = arith.constant 3 : index
    %c0_167 = arith.constant 0 : index
    %c0_168 = arith.constant 0 : index
    %233 = vector.load %arg9[%c3_166, %c0_167, %c0_168] : memref<9x32x32xf32, #tpu.memory_space<vmem>>, vector<1x32x32xf32>
    %234 = vector.shape_cast %233 : vector<1x32x32xf32> to vector<32x32xf32>
    %cst_169 = arith.constant dense<0.000000e+00> : vector<32x256xf32>
    %235 = tpu.matmul %234, %232, %cst_169 {dimension_numbers = #tpu.dot_dimension_numbers<[1], [0], [0], [1], [0, 0, 1, 1], [], []>} : vector<32x32xf32>, vector<32x256xf32>, vector<32x256xf32> -> vector<32x256xf32>
    %236 = arith.addf %229, %235 : vector<32x256xf32>
    %c4_170 = arith.constant 4 : index
    %c0_171 = arith.constant 0 : index
    %c0_172 = arith.constant 0 : index
    %237 = vector.load %arg9[%c4_170, %c0_171, %c0_172] : memref<9x32x32xf32, #tpu.memory_space<vmem>>, vector<1x32x32xf32>
    %238 = vector.shape_cast %237 : vector<1x32x32xf32> to vector<32x32xf32>
    %cst_173 = arith.constant dense<0.000000e+00> : vector<32x256xf32>
    %239 = tpu.matmul %238, %209, %cst_173 {dimension_numbers = #tpu.dot_dimension_numbers<[1], [0], [0], [1], [0, 0, 1, 1], [], []>} : vector<32x32xf32>, vector<32x256xf32>, vector<32x256xf32> -> vector<32x256xf32>
    %240 = arith.addf %236, %239 : vector<32x256xf32>
    %c255_i32_174 = arith.constant 255 : i32
    %241 = tpu.dynamic_rotate %209 by %c255_i32_174 dim 1 : vector<32x256xf32>, i32 -> vector<32x256xf32>
    %242 = vector.broadcast %9 : vector<1x256xf32> to vector<32x256xf32>
    %243 = arith.mulf %241, %242 : vector<32x256xf32>
    %c5_175 = arith.constant 5 : index
    %c0_176 = arith.constant 0 : index
    %c0_177 = arith.constant 0 : index
    %244 = vector.load %arg9[%c5_175, %c0_176, %c0_177] : memref<9x32x32xf32, #tpu.memory_space<vmem>>, vector<1x32x32xf32>
    %245 = vector.shape_cast %244 : vector<1x32x32xf32> to vector<32x32xf32>
    %cst_178 = arith.constant dense<0.000000e+00> : vector<32x256xf32>
    %246 = tpu.matmul %245, %243, %cst_178 {dimension_numbers = #tpu.dot_dimension_numbers<[1], [0], [0], [1], [0, 0, 1, 1], [], []>} : vector<32x32xf32>, vector<32x256xf32>, vector<32x256xf32> -> vector<32x256xf32>
    %247 = arith.addf %240, %246 : vector<32x256xf32>
    %c241_i32_179 = arith.constant 241 : i32
    %248 = tpu.dynamic_rotate %209 by %c241_i32_179 dim 1 : vector<32x256xf32>, i32 -> vector<32x256xf32>
    %249 = vector.broadcast %11 : vector<1x256xf32> to vector<32x256xf32>
    %250 = arith.mulf %248, %249 : vector<32x256xf32>
    %c6_180 = arith.constant 6 : index
    %c0_181 = arith.constant 0 : index
    %c0_182 = arith.constant 0 : index
    %251 = vector.load %arg9[%c6_180, %c0_181, %c0_182] : memref<9x32x32xf32, #tpu.memory_space<vmem>>, vector<1x32x32xf32>
    %252 = vector.shape_cast %251 : vector<1x32x32xf32> to vector<32x32xf32>
    %cst_183 = arith.constant dense<0.000000e+00> : vector<32x256xf32>
    %253 = tpu.matmul %252, %250, %cst_183 {dimension_numbers = #tpu.dot_dimension_numbers<[1], [0], [0], [1], [0, 0, 1, 1], [], []>} : vector<32x32xf32>, vector<32x256xf32>, vector<32x256xf32> -> vector<32x256xf32>
    %254 = arith.addf %247, %253 : vector<32x256xf32>
    %c240_i32_184 = arith.constant 240 : i32
    %255 = tpu.dynamic_rotate %209 by %c240_i32_184 dim 1 : vector<32x256xf32>, i32 -> vector<32x256xf32>
    %256 = vector.broadcast %13 : vector<1x256xf32> to vector<32x256xf32>
    %257 = arith.mulf %255, %256 : vector<32x256xf32>
    %c7_185 = arith.constant 7 : index
    %c0_186 = arith.constant 0 : index
    %c0_187 = arith.constant 0 : index
    %258 = vector.load %arg9[%c7_185, %c0_186, %c0_187] : memref<9x32x32xf32, #tpu.memory_space<vmem>>, vector<1x32x32xf32>
    %259 = vector.shape_cast %258 : vector<1x32x32xf32> to vector<32x32xf32>
    %cst_188 = arith.constant dense<0.000000e+00> : vector<32x256xf32>
    %260 = tpu.matmul %259, %257, %cst_188 {dimension_numbers = #tpu.dot_dimension_numbers<[1], [0], [0], [1], [0, 0, 1, 1], [], []>} : vector<32x32xf32>, vector<32x256xf32>, vector<32x256xf32> -> vector<32x256xf32>
    %261 = arith.addf %254, %260 : vector<32x256xf32>
    %c239_i32_189 = arith.constant 239 : i32
    %262 = tpu.dynamic_rotate %209 by %c239_i32_189 dim 1 : vector<32x256xf32>, i32 -> vector<32x256xf32>
    %263 = vector.broadcast %15 : vector<1x256xf32> to vector<32x256xf32>
    %264 = arith.mulf %262, %263 : vector<32x256xf32>
    %c8_190 = arith.constant 8 : index
    %c0_191 = arith.constant 0 : index
    %c0_192 = arith.constant 0 : index
    %265 = vector.load %arg9[%c8_190, %c0_191, %c0_192] : memref<9x32x32xf32, #tpu.memory_space<vmem>>, vector<1x32x32xf32>
    %266 = vector.shape_cast %265 : vector<1x32x32xf32> to vector<32x32xf32>
    %cst_193 = arith.constant dense<0.000000e+00> : vector<32x256xf32>
    %267 = tpu.matmul %266, %264, %cst_193 {dimension_numbers = #tpu.dot_dimension_numbers<[1], [0], [0], [1], [0, 0, 1, 1], [], []>} : vector<32x32xf32>, vector<32x256xf32>, vector<32x256xf32> -> vector<32x256xf32>
    %268 = arith.addf %261, %267 : vector<32x256xf32>
    %c0_194 = arith.constant 0 : index
    %c0_195 = arith.constant 0 : index
    %269 = vector.load %arg10[%c0_194, %c0_195] : memref<32x1xf32, #tpu.memory_space<vmem>>, vector<32x1xf32>
    %270 = vector.broadcast %269 : vector<32x1xf32> to vector<32x256xf32>
    %271 = arith.addf %268, %270 : vector<32x256xf32>
    %cst_196 = arith.constant 0.000000e+00 : f32
    %272 = vector.broadcast %cst_196 : f32 to vector<32x256xf32>
    %273 = arith.maximumf %271, %272 : vector<32x256xf32>
    %c17_i32_197 = arith.constant 17 : i32
    %274 = tpu.dynamic_rotate %273 by %c17_i32_197 dim 1 : vector<32x256xf32>, i32 -> vector<32x256xf32>
    %275 = vector.broadcast %1 : vector<1x256xf32> to vector<32x256xf32>
    %276 = arith.mulf %274, %275 : vector<32x256xf32>
    %c0_198 = arith.constant 0 : index
    %c0_199 = arith.constant 0 : index
    %c0_200 = arith.constant 0 : index
    %277 = vector.load %arg11[%c0_198, %c0_199, %c0_200] : memref<9x32x32xf32, #tpu.memory_space<vmem>>, vector<1x32x32xf32>
    %278 = vector.shape_cast %277 : vector<1x32x32xf32> to vector<32x32xf32>
    %cst_201 = arith.constant dense<0.000000e+00> : vector<32x256xf32>
    %279 = tpu.matmul %278, %276, %cst_201 {dimension_numbers = #tpu.dot_dimension_numbers<[1], [0], [0], [1], [0, 0, 1, 1], [], []>} : vector<32x32xf32>, vector<32x256xf32>, vector<32x256xf32> -> vector<32x256xf32>
    %c16_i32_202 = arith.constant 16 : i32
    %280 = tpu.dynamic_rotate %273 by %c16_i32_202 dim 1 : vector<32x256xf32>, i32 -> vector<32x256xf32>
    %281 = vector.broadcast %3 : vector<1x256xf32> to vector<32x256xf32>
    %282 = arith.mulf %280, %281 : vector<32x256xf32>
    %c1_203 = arith.constant 1 : index
    %c0_204 = arith.constant 0 : index
    %c0_205 = arith.constant 0 : index
    %283 = vector.load %arg11[%c1_203, %c0_204, %c0_205] : memref<9x32x32xf32, #tpu.memory_space<vmem>>, vector<1x32x32xf32>
    %284 = vector.shape_cast %283 : vector<1x32x32xf32> to vector<32x32xf32>
    %cst_206 = arith.constant dense<0.000000e+00> : vector<32x256xf32>
    %285 = tpu.matmul %284, %282, %cst_206 {dimension_numbers = #tpu.dot_dimension_numbers<[1], [0], [0], [1], [0, 0, 1, 1], [], []>} : vector<32x32xf32>, vector<32x256xf32>, vector<32x256xf32> -> vector<32x256xf32>
    %286 = arith.addf %279, %285 : vector<32x256xf32>
    %c15_i32_207 = arith.constant 15 : i32
    %287 = tpu.dynamic_rotate %273 by %c15_i32_207 dim 1 : vector<32x256xf32>, i32 -> vector<32x256xf32>
    %288 = vector.broadcast %5 : vector<1x256xf32> to vector<32x256xf32>
    %289 = arith.mulf %287, %288 : vector<32x256xf32>
    %c2_208 = arith.constant 2 : index
    %c0_209 = arith.constant 0 : index
    %c0_210 = arith.constant 0 : index
    %290 = vector.load %arg11[%c2_208, %c0_209, %c0_210] : memref<9x32x32xf32, #tpu.memory_space<vmem>>, vector<1x32x32xf32>
    %291 = vector.shape_cast %290 : vector<1x32x32xf32> to vector<32x32xf32>
    %cst_211 = arith.constant dense<0.000000e+00> : vector<32x256xf32>
    %292 = tpu.matmul %291, %289, %cst_211 {dimension_numbers = #tpu.dot_dimension_numbers<[1], [0], [0], [1], [0, 0, 1, 1], [], []>} : vector<32x32xf32>, vector<32x256xf32>, vector<32x256xf32> -> vector<32x256xf32>
    %293 = arith.addf %286, %292 : vector<32x256xf32>
    %c1_i32_212 = arith.constant 1 : i32
    %294 = tpu.dynamic_rotate %273 by %c1_i32_212 dim 1 : vector<32x256xf32>, i32 -> vector<32x256xf32>
    %295 = vector.broadcast %7 : vector<1x256xf32> to vector<32x256xf32>
    %296 = arith.mulf %294, %295 : vector<32x256xf32>
    %c3_213 = arith.constant 3 : index
    %c0_214 = arith.constant 0 : index
    %c0_215 = arith.constant 0 : index
    %297 = vector.load %arg11[%c3_213, %c0_214, %c0_215] : memref<9x32x32xf32, #tpu.memory_space<vmem>>, vector<1x32x32xf32>
    %298 = vector.shape_cast %297 : vector<1x32x32xf32> to vector<32x32xf32>
    %cst_216 = arith.constant dense<0.000000e+00> : vector<32x256xf32>
    %299 = tpu.matmul %298, %296, %cst_216 {dimension_numbers = #tpu.dot_dimension_numbers<[1], [0], [0], [1], [0, 0, 1, 1], [], []>} : vector<32x32xf32>, vector<32x256xf32>, vector<32x256xf32> -> vector<32x256xf32>
    %300 = arith.addf %293, %299 : vector<32x256xf32>
    %c4_217 = arith.constant 4 : index
    %c0_218 = arith.constant 0 : index
    %c0_219 = arith.constant 0 : index
    %301 = vector.load %arg11[%c4_217, %c0_218, %c0_219] : memref<9x32x32xf32, #tpu.memory_space<vmem>>, vector<1x32x32xf32>
    %302 = vector.shape_cast %301 : vector<1x32x32xf32> to vector<32x32xf32>
    %cst_220 = arith.constant dense<0.000000e+00> : vector<32x256xf32>
    %303 = tpu.matmul %302, %273, %cst_220 {dimension_numbers = #tpu.dot_dimension_numbers<[1], [0], [0], [1], [0, 0, 1, 1], [], []>} : vector<32x32xf32>, vector<32x256xf32>, vector<32x256xf32> -> vector<32x256xf32>
    %304 = arith.addf %300, %303 : vector<32x256xf32>
    %c255_i32_221 = arith.constant 255 : i32
    %305 = tpu.dynamic_rotate %273 by %c255_i32_221 dim 1 : vector<32x256xf32>, i32 -> vector<32x256xf32>
    %306 = vector.broadcast %9 : vector<1x256xf32> to vector<32x256xf32>
    %307 = arith.mulf %305, %306 : vector<32x256xf32>
    %c5_222 = arith.constant 5 : index
    %c0_223 = arith.constant 0 : index
    %c0_224 = arith.constant 0 : index
    %308 = vector.load %arg11[%c5_222, %c0_223, %c0_224] : memref<9x32x32xf32, #tpu.memory_space<vmem>>, vector<1x32x32xf32>
    %309 = vector.shape_cast %308 : vector<1x32x32xf32> to vector<32x32xf32>
    %cst_225 = arith.constant dense<0.000000e+00> : vector<32x256xf32>
    %310 = tpu.matmul %309, %307, %cst_225 {dimension_numbers = #tpu.dot_dimension_numbers<[1], [0], [0], [1], [0, 0, 1, 1], [], []>} : vector<32x32xf32>, vector<32x256xf32>, vector<32x256xf32> -> vector<32x256xf32>
    %311 = arith.addf %304, %310 : vector<32x256xf32>
    %c241_i32_226 = arith.constant 241 : i32
    %312 = tpu.dynamic_rotate %273 by %c241_i32_226 dim 1 : vector<32x256xf32>, i32 -> vector<32x256xf32>
    %313 = vector.broadcast %11 : vector<1x256xf32> to vector<32x256xf32>
    %314 = arith.mulf %312, %313 : vector<32x256xf32>
    %c6_227 = arith.constant 6 : index
    %c0_228 = arith.constant 0 : index
    %c0_229 = arith.constant 0 : index
    %315 = vector.load %arg11[%c6_227, %c0_228, %c0_229] : memref<9x32x32xf32, #tpu.memory_space<vmem>>, vector<1x32x32xf32>
    %316 = vector.shape_cast %315 : vector<1x32x32xf32> to vector<32x32xf32>
    %cst_230 = arith.constant dense<0.000000e+00> : vector<32x256xf32>
    %317 = tpu.matmul %316, %314, %cst_230 {dimension_numbers = #tpu.dot_dimension_numbers<[1], [0], [0], [1], [0, 0, 1, 1], [], []>} : vector<32x32xf32>, vector<32x256xf32>, vector<32x256xf32> -> vector<32x256xf32>
    %318 = arith.addf %311, %317 : vector<32x256xf32>
    %c240_i32_231 = arith.constant 240 : i32
    %319 = tpu.dynamic_rotate %273 by %c240_i32_231 dim 1 : vector<32x256xf32>, i32 -> vector<32x256xf32>
    %320 = vector.broadcast %13 : vector<1x256xf32> to vector<32x256xf32>
    %321 = arith.mulf %319, %320 : vector<32x256xf32>
    %c7_232 = arith.constant 7 : index
    %c0_233 = arith.constant 0 : index
    %c0_234 = arith.constant 0 : index
    %322 = vector.load %arg11[%c7_232, %c0_233, %c0_234] : memref<9x32x32xf32, #tpu.memory_space<vmem>>, vector<1x32x32xf32>
    %323 = vector.shape_cast %322 : vector<1x32x32xf32> to vector<32x32xf32>
    %cst_235 = arith.constant dense<0.000000e+00> : vector<32x256xf32>
    %324 = tpu.matmul %323, %321, %cst_235 {dimension_numbers = #tpu.dot_dimension_numbers<[1], [0], [0], [1], [0, 0, 1, 1], [], []>} : vector<32x32xf32>, vector<32x256xf32>, vector<32x256xf32> -> vector<32x256xf32>
    %325 = arith.addf %318, %324 : vector<32x256xf32>
    %c239_i32_236 = arith.constant 239 : i32
    %326 = tpu.dynamic_rotate %273 by %c239_i32_236 dim 1 : vector<32x256xf32>, i32 -> vector<32x256xf32>
    %327 = vector.broadcast %15 : vector<1x256xf32> to vector<32x256xf32>
    %328 = arith.mulf %326, %327 : vector<32x256xf32>
    %c8_237 = arith.constant 8 : index
    %c0_238 = arith.constant 0 : index
    %c0_239 = arith.constant 0 : index
    %329 = vector.load %arg11[%c8_237, %c0_238, %c0_239] : memref<9x32x32xf32, #tpu.memory_space<vmem>>, vector<1x32x32xf32>
    %330 = vector.shape_cast %329 : vector<1x32x32xf32> to vector<32x32xf32>
    %cst_240 = arith.constant dense<0.000000e+00> : vector<32x256xf32>
    %331 = tpu.matmul %330, %328, %cst_240 {dimension_numbers = #tpu.dot_dimension_numbers<[1], [0], [0], [1], [0, 0, 1, 1], [], []>} : vector<32x32xf32>, vector<32x256xf32>, vector<32x256xf32> -> vector<32x256xf32>
    %332 = arith.addf %325, %331 : vector<32x256xf32>
    %c0_241 = arith.constant 0 : index
    %c0_242 = arith.constant 0 : index
    %333 = vector.load %arg12[%c0_241, %c0_242] : memref<32x1xf32, #tpu.memory_space<vmem>>, vector<32x1xf32>
    %334 = vector.broadcast %333 : vector<32x1xf32> to vector<32x256xf32>
    %335 = arith.addf %332, %334 : vector<32x256xf32>
    %cst_243 = arith.constant 0.000000e+00 : f32
    %336 = vector.broadcast %cst_243 : f32 to vector<32x256xf32>
    %337 = arith.maximumf %335, %336 : vector<32x256xf32>
    %c17_i32_244 = arith.constant 17 : i32
    %338 = tpu.dynamic_rotate %337 by %c17_i32_244 dim 1 : vector<32x256xf32>, i32 -> vector<32x256xf32>
    %339 = vector.broadcast %1 : vector<1x256xf32> to vector<32x256xf32>
    %340 = arith.mulf %338, %339 : vector<32x256xf32>
    %c0_245 = arith.constant 0 : index
    %c0_246 = arith.constant 0 : index
    %c0_247 = arith.constant 0 : index
    %341 = vector.load %arg13[%c0_245, %c0_246, %c0_247] : memref<9x32x32xf32, #tpu.memory_space<vmem>>, vector<1x32x32xf32>
    %342 = vector.shape_cast %341 : vector<1x32x32xf32> to vector<32x32xf32>
    %cst_248 = arith.constant dense<0.000000e+00> : vector<32x256xf32>
    %343 = tpu.matmul %342, %340, %cst_248 {dimension_numbers = #tpu.dot_dimension_numbers<[1], [0], [0], [1], [0, 0, 1, 1], [], []>} : vector<32x32xf32>, vector<32x256xf32>, vector<32x256xf32> -> vector<32x256xf32>
    %c16_i32_249 = arith.constant 16 : i32
    %344 = tpu.dynamic_rotate %337 by %c16_i32_249 dim 1 : vector<32x256xf32>, i32 -> vector<32x256xf32>
    %345 = vector.broadcast %3 : vector<1x256xf32> to vector<32x256xf32>
    %346 = arith.mulf %344, %345 : vector<32x256xf32>
    %c1_250 = arith.constant 1 : index
    %c0_251 = arith.constant 0 : index
    %c0_252 = arith.constant 0 : index
    %347 = vector.load %arg13[%c1_250, %c0_251, %c0_252] : memref<9x32x32xf32, #tpu.memory_space<vmem>>, vector<1x32x32xf32>
    %348 = vector.shape_cast %347 : vector<1x32x32xf32> to vector<32x32xf32>
    %cst_253 = arith.constant dense<0.000000e+00> : vector<32x256xf32>
    %349 = tpu.matmul %348, %346, %cst_253 {dimension_numbers = #tpu.dot_dimension_numbers<[1], [0], [0], [1], [0, 0, 1, 1], [], []>} : vector<32x32xf32>, vector<32x256xf32>, vector<32x256xf32> -> vector<32x256xf32>
    %350 = arith.addf %343, %349 : vector<32x256xf32>
    %c15_i32_254 = arith.constant 15 : i32
    %351 = tpu.dynamic_rotate %337 by %c15_i32_254 dim 1 : vector<32x256xf32>, i32 -> vector<32x256xf32>
    %352 = vector.broadcast %5 : vector<1x256xf32> to vector<32x256xf32>
    %353 = arith.mulf %351, %352 : vector<32x256xf32>
    %c2_255 = arith.constant 2 : index
    %c0_256 = arith.constant 0 : index
    %c0_257 = arith.constant 0 : index
    %354 = vector.load %arg13[%c2_255, %c0_256, %c0_257] : memref<9x32x32xf32, #tpu.memory_space<vmem>>, vector<1x32x32xf32>
    %355 = vector.shape_cast %354 : vector<1x32x32xf32> to vector<32x32xf32>
    %cst_258 = arith.constant dense<0.000000e+00> : vector<32x256xf32>
    %356 = tpu.matmul %355, %353, %cst_258 {dimension_numbers = #tpu.dot_dimension_numbers<[1], [0], [0], [1], [0, 0, 1, 1], [], []>} : vector<32x32xf32>, vector<32x256xf32>, vector<32x256xf32> -> vector<32x256xf32>
    %357 = arith.addf %350, %356 : vector<32x256xf32>
    %c1_i32_259 = arith.constant 1 : i32
    %358 = tpu.dynamic_rotate %337 by %c1_i32_259 dim 1 : vector<32x256xf32>, i32 -> vector<32x256xf32>
    %359 = vector.broadcast %7 : vector<1x256xf32> to vector<32x256xf32>
    %360 = arith.mulf %358, %359 : vector<32x256xf32>
    %c3_260 = arith.constant 3 : index
    %c0_261 = arith.constant 0 : index
    %c0_262 = arith.constant 0 : index
    %361 = vector.load %arg13[%c3_260, %c0_261, %c0_262] : memref<9x32x32xf32, #tpu.memory_space<vmem>>, vector<1x32x32xf32>
    %362 = vector.shape_cast %361 : vector<1x32x32xf32> to vector<32x32xf32>
    %cst_263 = arith.constant dense<0.000000e+00> : vector<32x256xf32>
    %363 = tpu.matmul %362, %360, %cst_263 {dimension_numbers = #tpu.dot_dimension_numbers<[1], [0], [0], [1], [0, 0, 1, 1], [], []>} : vector<32x32xf32>, vector<32x256xf32>, vector<32x256xf32> -> vector<32x256xf32>
    %364 = arith.addf %357, %363 : vector<32x256xf32>
    %c4_264 = arith.constant 4 : index
    %c0_265 = arith.constant 0 : index
    %c0_266 = arith.constant 0 : index
    %365 = vector.load %arg13[%c4_264, %c0_265, %c0_266] : memref<9x32x32xf32, #tpu.memory_space<vmem>>, vector<1x32x32xf32>
    %366 = vector.shape_cast %365 : vector<1x32x32xf32> to vector<32x32xf32>
    %cst_267 = arith.constant dense<0.000000e+00> : vector<32x256xf32>
    %367 = tpu.matmul %366, %337, %cst_267 {dimension_numbers = #tpu.dot_dimension_numbers<[1], [0], [0], [1], [0, 0, 1, 1], [], []>} : vector<32x32xf32>, vector<32x256xf32>, vector<32x256xf32> -> vector<32x256xf32>
    %368 = arith.addf %364, %367 : vector<32x256xf32>
    %c255_i32_268 = arith.constant 255 : i32
    %369 = tpu.dynamic_rotate %337 by %c255_i32_268 dim 1 : vector<32x256xf32>, i32 -> vector<32x256xf32>
    %370 = vector.broadcast %9 : vector<1x256xf32> to vector<32x256xf32>
    %371 = arith.mulf %369, %370 : vector<32x256xf32>
    %c5_269 = arith.constant 5 : index
    %c0_270 = arith.constant 0 : index
    %c0_271 = arith.constant 0 : index
    %372 = vector.load %arg13[%c5_269, %c0_270, %c0_271] : memref<9x32x32xf32, #tpu.memory_space<vmem>>, vector<1x32x32xf32>
    %373 = vector.shape_cast %372 : vector<1x32x32xf32> to vector<32x32xf32>
    %cst_272 = arith.constant dense<0.000000e+00> : vector<32x256xf32>
    %374 = tpu.matmul %373, %371, %cst_272 {dimension_numbers = #tpu.dot_dimension_numbers<[1], [0], [0], [1], [0, 0, 1, 1], [], []>} : vector<32x32xf32>, vector<32x256xf32>, vector<32x256xf32> -> vector<32x256xf32>
    %375 = arith.addf %368, %374 : vector<32x256xf32>
    %c241_i32_273 = arith.constant 241 : i32
    %376 = tpu.dynamic_rotate %337 by %c241_i32_273 dim 1 : vector<32x256xf32>, i32 -> vector<32x256xf32>
    %377 = vector.broadcast %11 : vector<1x256xf32> to vector<32x256xf32>
    %378 = arith.mulf %376, %377 : vector<32x256xf32>
    %c6_274 = arith.constant 6 : index
    %c0_275 = arith.constant 0 : index
    %c0_276 = arith.constant 0 : index
    %379 = vector.load %arg13[%c6_274, %c0_275, %c0_276] : memref<9x32x32xf32, #tpu.memory_space<vmem>>, vector<1x32x32xf32>
    %380 = vector.shape_cast %379 : vector<1x32x32xf32> to vector<32x32xf32>
    %cst_277 = arith.constant dense<0.000000e+00> : vector<32x256xf32>
    %381 = tpu.matmul %380, %378, %cst_277 {dimension_numbers = #tpu.dot_dimension_numbers<[1], [0], [0], [1], [0, 0, 1, 1], [], []>} : vector<32x32xf32>, vector<32x256xf32>, vector<32x256xf32> -> vector<32x256xf32>
    %382 = arith.addf %375, %381 : vector<32x256xf32>
    %c240_i32_278 = arith.constant 240 : i32
    %383 = tpu.dynamic_rotate %337 by %c240_i32_278 dim 1 : vector<32x256xf32>, i32 -> vector<32x256xf32>
    %384 = vector.broadcast %13 : vector<1x256xf32> to vector<32x256xf32>
    %385 = arith.mulf %383, %384 : vector<32x256xf32>
    %c7_279 = arith.constant 7 : index
    %c0_280 = arith.constant 0 : index
    %c0_281 = arith.constant 0 : index
    %386 = vector.load %arg13[%c7_279, %c0_280, %c0_281] : memref<9x32x32xf32, #tpu.memory_space<vmem>>, vector<1x32x32xf32>
    %387 = vector.shape_cast %386 : vector<1x32x32xf32> to vector<32x32xf32>
    %cst_282 = arith.constant dense<0.000000e+00> : vector<32x256xf32>
    %388 = tpu.matmul %387, %385, %cst_282 {dimension_numbers = #tpu.dot_dimension_numbers<[1], [0], [0], [1], [0, 0, 1, 1], [], []>} : vector<32x32xf32>, vector<32x256xf32>, vector<32x256xf32> -> vector<32x256xf32>
    %389 = arith.addf %382, %388 : vector<32x256xf32>
    %c239_i32_283 = arith.constant 239 : i32
    %390 = tpu.dynamic_rotate %337 by %c239_i32_283 dim 1 : vector<32x256xf32>, i32 -> vector<32x256xf32>
    %391 = vector.broadcast %15 : vector<1x256xf32> to vector<32x256xf32>
    %392 = arith.mulf %390, %391 : vector<32x256xf32>
    %c8_284 = arith.constant 8 : index
    %c0_285 = arith.constant 0 : index
    %c0_286 = arith.constant 0 : index
    %393 = vector.load %arg13[%c8_284, %c0_285, %c0_286] : memref<9x32x32xf32, #tpu.memory_space<vmem>>, vector<1x32x32xf32>
    %394 = vector.shape_cast %393 : vector<1x32x32xf32> to vector<32x32xf32>
    %cst_287 = arith.constant dense<0.000000e+00> : vector<32x256xf32>
    %395 = tpu.matmul %394, %392, %cst_287 {dimension_numbers = #tpu.dot_dimension_numbers<[1], [0], [0], [1], [0, 0, 1, 1], [], []>} : vector<32x32xf32>, vector<32x256xf32>, vector<32x256xf32> -> vector<32x256xf32>
    %396 = arith.addf %389, %395 : vector<32x256xf32>
    %c0_288 = arith.constant 0 : index
    %c0_289 = arith.constant 0 : index
    %397 = vector.load %arg14[%c0_288, %c0_289] : memref<32x1xf32, #tpu.memory_space<vmem>>, vector<32x1xf32>
    %398 = vector.broadcast %397 : vector<32x1xf32> to vector<32x256xf32>
    %399 = arith.addf %396, %398 : vector<32x256xf32>
    %cst_290 = arith.constant 0.000000e+00 : f32
    %400 = vector.broadcast %cst_290 : f32 to vector<32x256xf32>
    %401 = arith.maximumf %399, %400 : vector<32x256xf32>
    %c0_291 = arith.constant 0 : index
    %c0_292 = arith.constant 0 : index
    %c0_293 = arith.constant 0 : index
    %402 = vector.load %arg15[%c0_291, %c0_292, %c0_293] : memref<1x32x256xf32, #tpu.memory_space<vmem>>, vector<1x32x256xf32>
    %403 = vector.shape_cast %402 : vector<1x32x256xf32> to vector<32x256xf32>
    %404 = vector.shape_cast %401 : vector<32x256xf32> to vector<1x32x256xf32>
    tpu.vector_store %arg15[%c0_291, %c0_292, %c0_293], %404 {strides = array<i32>} : memref<1x32x256xf32, #tpu.memory_space<vmem>>, vector<1x32x256xf32>,
    return
  }
  func.func @transform_0(%arg0: i32) -> (i32, i32, i32) {
    %c0_i32 = arith.constant 0 : i32
    %c0_i32_0 = arith.constant 0 : i32
    %c0_i32_1 = arith.constant 0 : i32
    return %arg0, %c0_i32, %c0_i32_0 : i32, i32, i32
  }
  func.func @transform_1(%arg0: i32) -> (i32, i32, i32) {
    %c0_i32 = arith.constant 0 : i32
    %c0_i32_0 = arith.constant 0 : i32
    %c0_i32_1 = arith.constant 0 : i32
    %c0_i32_2 = arith.constant 0 : i32
    return %c0_i32, %c0_i32_0, %c0_i32_1 : i32, i32, i32
  }
  func.func @transform_2(%arg0: i32) -> (i32, i32, i32) {
    %c0_i32 = arith.constant 0 : i32
    %c0_i32_0 = arith.constant 0 : i32
    %c0_i32_1 = arith.constant 0 : i32
    %c0_i32_2 = arith.constant 0 : i32
    return %c0_i32, %c0_i32_0, %c0_i32_1 : i32, i32, i32
  }
  func.func @transform_3(%arg0: i32) -> (i32, i32) {
    %c0_i32 = arith.constant 0 : i32
    %c0_i32_0 = arith.constant 0 : i32
    %c0_i32_1 = arith.constant 0 : i32
    return %c0_i32, %c0_i32_0 : i32, i32
  }
  func.func @transform_4(%arg0: i32) -> (i32, i32, i32) {
    %c0_i32 = arith.constant 0 : i32
    %c0_i32_0 = arith.constant 0 : i32
    %c0_i32_1 = arith.constant 0 : i32
    %c0_i32_2 = arith.constant 0 : i32
    return %c0_i32, %c0_i32_0, %c0_i32_1 : i32, i32, i32
  }
  func.func @transform_5(%arg0: i32) -> (i32, i32) {
    %c0_i32 = arith.constant 0 : i32
    %c0_i32_0 = arith.constant 0 : i32
    %c0_i32_1 = arith.constant 0 : i32
    return %c0_i32, %c0_i32_0 : i32, i32
  }
  func.func @transform_6(%arg0: i32) -> (i32, i32, i32) {
    %c0_i32 = arith.constant 0 : i32
    %c0_i32_0 = arith.constant 0 : i32
    %c0_i32_1 = arith.constant 0 : i32
    %c0_i32_2 = arith.constant 0 : i32
    return %c0_i32, %c0_i32_0, %c0_i32_1 : i32, i32, i32
  }
  func.func @transform_7(%arg0: i32) -> (i32, i32) {
    %c0_i32 = arith.constant 0 : i32
    %c0_i32_0 = arith.constant 0 : i32
    %c0_i32_1 = arith.constant 0 : i32
    return %c0_i32, %c0_i32_0 : i32, i32
  }
  func.func @transform_8(%arg0: i32) -> (i32, i32, i32) {
    %c0_i32 = arith.constant 0 : i32
    %c0_i32_0 = arith.constant 0 : i32
    %c0_i32_1 = arith.constant 0 : i32
    %c0_i32_2 = arith.constant 0 : i32
    return %c0_i32, %c0_i32_0, %c0_i32_1 : i32, i32, i32
  }
  func.func @transform_9(%arg0: i32) -> (i32, i32) {
    %c0_i32 = arith.constant 0 : i32
    %c0_i32_0 = arith.constant 0 : i32
    %c0_i32_1 = arith.constant 0 : i32
    return %c0_i32, %c0_i32_0 : i32, i32
  }
  func.func @transform_10(%arg0: i32) -> (i32, i32, i32) {
    %c0_i32 = arith.constant 0 : i32
    %c0_i32_0 = arith.constant 0 : i32
    %c0_i32_1 = arith.constant 0 : i32
    %c0_i32_2 = arith.constant 0 : i32
    return %c0_i32, %c0_i32_0, %c0_i32_1 : i32, i32, i32
  }
  func.func @transform_11(%arg0: i32) -> (i32, i32) {
    %c0_i32 = arith.constant 0 : i32
    %c0_i32_0 = arith.constant 0 : i32
    %c0_i32_1 = arith.constant 0 : i32
    return %c0_i32, %c0_i32_0 : i32, i32
  }
  func.func @transform_12(%arg0: i32) -> (i32, i32, i32) {
    %c0_i32 = arith.constant 0 : i32
    %c0_i32_0 = arith.constant 0 : i32
    %c0_i32_1 = arith.constant 0 : i32
    %c0_i32_2 = arith.constant 0 : i32
    return %c0_i32, %c0_i32_0, %c0_i32_1 : i32, i32, i32
  }
  func.func @transform_13(%arg0: i32) -> (i32, i32) {
    %c0_i32 = arith.constant 0 : i32
    %c0_i32_0 = arith.constant 0 : i32
    %c0_i32_1 = arith.constant 0 : i32
    return %c0_i32, %c0_i32_0 : i32, i32
  }
  func.func @transform_14(%arg0: i32) -> (i32, i32, i32) {
    %c0_i32 = arith.constant 0 : i32
    %c0_i32_0 = arith.constant 0 : i32
    %c0_i32_1 = arith.constant 0 : i32
    return %arg0, %c0_i32, %c0_i32_0 : i32, i32, i32
  }
}

</mosaic_0001>

<bundles_post_ra>
// kernel: encoder_forward.1
= control target key start
LH: loop header
LB: loop body
LE: loop exit
PB: predicated region body
PF: predicated region fallthrough
CT: control target
= control target key end

     0   :  { %s8514_s29 = smov 0   ;;  %s12250_s0 = inlined_call_operand.vmem [shape: f32[2,3,256], index: 0, kind: input, shape index: {}]   ;;  %s12251_s1 = inlined_call_operand.vmem [shape: f32[9,1,256], index: 1, kind: input, shape index: {}]   ;;  %s12252_s2 = inlined_call_operand.vmem [shape: f32[9,16,3], index: 2, kind: input, shape index: {}]   ;;  %s12253_s3 = inlined_call_operand.vmem [shape: f32[16,1], index: 3, kind: input, shape index: {}]   ;;  %s12254_s4 = inlined_call_operand.vmem [shape: f32[9,32,16], index: 4, kind: input, shape index: {}]   ;;  %s12255_s5 = inlined_call_operand.vmem [shape: f32[32,1], index: 5, kind: input, shape index: {}]   ;;  %s12256_s6 = inlined_call_operand.vmem [shape: f32[9,32,32], index: 6, kind: input, shape index: {}]   ;;  %s12257_s7 = inlined_call_operand.vmem [shape: f32[32,1], index: 7, kind: input, shape index: {}]   ;;  %s12258_s8 = inlined_call_operand.vmem [shape: f32[9,32,32], index: 8, kind: input, shape index: {}]   ;;  %s12259_s9 = inlined_call_operand.vmem [shape: f32[32,1], index: 9, kind: input, shape index: {}]   ;;  %s12260_s10 = inlined_call_operand.vmem [shape: f32[9,32,32], index: 10, kind: input, shape index: {}]   ;;  %s12261_s11 = inlined_call_operand.vmem [shape: f32[32,1], index: 11, kind: input, shape index: {}]   ;;  %s12262_s12 = inlined_call_operand.vmem [shape: f32[9,32,32], index: 12, kind: input, shape index: {}]   ;;  %s12263_s13 = inlined_call_operand.vmem [shape: f32[32,1], index: 13, kind: input, shape index: {}]   ;;  %s12264_s14 = inlined_call_operand.vmem [shape: f32[2,32,256], index: 14, kind: output, shape index: {}]  }
   0x1 LB: > { %s7986_s30 = sadd.s32 4294967295, %s8427_s29   ;;  %p7990_p0 = scmp.ge.s32.totalorder %s8427_s29, 1  ;;  %s8427_s29 = sphi %s8514_s29, %s24_s29  }
   0x2   : > { %p412_p1 = scmp.lt.s32.totalorder %s8427_s29, 3 }
   0x4   : > { %p413_p2 = pnand %p7990_p0, %p412_p1 }
   0x6   : > { %416 = sbr.rel (%p413_p2) target bundleno = 2577 (0xa11), region = 76 }
   0xb   : > { %p458_p3 = scmp.lt.s32.totalorder %s7986_s30, 1  ;;  %v12269_v0 = vmov 0.0   ;;  %s8430_s19 = smov 16   ;;  %v1504_v3 = vld [vmem:[%s12253_s3] sm:$0xff]  ;;  %v1505_v4 = vld [vmem:[%s12253_s3 + $0x8] sm:$0xff]  ;;  %v8438_v5 = vmov 0   ;;  %v491_v6 = vlaneseq }
   0xc   : > { %612 = vmatprep.mubr.f32.mxu0 %v12269_v0  ;;  %707 = vmatprep.mubr.f32.mxu1 %v12269_v0  ;;  %s8431_s20 = smov 17   ;;  %s8432_s21 = smov 15   ;;  %v468_v11 = vld [vmem:[%s12251_s1] sm:$0x3]  ;;  %v7995_v12 = vld [vmem:[%s12251_s1 + $0x2] sm:$0x3] }
   0xd   : > { %s12383_s30 = smov (!%p458_p3, %s7986_s30), 1  ;;  %s8433_s22 = smov 1   ;;  %8419 = vset.pattern.permute.xlu1 %v8438_v5  ;;  %8418 = vset.pattern.permute.xlu0 %v8438_v5  ;;  %v498_v7 = vshrl.u32 %v491_v6, 7  ;;  %v8574_v8 = vand.u32 127, %v491_v6  ;;  %v7996_v15 = vld [vmem:[%s12251_s1 + $0x4] sm:$0x3] }
   0xe   : > { %s8396_s15 = sshll.u32 %s12383_s30, 3  ;;  %s8434_s23 = smov 127   ;;  %vm541_vm3 = vcmask 1042432   ;;  %v8002_v31 = vld [vmem:[%s12252_s2 + $0x10] sm:$0xff]  ;;  %vm534_vm4 = vcmask 23552   ;;  %v510_v35 = vld [vmem:[%s12252_s2 + $0x8] sm:$0xff] }
   0xf   : > { %s462_s18 = scalar_lea.vmem %s12250_s0, %s8396_s15  ;;  %s12267_s24 = smov 113   ;;  %v8576_v9 = vsub.s32 0, %v498_v7  ;;  %v8578_v10 = vsub.s32 1, %v498_v7  ;;  %vm515_vm0 = vcmp.lt.s32.totalorder %v8574_v8, 16  ;;  %vm493_vm1 = vcmp.lt.s32.totalorder %v8574_v8, 17  ;;  %v8003_v40 = vld [vmem:[%s12252_s2 + $0x18] sm:$0xff] }
  0x10   : > { %v8530_v1 = vld [vmem:[%s462_s18] sm:$0x77]  ;;  %s12265_s25 = smov 112   ;;  %s8437_s26 = smov 111   ;;  %vm718_vm2 = vcmp.lt.s32.totalorder %v8574_v8, 15  ;;  %vm834_vm5 = vcmp.lt.s32.totalorder %v8574_v8, 1 }
  0x11   : > { %511 = vrot.lane.b32.xlu0 %v8530_v1, %s8430_s19  ;;  %487 = vrot.lane.b32.xlu1 %v8530_v1, %s8431_s20  ;;  %v8538_v2 = vcombine.high %v8530_v1, %v8530_v1  ;;  %v8592_v16 = vrot.slane %v468_v11, %v8576_v9  ;;  %v8595_v17 = vrot.slane %v468_v11, %v8578_v10  ;;  %v7997_v32 = vld [vmem:[%s12251_s1 + $0x6] sm:$0x3]  ;;  %v7998_v42 = vld [vmem:[%s12251_s1 + $0xa] sm:$0x3]  ;;  %vm1044_vm6 = vcmp.lt.s32.totalorder %v8574_v8, 127  ;;  %s8397_s17 = sshll.u32 %s12383_s30, 6 }
  0x12   : > { %v8598_v18 = vrot.slane %v7995_v12, %v8576_v9  ;;  %v8601_v19 = vrot.slane %v7995_v12, %v8578_v10  ;;  %v8605_v22 = vrot.slane %v7996_v15, %v8578_v10  ;;  %v8639_v38 = vrot.slane %v7997_v32, %v8576_v9  ;;  %v509_v52 = vld [vmem:[%s12252_s2] sm:$0xff]  ;;  %v8018_v53 = vld [vmem:[%s12252_s2 + $0x30] sm:$0xff]  ;;  %v7999_v54 = vld [vmem:[%s12251_s1 + $0xc] sm:$0x3]  ;;  %s12237_s28 = scalar_lea.vmem %s12264_s14, %s8397_s17 }
  0x13   : > { %12325 = vst [vmem:[#allocation2_spill] sm:$0xff] %v8595_v17  ;;  %v8642_v39 = vrot.slane %v7997_v32, %v8578_v10  ;;  %v8650_v41 = vrot.slane %v7996_v15, %v8576_v9  ;;  %v8669_v50 = vrot.slane %v7998_v42, %v8578_v10  ;;  %v8684_v56 = vrot.slane %v7998_v42, %v8576_v9  ;;  %v8012_v62 = vld [vmem:[%s12252_s2 + $0x20] sm:$0xff]  ;;  %v8019_v63 = vld [vmem:[%s12252_s2 + $0x38] sm:$0xff]  ;;  %v8030_v15 = vld [vmem:[%s12252_s2 + $0x50] sm:$0xff] }
  0x14   : > { %12326 = vst [vmem:[#allocation3_spill] sm:$0xff] %v8605_v22  ;;  %12327 = vst [vmem:[#allocation4_spill] sm:$0xff] %v8639_v38  ;;  %vm1160_vm7 = vcmp.lt.s32.totalorder %v8574_v8, 113  ;;  %v8696_v61 = vrot.slane %v7999_v54, %v8578_v10  ;;  %vm1276_vm8 = vcmp.lt.s32.totalorder %v8574_v8, 112  ;;  %vm1392_vm9 = vcmp.lt.s32.totalorder %v8574_v8, 111  ;;  %v8378_v8 = vld [vmem:[%s12262_s12 + $0xe0] sm:$0xff] }
  0x15   : > { %513 = vrot.lane.b32.xlu0 %v8538_v2, %s8430_s19  ;;  %489 = vrot.lane.b32.xlu1 %v8538_v2, %s8431_s20  ;;  %12328 = vst [vmem:[#allocation5_spill] sm:$0xff] %v8642_v39  ;;  %12329 = vst [vmem:[#allocation6_spill] sm:$0xff] %v8650_v41  ;;  %vm1565_vm10 = vcmask 130048   ;;  %vm2775_vm11 = vcmask 261120  }
  0x16   : > { %12330 = vst [vmem:[#allocation7_spill] sm:$0xff] %v8669_v50  ;;  %12331 = vst [vmem:[#allocation8_spill] sm:$0xff] %v8684_v56 }
  0x17   : > { %12332 = vst [vmem:[#allocation9_spill] sm:$0xff] %v8696_v61 }
  0x19   : > { %716 = vrot.lane.b32.xlu1 %v8538_v2, %s8432_s21  ;;  %714 = vrot.lane.b32.xlu0 %v8530_v1, %s8432_s21 }
  0x1d   : > { %832 = vrot.lane.b32.xlu1 %v8538_v2, %s8433_s22  ;;  %830 = vrot.lane.b32.xlu0 %v8530_v1, %s8433_s22 }
  0x21   : > { %1042 = vrot.lane.b32.xlu1 %v8538_v2, %s8434_s23  ;;  %1040 = vrot.lane.b32.xlu0 %v8530_v1, %s8434_s23 }
  0x25   : > { %1158 = vrot.lane.b32.xlu1 %v8538_v2, %s12267_s24  ;;  %1156 = vrot.lane.b32.xlu0 %v8530_v1, %s12267_s24 }
  0x29   : > { %1274 = vrot.lane.b32.xlu1 %v8538_v2, %s12265_s25  ;;  %1272 = vrot.lane.b32.xlu0 %v8530_v1, %s12265_s25 }
  0x2d   : > { %1390 = vrot.lane.b32.xlu1 %v8538_v2, %s8437_s26  ;;  %1388 = vrot.lane.b32.xlu0 %v8530_v1, %s8437_s26 }
  0x31   : > { %1508 = vperm.xlu1 %8419, %v1504_v3   ;;  %1513 = vperm.xlu0 %8418, %v1505_v4   ;;  %v8000_v3 = vld [vmem:[%s12251_s1 + $0xe] sm:$0x3] }
  0x32   : > { %v8721_v12 = vrot.slane %v8000_v3, %v8576_v9 }
  0x34   : > { %12333 = vst [vmem:[#allocation10_spill] sm:$0xff] %v8721_v12 }
  0x83   : > { %v512_v13 = vpop.permute.xlu0 %511  ;;  %v488_v14 = vpop.permute.xlu1 %487 }
  0x87   : > { %v514_v20 = vpop.permute.xlu0 %513  ;;  %v490_v21 = vpop.permute.xlu1 %489 }
  0x88   : > { %v517_v23 = vsel %vm515_vm0, %v514_v20, %v512_v13  ;;  %v494_v24 = vsel %vm493_vm1, %v488_v14, %v490_v21  ;;  %v495_v25 = vsel %vm493_vm1, %v490_v21, %v488_v14  ;;  %v516_v26 = vsel %vm515_vm0, %v512_v13, %v514_v20  ;;  %v8013_v13 = vld [vmem:[%s12252_s2 + $0x28] sm:$0xff]  ;;  %v8001_v20 = vld [vmem:[%s12251_s1 + $0x10] sm:$0x3] }
  0x89   : > { %v507_v27 = vmul.f32 %v8592_v16, %v495_v25  ;;  %v508_v28 = vmul.f32 %v8595_v17, %v494_v24  ;;  %v530_v29 = vmul.f32 %v8601_v19, %v516_v26  ;;  %v529_v30 = vmul.f32 %v8598_v18, %v517_v23 }
  0x8a   : > { %v8733_v14 = vrot.slane %v7999_v54, %v8576_v9 }
  0x8b   : > { %8004 = vmatprep.subr.msk.mxu0 %vm541_vm3, %v530_v29  ;;  %8398 = vmatprep.subr.msk.mxu1 %vm541_vm3, %v508_v28  ;;  %v717_v33 = vpop.permute.xlu1 %716  ;;  %v715_v34 = vpop.permute.xlu0 %714  ;;  %v8024_v29 = vld [vmem:[%s12252_s2 + $0x40] sm:$0xff] }
  0x8c   : > { %8005 = vmatpush1.msk.msra.mxu0 %vm541_vm3, %v529_v30  ;;  %8399 = vmatpush1.msk.msra.mxu1 %vm541_vm3, %v507_v27  ;;  %v719_v36 = vsel %vm718_vm2, %v715_v34, %v717_v33  ;;  %v720_v43 = vsel %vm718_vm2, %v717_v33, %v715_v34  ;;  %12335 = vst [vmem:[#allocation12_spill] sm:$0xff] %v8733_v14 }
  0x8d   : > { %8006 = vmatmul.mubr.msk.f32.vlgmr.msra.gmra.mxu0 %vm534_vm4, %v8002_v31  ;;  %8008 = vmatprep.subr.msk.mxu0 %vm541_vm3, %v508_v28  ;;  %v733_v37 = vmul.f32 %v8605_v22, %v719_v36  ;;  %v732_v51 = vmul.f32 %v8650_v41, %v720_v43  ;;  %v8756_v28 = vrot.slane %v8001_v20, %v8578_v10  ;;  %v8031_v31 = vld [vmem:[%s12252_s2 + $0x58] sm:$0xff] }
  0x8e   : > { %8009 = vmatpush1.msk.msra.mxu0 %vm541_vm3, %v507_v27  ;;  %618 = vmatprep.mubr.f32.mxu0 %v12269_v0  ;;  %v8780_v36 = vrot.slane %v8001_v20, %v8576_v9  ;;  %v8036_v9 = vld [vmem:[%s12252_s2 + $0x60] sm:$0xff]  ;;  %v8043_v43 = vld [vmem:[%s12252_s2 + $0x78] sm:$0xff] }
  0x8f   : > { %8011 = vmatmul.mubr.msk.f32.vlgmr.msra.gmra.mxu1 %vm534_vm4, %v510_v35  ;;  %v833_v44 = vpop.permute.xlu1 %832  ;;  %v831_v45 = vpop.permute.xlu0 %830  ;;  %8014 = vmatprep.subr.msk.mxu0 %vm541_vm3, %v733_v37  ;;  %12336 = vst [vmem:[#allocation13_spill] sm:$0xff] %v8756_v28  ;;  %v8025_v35 = vld [vmem:[%s12252_s2 + $0x48] sm:$0xff]  ;;  %v8042_v37 = vld [vmem:[%s12252_s2 + $0x70] sm:$0xff] }
  0x90   : > { %v835_v46 = vsel %vm834_vm5, %v831_v45, %v833_v44  ;;  %v836_v47 = vsel %vm834_vm5, %v833_v44, %v831_v45  ;;  %929 = vmatprep.mubr.f32.mxu1 %v12269_v0  ;;  %12337 = vst [vmem:[#allocation14_spill] sm:$0xff] %v8780_v36  ;;  %v8037_v44 = vld [vmem:[%s12252_s2 + $0x68] sm:$0xff]  ;;  %v8048_v45 = vld [vmem:[%s12252_s2 + $0x80] sm:$0xff] }
  0x91   : > { %8007 = vmatmul.mubr.msk.f32.gmra.mxu0 %vm534_vm4, %v8003_v40  ;;  %v848_v48 = vmul.f32 %v8639_v38, %v836_v47  ;;  %v849_v49 = vmul.f32 %v8642_v39, %v835_v46  ;;  %v8049_v46 = vld [vmem:[%s12252_s2 + $0x88] sm:$0xff] }
  0x92   : > { %701 = vmatprep.mubr.f32.mxu0 %v12269_v0 }
  0x93   : > { %8020 = vmatprep.subr.msk.mxu1 %vm541_vm3, %v849_v49  ;;  %v1043_v55 = vpop.permute.xlu1 %1042  ;;  %v1041_v57 = vpop.permute.xlu0 %1040 }
  0x94   : > { %8021 = vmatpush1.msk.msra.mxu1 %vm541_vm3, %v848_v48  ;;  %v1045_v58 = vsel %vm1044_vm6, %v1041_v57, %v1043_v55  ;;  %v1046_v59 = vsel %vm1044_vm6, %v1043_v55, %v1041_v57 }
  0x95   : > { %8010 = vmatmul.mubr.msk.f32.vlgmr.msra.gmra.mxu0 %vm534_vm4, %v509_v52  ;;  %8022 = vmatmul.mubr.msk.f32.vlgmr.msra.gmra.mxu1 %vm534_vm4, %v8018_v53  ;;  %v1059_v60 = vmul.f32 %v8669_v50, %v1046_v59  ;;  %v1058_v4 = vmul.f32 %v8684_v56, %v1045_v58 }
  0x96   : > { %8015 = vmatpush1.msk.msra.mxu0 %vm541_vm3, %v732_v51  ;;  %813 = vmatprep.mubr.f32.mxu0 %v12269_v0 }
  0x97   : > { %935 = vmatprep.mubr.f32.mxu1 %v12269_v0  ;;  %8026 = vmatprep.subr.msk.mxu0 %vm541_vm3, %v8538_v2  ;;  %v1159_v5 = vpop.permute.xlu1 %1158  ;;  %v1157_v6 = vpop.permute.xlu0 %1156  ;;  %v8724_v2 = vrot.slane %v8000_v3, %v8578_v10 }
  0x98   : > { %8032 = vmatprep.subr.msk.mxu1 %vm541_vm3, %v1059_v60  ;;  %v1162_v7 = vsel %vm1160_vm7, %v1159_v5, %v1157_v6  ;;  %v1161_v21 = vsel %vm1160_vm7, %v1157_v6, %v1159_v5 }
  0x99   : > { %8016 = vmatmul.mubr.msk.f32.vlgmr.msra.gmra.mxu0 %vm534_vm4, %v8012_v62  ;;  %8023 = vmatmul.mubr.msk.f32.gmra.mxu1 %vm534_vm4, %v8019_v63  ;;  %v1175_v11 = vmul.f32 %v8696_v61, %v1162_v7  ;;  %12334 = vst [vmem:[#allocation11_spill] sm:$0xff] %v8724_v2  ;;  %v1174_v30 = vmul.f32 %v8733_v14, %v1161_v21 }
  0x9a   : > { %819 = vmatprep.mubr.f32.mxu0 %v12269_v0  ;;  %8027 = vmatpush1.msk.msra.mxu0 %vm541_vm3, %v8530_v1 }
  0x9b   : > { %8033 = vmatpush1.msk.msra.mxu1 %vm541_vm3, %v1058_v4  ;;  %1139 = vmatprep.mubr.f32.mxu1 %v12269_v0  ;;  %v1275_v23 = vpop.permute.xlu1 %1274  ;;  %v1273_v1 = vpop.permute.xlu0 %1272 }
  0x9c   : > { %v1277_v24 = vsel %vm1276_vm8, %v1273_v1, %v1275_v23  ;;  %v1278_v25 = vsel %vm1276_vm8, %v1275_v23, %v1273_v1  ;;  %8038 = vmatprep.subr.msk.mxu0 %vm541_vm3, %v1175_v11 }
  0x9d   : > { %8017 = vmatmul.mubr.msk.f32.gmra.mxu0 %vm534_vm4, %v8013_v13  ;;  %8034 = vmatmul.mubr.msk.f32.vlgmr.msra.gmra.mxu1 %vm534_vm4, %v8030_v15  ;;  %v1290_v26 = vmul.f32 %v8721_v12, %v1277_v24  ;;  %v1291_v27 = vmul.f32 %v8724_v2, %v1278_v25 }
  0x9e   : > { %1023 = vmatprep.mubr.f32.mxu0 %v12269_v0  ;;  %1145 = vmatprep.mubr.f32.mxu1 %v12269_v0 }
  0x9f   : > { %8044 = vmatprep.subr.msk.mxu1 %vm541_vm3, %v1291_v27  ;;  %v1391_v32 = vpop.permute.xlu1 %1390  ;;  %v1389_v33 = vpop.permute.xlu0 %1388 }
  0xa0   : > { %8045 = vmatpush1.msk.msra.mxu1 %vm541_vm3, %v1290_v26  ;;  %v1394_v10 = vsel %vm1392_vm9, %v1391_v32, %v1389_v33  ;;  %v1393_v40 = vsel %vm1392_vm9, %v1389_v33, %v1391_v32 }
  0xa1   : > { %8028 = vmatmul.mubr.msk.f32.vlgmr.msra.gmra.mxu0 %vm534_vm4, %v8024_v29  ;;  %8035 = vmatmul.mubr.msk.f32.gmra.mxu1 %vm534_vm4, %v8031_v31  ;;  %v1407_v34 = vmul.f32 %v8756_v28, %v1394_v10  ;;  %v1406_v42 = vmul.f32 %v8780_v36, %v1393_v40 }
  0xa2   : > { %1029 = vmatprep.mubr.f32.mxu0 %v12269_v0  ;;  %8039 = vmatpush1.msk.msra.mxu0 %vm541_vm3, %v1174_v30 }
  0xa3   : > { %1371 = vmatprep.mubr.f32.mxu1 %v12269_v0  ;;  %8050 = vmatprep.subr.msk.mxu0 %vm541_vm3, %v1407_v34 }
  0xa5   : > { %8029 = vmatmul.mubr.msk.f32.gmra.mxu0 %vm534_vm4, %v8025_v35  ;;  %8046 = vmatmul.mubr.msk.f32.vlgmr.msra.gmra.mxu1 %vm534_vm4, %v8042_v37 }
  0xa6   : > { %1255 = vmatprep.mubr.f32.mxu0 %v12269_v0  ;;  %1377 = vmatprep.mubr.f32.mxu1 %v12269_v0 }
  0xa9   : > { %8040 = vmatmul.mubr.msk.f32.vlgmr.msra.gmra.mxu0 %vm534_vm4, %v8036_v9  ;;  %8047 = vmatmul.mubr.msk.f32.gmra.mxu1 %vm534_vm4, %v8043_v43 }
  0xaa   : > { %1261 = vmatprep.mubr.f32.mxu0 %v12269_v0  ;;  %8051 = vmatpush1.msk.msra.mxu0 %vm541_vm3, %v1406_v42 }
  0xab   : > { %1642 = vmatprep.mubr.f32.mxu1 %v12269_v0 }
  0xad   : > { %8041 = vmatmul.mubr.msk.f32.gmra.mxu0 %vm534_vm4, %v8037_v44 }
  0xae   : > { %1487 = vmatprep.mubr.f32.mxu0 %v12269_v0 }
  0xb1   : > { %8052 = vmatmul.mubr.msk.f32.vlgmr.msra.gmra.mxu0 %vm534_vm4, %v8048_v45 }
  0xb2   : > { %1493 = vmatprep.mubr.f32.mxu0 %v12269_v0 }
  0xb5   : > { %8053 = vmatmul.mubr.msk.f32.gmra.mxu0 %vm534_vm4, %v8049_v46 }
  0xb6   : > { %1743 = vmatprep.mubr.f32.mxu0 %v12269_v0 }
 0x14d   : > { %v614_v47 = vpop.f32.mrf.mxu0 }
 0x14f   : > { %v616_v48 = vpop.f32.mrf.mxu0  ;;  %v709_v49 = vpop.f32.mrf.mxu1 }
 0x151   : > { %v620_v51 = vpop.f32.mrf.mxu0  ;;  %v711_v53 = vpop.f32.mrf.mxu1 }
 0x152   : > { %v710_v13 = vadd.f32 %v709_v49, %v620_v51 }
 0x153   : > { %v622_v52 = vpop.f32.mrf.mxu0 }
 0x154   : > { %v712_v23 = vadd.f32 %v711_v53, %v622_v52 }
 0x155   : > { %v703_v54 = vpop.f32.mrf.mxu0  ;;  %v931_v55 = vpop.f32.mrf.mxu1 }
 0x156   : > { %v704_v15 = vadd.f32 %v703_v54, %v614_v47 }
 0x157   : > { %v705_v57 = vpop.f32.mrf.mxu0  ;;  %v933_v58 = vpop.f32.mrf.mxu1 }
 0x158   : > { %v706_v1 = vadd.f32 %v705_v57, %v616_v48 }
 0x159   : > { %v815_v59 = vpop.f32.mrf.mxu0  ;;  %v937_v60 = vpop.f32.mrf.mxu1 }
 0x15a   : > { %v826_v24 = vadd.f32 %v815_v59, %v704_v15 }
 0x15b   : > { %v817_v62 = vpop.f32.mrf.mxu0  ;;  %v939_v63 = vpop.f32.mrf.mxu1 }
 0x15c   : > { %v827_v27 = vadd.f32 %v817_v62, %v706_v1  ;;  %v942_v32 = vadd.f32 %v931_v55, %v826_v24 }
 0x15d   : > { %v821_v3 = vpop.f32.mrf.mxu0  ;;  %v1141_v4 = vpop.f32.mrf.mxu1 }
 0x15e   : > { %v828_v25 = vadd.f32 %v821_v3, %v710_v13  ;;  %v943_v34 = vadd.f32 %v933_v58, %v827_v27 }
 0x15f   : > { %v823_v5 = vpop.f32.mrf.mxu0  ;;  %v1143_v6 = vpop.f32.mrf.mxu1 }
 0x160   : > { %v829_v29 = vadd.f32 %v823_v5, %v712_v23  ;;  %v944_v33 = vadd.f32 %v937_v60, %v828_v25  ;;  %v1514_v5 = vpop.permute.xlu0 %1513 }
 0x161   : > { %v1025_v7 = vpop.f32.mrf.mxu0  ;;  %v1147_v11 = vpop.f32.mrf.mxu1 }
 0x162   : > { %v945_v35 = vadd.f32 %v939_v63, %v829_v29  ;;  %v1036_v37 = vadd.f32 %v1025_v7, %v942_v32  ;;  %v2664_v32 = vld [vmem:[%s12255_s5 + $0x10] sm:$0xff] }
 0x163   : > { %v1027_v20 = vpop.f32.mrf.mxu0  ;;  %v1149_v21 = vpop.f32.mrf.mxu1 }
 0x164   : > { %v1037_v43 = vadd.f32 %v1027_v20, %v943_v34  ;;  %v1152_v46 = vadd.f32 %v1141_v4, %v1036_v37 }
 0x165   : > { %v1031_v26 = vpop.f32.mrf.mxu0  ;;  %v1373_v31 = vpop.f32.mrf.mxu1 }
 0x166   : > { %v1038_v40 = vadd.f32 %v1031_v26, %v944_v33  ;;  %v1153_v51 = vadd.f32 %v1143_v6, %v1037_v43  ;;  %v2663_v33 = vld [vmem:[%s12255_s5 + $0x8] sm:$0xff] }
 0x167   : > { %v1033_v30 = vpop.f32.mrf.mxu0  ;;  %v1375_v42 = vpop.f32.mrf.mxu1 }
 0x168   : > { %v1039_v44 = vadd.f32 %v1033_v30, %v945_v35  ;;  %v1154_v47 = vadd.f32 %v1147_v11, %v1038_v40  ;;  %v1509_v11 = vpop.permute.xlu1 %1508 }
 0x169   : > { %v1257_v10 = vpop.f32.mrf.mxu0  ;;  %v1379_v49 = vpop.f32.mrf.mxu1 }
 0x16a   : > { %v1155_v52 = vadd.f32 %v1149_v21, %v1039_v44  ;;  %v1268_v53 = vadd.f32 %v1257_v10, %v1152_v46  ;;  %v2662_v10 = vld [vmem:[%s12255_s5] sm:$0xff] }
 0x16b   : > { %v1259_v9 = vpop.f32.mrf.mxu0  ;;  %v1381_v58 = vpop.f32.mrf.mxu1 }
 0x16c   : > { %v1269_v57 = vadd.f32 %v1259_v9, %v1153_v51  ;;  %v1384_v62 = vadd.f32 %v1373_v31, %v1268_v53  ;;  %v2665_v31 = vld [vmem:[%s12255_s5 + $0x18] sm:$0xff]  ;;  %v8054_v51 = vld [vmem:[%s12254_s4 + $0x20] sm:$0xff] }
 0x16d   : > { %v1263_v45 = vpop.f32.mrf.mxu0 }
 0x16e   : > { %v1270_v54 = vadd.f32 %v1263_v45, %v1154_v47  ;;  %v1385_v7 = vadd.f32 %v1375_v42, %v1269_v57 }
 0x16f   : > { %v1265_v48 = vpop.f32.mrf.mxu0 }
 0x170   : > { %v1271_v59 = vadd.f32 %v1265_v48, %v1155_v52  ;;  %v1386_v63 = vadd.f32 %v1379_v49, %v1270_v54  ;;  %v8055_v54 = vld [vmem:[%s12254_s4 + $0x28] sm:$0xff] }
 0x171   : > { %v1489_v55 = vpop.f32.mrf.mxu0 }
 0x172   : > { %v1387_v13 = vadd.f32 %v1381_v58, %v1271_v59  ;;  %v1500_v15 = vadd.f32 %v1489_v55, %v1384_v62 }
 0x173   : > { %v1491_v60 = vpop.f32.mrf.mxu0 }
 0x174   : > { %v1501_v23 = vadd.f32 %v1491_v60, %v1385_v7  ;;  %v1516_v1 = vadd.f32 %v1509_v11, %v1500_v15 }
 0x175   : > { %v1495_v3 = vpop.f32.mrf.mxu0 }
 0x176   : > { %v1502_v4 = vadd.f32 %v1495_v3, %v1386_v63  ;;  %v1517_v26 = vadd.f32 %v1509_v11, %v1501_v23  ;;  %v8826_v29 = vmax.f32 %v1516_v1, 0.0  ;;  %v8057_v1 = vld [vmem:[%s12254_s4 + $0x38] sm:$0xff] }
 0x177   : > { %v1497_v20 = vpop.f32.mrf.mxu0 }
 0x178   : > { %v1503_v6 = vadd.f32 %v1497_v20, %v1387_v13  ;;  %v1518_v21 = vadd.f32 %v1514_v5, %v1502_v4  ;;  %v8830_v30 = vmax.f32 %v1517_v26, 0.0  ;;  %v1540_v20 = vld [vmem:[%s12254_s4] sm:$0xff] }
 0x17a   : > { %v1519_v24 = vadd.f32 %v1514_v5, %v1503_v6  ;;  %v8820_v25 = vmax.f32 %v1518_v21, 0.0  ;;  %v8056_v5 = vld [vmem:[%s12254_s4 + $0x30] sm:$0xff] }
 0x17c   : > { %v8822_v27 = vmax.f32 %v1519_v24, 0.0  ;;  %1546 = vrot.lane.b32.xlu1 %v8820_v25, %s8430_s19 }
 0x17e   : > { %1550 = vrot.lane.b32.xlu0 %v8822_v27, %s8430_s19 }
 0x180   : > { %1544 = vrot.lane.b32.xlu1 %v8826_v29, %s8430_s19 }
 0x182   : > { %1548 = vrot.lane.b32.xlu0 %v8830_v30, %s8430_s19 }
 0x184   : > { %1526 = vrot.lane.b32.xlu1 %v8820_v25, %s8431_s20 }
 0x186   : > { %1528 = vrot.lane.b32.xlu0 %v8830_v30, %s8431_s20 }
 0x188   : > { %1524 = vrot.lane.b32.xlu1 %v8826_v29, %s8431_s20 }
 0x18a   : > { %1530 = vrot.lane.b32.xlu0 %v8822_v27, %s8431_s20 }
 0x18c   : > { %1770 = vrot.lane.b32.xlu1 %v8820_v25, %s8432_s21 }
 0x18e   : > { %1774 = vrot.lane.b32.xlu0 %v8822_v27, %s8432_s21 }
 0x190   : > { %1768 = vrot.lane.b32.xlu1 %v8826_v29, %s8432_s21 }
 0x192   : > { %1772 = vrot.lane.b32.xlu0 %v8830_v30, %s8432_s21 }
 0x194   : > { %1900 = vrot.lane.b32.xlu1 %v8820_v25, %s8433_s22 }
 0x196   : > { %1904 = vrot.lane.b32.xlu0 %v8822_v27, %s8433_s22 }
 0x198   : > { %1898 = vrot.lane.b32.xlu1 %v8826_v29, %s8433_s22 }
 0x19a   : > { %1902 = vrot.lane.b32.xlu0 %v8830_v30, %s8433_s22 }
 0x19c   : > { %2144 = vrot.lane.b32.xlu1 %v8820_v25, %s8434_s23 }
 0x19e   : > { %2146 = vrot.lane.b32.xlu0 %v8830_v30, %s8434_s23 }
 0x1a0   : > { %2142 = vrot.lane.b32.xlu1 %v8826_v29, %s8434_s23 }
 0x1a2   : > { %2148 = vrot.lane.b32.xlu0 %v8822_v27, %s8434_s23 }
 0x1a4   : > { %2274 = vrot.lane.b32.xlu1 %v8820_v25, %s12267_s24 }
 0x1a6   : > { %2278 = vrot.lane.b32.xlu0 %v8822_v27, %s12267_s24 }
 0x1a8   : > { %2272 = vrot.lane.b32.xlu1 %v8826_v29, %s12267_s24 }
 0x1aa   : > { %2276 = vrot.lane.b32.xlu0 %v8830_v30, %s12267_s24  ;;  %s12338_s24 = smov 113  }
 0x1ac   : > { %2404 = vrot.lane.b32.xlu1 %v8820_v25, %s12265_s25 }
 0x1ae   : > { %2406 = vrot.lane.b32.xlu0 %v8830_v30, %s12265_s25 }
 0x1b0   : > { %2402 = vrot.lane.b32.xlu1 %v8826_v29, %s12265_s25 }
 0x1b2   : > { %2408 = vrot.lane.b32.xlu0 %v8822_v27, %s12265_s25  ;;  %s12339_s25 = smov 112  }
 0x1b4   : > { %2534 = vrot.lane.b32.xlu1 %v8820_v25, %s8437_s26 }
 0x1b6   : > { %2538 = vrot.lane.b32.xlu0 %v8822_v27, %s8437_s26 }
 0x1b8   : > { %2532 = vrot.lane.b32.xlu1 %v8826_v29, %s8437_s26 }
 0x1ba   : > { %2536 = vrot.lane.b32.xlu0 %v8830_v30, %s8437_s26 }
 0x1bc   : > { %2683 = vperm.xlu1 %8419, %v2665_v31  }
 0x1be   : > { %2678 = vperm.xlu0 %8418, %v2664_v32   ;;  %v1541_v32 = vld [vmem:[%s12254_s4 + $0x8] sm:$0xff] }
 0x1c0   : > { %2673 = vperm.xlu1 %8419, %v2663_v33  }
 0x1c2   : > { %2668 = vperm.xlu0 %8418, %v2662_v10  }
 0x1ee   : > { %v1547_v34 = vpop.permute.xlu1 %1546 }
 0x1f0   : > { %v1551_v35 = vpop.permute.xlu0 %1550 }
 0x1f1   : > { %v1553_v37 = vsel %vm515_vm0, %v1547_v34, %v1551_v35  ;;  %v1555_v40 = vsel %vm515_vm0, %v1551_v35, %v1547_v34  ;;  %v8066_v35 = vld [vmem:[%s12254_s4 + $0x40] sm:$0xff] }
 0x1f2   : > { %v1558_v9 = vmul.f32 %v1555_v40, %v8598_v18  ;;  %v1545_v42 = vpop.permute.xlu1 %1544  ;;  %v1559_v43 = vmul.f32 %v1553_v37, %v8601_v19 }
 0x1f4   : > { %v1549_v44 = vpop.permute.xlu0 %1548  ;;  %1606 = vmatprep.subr.mxu1 %v1559_v43 }
 0x1f5   : > { %v1552_v45 = vsel %vm515_vm0, %v1545_v42, %v1549_v44  ;;  %v1554_v46 = vsel %vm515_vm0, %v1549_v44, %v1545_v42  ;;  %1607 = vmatpush1.msra.mxu1 %v1558_v9  ;;  %v1542_v42 = vld [vmem:[%s12254_s4 + $0x10] sm:$0xff] }
 0x1f6   : > { %v1556_v47 = vmul.f32 %v1554_v46, %v8598_v18  ;;  %v1527_v48 = vpop.permute.xlu1 %1526  ;;  %v1557_v49 = vmul.f32 %v1552_v45, %v8601_v19 }
 0x1f8   : > { %v1529_v52 = vpop.permute.xlu0 %1528  ;;  %1608 = vmatprep.subr.mxu1 %v1557_v49 }
 0x1f9   : > { %1609 = vmatpush1.msra.mxu1 %v1556_v47  ;;  %v8067_v47 = vld [vmem:[%s12254_s4 + $0x48] sm:$0xff] }
 0x1fa   : > { %8058 = vmatmul.mubr.msk.f32.vlgmr.msra.gmra.mxu1 %vm1565_vm10, %v8054_v51  ;;  %v1525_v53 = vpop.permute.xlu1 %1524 }
 0x1fb   : > { %1648 = vmatprep.mubr.f32.mxu1 %v12269_v0  ;;  %v1532_v57 = vsel %vm493_vm1, %v1525_v53, %v1529_v52  ;;  %v1534_v60 = vsel %vm493_vm1, %v1529_v52, %v1525_v53 }
 0x1fc   : > { %v1531_v55 = vpop.permute.xlu0 %1530  ;;  %v1537_v13 = vmul.f32 %v1532_v57, %v8595_v17  ;;  %v1536_v15 = vmul.f32 %v1534_v60, %v8592_v16  ;;  %v8069_v57 = vld [vmem:[%s12254_s4 + $0x58] sm:$0xff] }
 0x1fd   : > { %v1533_v59 = vsel %vm493_vm1, %v1527_v48, %v1531_v55  ;;  %v1535_v58 = vsel %vm493_vm1, %v1531_v55, %v1527_v48 }
 0x1fe   : > { %v1538_v62 = vmul.f32 %v1535_v58, %v8592_v16  ;;  %8059 = vmatmul.mubr.msk.f32.gmra.mxu1 %vm1565_vm10, %v8055_v54  ;;  %v1771_v63 = vpop.permute.xlu1 %1770  ;;  %v1539_v3 = vmul.f32 %v1533_v59, %v8595_v17 }
 0x1ff   : > { %1654 = vmatprep.mubr.f32.mxu1 %v12269_v0 }
 0x200   : > { %v1775_v7 = vpop.permute.xlu0 %1774  ;;  %1707 = vmatprep.subr.mxu0 %v1539_v3 }
 0x201   : > { %v1777_v4 = vsel %vm718_vm2, %v1771_v63, %v1775_v7  ;;  %v1779_v11 = vsel %vm718_vm2, %v1775_v7, %v1771_v63  ;;  %1708 = vmatpush1.msra.mxu0 %v1538_v62  ;;  %v8075_v62 = vld [vmem:[%s12254_s4 + $0x68] sm:$0xff] }
 0x202   : > { %v1782_v23 = vmul.f32 %v1779_v11, %v8650_v41  ;;  %8060 = vmatmul.mubr.msk.f32.gmra.mxu1 %vm1565_vm10, %v8056_v5  ;;  %1709 = vmatprep.subr.mxu0 %v1537_v13  ;;  %v1769_v6 = vpop.permute.xlu1 %1768  ;;  %v1783_v21 = vmul.f32 %v1777_v4, %v8605_v22 }
 0x203   : > { %1710 = vmatpush1.msra.mxu0 %v1536_v15  ;;  %1660 = vmatprep.mubr.f32.mxu1 %v12269_v0  ;;  %v8082_v15 = vld [vmem:[%s12254_s4 + $0x80] sm:$0xff] }
 0x204   : > { %v1773_v24 = vpop.permute.xlu0 %1772  ;;  %8062 = vmatmul.mubr.msk.f32.vlgmr.msra.gmra.mxu0 %vm1565_vm10, %v1540_v20  ;;  %1829 = vmatprep.subr.mxu1 %v1783_v21 }
 0x205   : > { %v1776_v26 = vsel %vm718_vm2, %v1769_v6, %v1773_v24  ;;  %v1778_v31 = vsel %vm718_vm2, %v1773_v24, %v1769_v6  ;;  %1830 = vmatpush1.msra.mxu1 %v1782_v23  ;;  %1749 = vmatprep.mubr.f32.mxu0 %v12269_v0  ;;  %v8076_v6 = vld [vmem:[%s12254_s4 + $0x70] sm:$0xff] }
 0x206   : > { %v1780_v33 = vmul.f32 %v1778_v31, %v8650_v41  ;;  %8061 = vmatmul.mubr.msk.f32.gmra.mxu1 %vm1565_vm10, %v8057_v1  ;;  %v1901_v10 = vpop.permute.xlu1 %1900  ;;  %v1781_v34 = vmul.f32 %v1776_v26, %v8605_v22  ;;  %v8083_v31 = vld [vmem:[%s12254_s4 + $0x88] sm:$0xff] }
 0x207   : > { %1865 = vmatprep.mubr.f32.mxu1 %v12269_v0 }
 0x208   : > { %v1905_v37 = vpop.permute.xlu0 %1904  ;;  %8063 = vmatmul.mubr.msk.f32.gmra.mxu0 %vm1565_vm10, %v1541_v32  ;;  %1831 = vmatprep.subr.mxu1 %v1781_v34 }
 0x209   : > { %v1907_v40 = vsel %vm834_vm5, %v1901_v10, %v1905_v37  ;;  %v1909_v9 = vsel %vm834_vm5, %v1905_v37, %v1901_v10  ;;  %1832 = vmatpush1.msra.mxu1 %v1780_v33  ;;  %1755 = vmatprep.mubr.f32.mxu0 %v12269_v0  ;;  %v8077_v10 = vld [vmem:[%s12254_s4 + $0x78] sm:$0xff] }
 0x20a   : > { %v1912_v43 = vmul.f32 %v1909_v9, %v8639_v38  ;;  %8070 = vmatmul.mubr.msk.f32.vlgmr.msra.gmra.mxu1 %vm1565_vm10, %v8066_v35  ;;  %2073 = vmatprep.subr.mxu1 %v8822_v27  ;;  %v1899_v44 = vpop.permute.xlu1 %1898  ;;  %v1913_v45 = vmul.f32 %v1907_v40, %v8642_v39  ;;  %v8084_v9 = vld [vmem:[%s12254_s4 + $0x90] sm:$0xff] }
 0x20b   : > { %2074 = vmatpush1.msra.mxu1 %v8820_v25  ;;  %1871 = vmatprep.mubr.f32.mxu1 %v12269_v0  ;;  %v1543_v25 = vld [vmem:[%s12254_s4 + $0x18] sm:$0xff] }
 0x20c   : > { %v1903_v46 = vpop.permute.xlu0 %1902  ;;  %8064 = vmatmul.mubr.msk.f32.gmra.mxu0 %vm1565_vm10, %v1542_v42  ;;  %1959 = vmatprep.subr.mxu0 %v1913_v45  ;;  %v8090_v42 = vld [vmem:[%s12254_s4 + $0xa0] sm:$0xff]  ;;  %v8085_v45 = vld [vmem:[%s12254_s4 + $0x98] sm:$0xff] }
 0x20d   : > { %v1906_v48 = vsel %vm834_vm5, %v1899_v44, %v1903_v46  ;;  %v1908_v27 = vsel %vm834_vm5, %v1903_v46, %v1899_v44  ;;  %2075 = vmatprep.subr.mxu1 %v8830_v30  ;;  %1960 = vmatpush1.msra.mxu0 %v1912_v43  ;;  %v8068_v30 = vld [vmem:[%s12254_s4 + $0x50] sm:$0xff] }
 0x20e   : > { %v1910_v49 = vmul.f32 %v1908_v27, %v8639_v38  ;;  %2076 = vmatpush1.msra.mxu1 %v8826_v29  ;;  %v2145_v51 = vpop.permute.xlu1 %2144  ;;  %1761 = vmatprep.mubr.f32.mxu0 %v12269_v0  ;;  %v1911_v52 = vmul.f32 %v1906_v48, %v8642_v39  ;;  %v8074_v29 = vld [vmem:[%s12254_s4 + $0x60] sm:$0xff]  ;;  %v8091_v27 = vld [vmem:[%s12254_s4 + $0xa8] sm:$0xff] }
 0x20f   : > { %8071 = vmatmul.mubr.msk.f32.gmra.mxu1 %vm1565_vm10, %v8067_v47 }
 0x210   : > { %v2147_v53 = vpop.permute.xlu0 %2146  ;;  %8065 = vmatmul.mubr.msk.f32.gmra.mxu0 %vm1565_vm10, %v1543_v25  ;;  %1961 = vmatprep.subr.mxu0 %v1911_v52 }
 0x211   : > { %1877 = vmatprep.mubr.f32.mxu1 %v12269_v0  ;;  %1962 = vmatpush1.msra.mxu0 %v1910_v49 }
 0x212   : > { %v2143_v54 = vpop.permute.xlu1 %2142  ;;  %1995 = vmatprep.mubr.f32.mxu0 %v12269_v0 }
 0x213   : > { %8072 = vmatmul.mubr.msk.f32.gmra.mxu1 %vm1565_vm10, %v8068_v30  ;;  %v2152_v59 = vsel %vm1044_vm6, %v2147_v53, %v2143_v54  ;;  %v2150_v63 = vsel %vm1044_vm6, %v2143_v54, %v2147_v53  ;;  %v8098_v30 = vld [vmem:[%s12254_s4 + $0xc0] sm:$0xff] }
 0x214   : > { %v2149_v55 = vpop.permute.xlu0 %2148  ;;  %8078 = vmatmul.mubr.msk.f32.vlgmr.msra.gmra.mxu0 %vm1565_vm10, %v8074_v29  ;;  %1883 = vmatprep.mubr.f32.mxu1 %v12269_v0  ;;  %v2155_v4 = vmul.f32 %v2152_v59, %v8669_v50  ;;  %v2154_v11 = vmul.f32 %v2150_v63, %v8684_v56  ;;  %v8092_v59 = vld [vmem:[%s12254_s4 + $0xb0] sm:$0xff] }
 0x215   : > { %v2151_v58 = vsel %vm1044_vm6, %v2145_v51, %v2149_v55  ;;  %v2153_v60 = vsel %vm1044_vm6, %v2149_v55, %v2145_v51  ;;  %2001 = vmatprep.mubr.f32.mxu0 %v12269_v0 }
 0x216   : > { %v2156_v3 = vmul.f32 %v2151_v58, %v8684_v56  ;;  %v2275_v5 = vpop.permute.xlu1 %2274  ;;  %v2157_v7 = vmul.f32 %v2153_v60, %v8669_v50 }
 0x217   : > { %8073 = vmatmul.mubr.msk.f32.gmra.mxu1 %vm1565_vm10, %v8069_v57 }
 0x218   : > { %v2279_v13 = vpop.permute.xlu0 %2278  ;;  %8079 = vmatmul.mubr.msk.f32.gmra.mxu0 %vm1565_vm10, %v8075_v62  ;;  %2203 = vmatprep.subr.mxu0 %v2157_v7 }
 0x219   : > { %v2281_v20 = vsel %vm1160_vm7, %v2275_v5, %v2279_v13  ;;  %v2283_v23 = vsel %vm1160_vm7, %v2279_v13, %v2275_v5  ;;  %2109 = vmatprep.mubr.f32.mxu1 %v12269_v0  ;;  %2204 = vmatpush1.msra.mxu0 %v2156_v3  ;;  %v8099_v3 = vld [vmem:[%s12254_s4 + $0xc8] sm:$0xff]  ;;  %v8093_v13 = vld [vmem:[%s12254_s4 + $0xb8] sm:$0xff] }
 0x21a   : > { %v2286_v21 = vmul.f32 %v2281_v20, %v8733_v14  ;;  %2205 = vmatprep.subr.mxu0 %v2155_v4  ;;  %v2273_v1 = vpop.permute.xlu1 %2272  ;;  %2007 = vmatprep.mubr.f32.mxu0 %v12269_v0  ;;  %v2287_v24 = vmul.f32 %v2283_v23, %v8696_v61  ;;  %v8106_v20 = vld [vmem:[%s12254_s4 + $0xe0] sm:$0xff]  ;;  %v8101_v23 = vld [vmem:[%s12254_s4 + $0xd8] sm:$0xff] }
 0x21b   : > { %8086 = vmatmul.mubr.msk.f32.vlgmr.msra.gmra.mxu1 %vm1565_vm10, %v8082_v15  ;;  %2206 = vmatpush1.msra.mxu0 %v2154_v11  ;;  %v8100_v11 = vld [vmem:[%s12254_s4 + $0xd0] sm:$0xff] }
 0x21c   : > { %v2277_v26 = vpop.permute.xlu0 %2276  ;;  %8080 = vmatmul.mubr.msk.f32.gmra.mxu0 %vm1565_vm10, %v8076_v6  ;;  %2333 = vmatprep.subr.mxu1 %v2287_v24  ;;  %v8107_v6 = vld [vmem:[%s12254_s4 + $0xe8] sm:$0xff] }
 0x21d   : > { %v2280_v32 = vsel %vm1160_vm7, %v2273_v1, %v2277_v26  ;;  %v2282_v33 = vsel %vm1160_vm7, %v2277_v26, %v2273_v1  ;;  %2115 = vmatprep.mubr.f32.mxu1 %v12269_v0  ;;  %2334 = vmatpush1.msra.mxu1 %v2286_v21  ;;  %v8114_v21 = vld [vmem:[%s12254_s4 + $0x100] sm:$0xff]  ;;  %v8108_v1 = vld [vmem:[%s12254_s4 + $0xf0] sm:$0xff]  ;;  %v8115_v24 = vld [vmem:[%s12254_s4 + $0x108] sm:$0xff] }
 0x21e   : > { %v2284_v34 = vmul.f32 %v2280_v32, %v8733_v14  ;;  %v2405_v35 = vpop.permute.xlu1 %2404  ;;  %2013 = vmatprep.mubr.f32.mxu0 %v12269_v0  ;;  %v2285_v37 = vmul.f32 %v2282_v33, %v8696_v61  ;;  %v8109_v26 = vld [vmem:[%s12254_s4 + $0xf8] sm:$0xff] }
 0x21f   : > { %8087 = vmatmul.mubr.msk.f32.gmra.mxu1 %vm1565_vm10, %v8083_v31  ;;  %v8116_v31 = vld [vmem:[%s12254_s4 + $0x110] sm:$0xff]  ;;  %v8117_v32 = vld [vmem:[%s12254_s4 + $0x118] sm:$0xff] }
 0x220   : > { %v2407_v40 = vpop.permute.xlu0 %2406  ;;  %8081 = vmatmul.mubr.msk.f32.gmra.mxu0 %vm1565_vm10, %v8077_v10  ;;  %2335 = vmatprep.subr.mxu1 %v2285_v37 }
 0x221   : > { %2121 = vmatprep.mubr.f32.mxu1 %v12269_v0  ;;  %2336 = vmatpush1.msra.mxu1 %v2284_v34 }
 0x222   : > { %v2403_v43 = vpop.permute.xlu1 %2402  ;;  %2239 = vmatprep.mubr.f32.mxu0 %v12269_v0 }
 0x223   : > { %8088 = vmatmul.mubr.msk.f32.gmra.mxu1 %vm1565_vm10, %v8084_v9  ;;  %v2412_v46 = vsel %vm1276_vm8, %v2407_v40, %v2403_v43  ;;  %v2410_v25 = vsel %vm1276_vm8, %v2403_v43, %v2407_v40 }
 0x224   : > { %v2409_v44 = vpop.permute.xlu0 %2408  ;;  %8094 = vmatmul.mubr.msk.f32.vlgmr.msra.gmra.mxu0 %vm1565_vm10, %v8090_v42  ;;  %2127 = vmatprep.mubr.f32.mxu1 %v12269_v0  ;;  %v2415_v29 = vmul.f32 %v2412_v46, %v8724_v2  ;;  %v2414_v54 = vmul.f32 %v2410_v25, %v8721_v12 }
 0x225   : > { %v2411_v47 = vsel %vm1276_vm8, %v2405_v35, %v2409_v44  ;;  %v2413_v48 = vsel %vm1276_vm8, %v2409_v44, %v2405_v35  ;;  %2245 = vmatprep.mubr.f32.mxu0 %v12269_v0 }
 0x226   : > { %v2416_v49 = vmul.f32 %v2411_v47, %v8721_v12  ;;  %v2535_v51 = vpop.permute.xlu1 %2534  ;;  %v2417_v52 = vmul.f32 %v2413_v48, %v8724_v2 }
 0x227   : > { %8089 = vmatmul.mubr.msk.f32.gmra.mxu1 %vm1565_vm10, %v8085_v45 }
 0x228   : > { %v2539_v53 = vpop.permute.xlu0 %2538  ;;  %8095 = vmatmul.mubr.msk.f32.gmra.mxu0 %vm1565_vm10, %v8091_v27  ;;  %2463 = vmatprep.subr.mxu0 %v2417_v52 }
 0x229   : > { %v2541_v55 = vsel %vm1392_vm9, %v2535_v51, %v2539_v53  ;;  %v2543_v57 = vsel %vm1392_vm9, %v2539_v53, %v2535_v51  ;;  %2369 = vmatprep.mubr.f32.mxu1 %v12269_v0  ;;  %2464 = vmatpush1.msra.mxu0 %v2416_v49 }
 0x22a   : > { %v2546_v58 = vmul.f32 %v2541_v55, %v8780_v36  ;;  %2465 = vmatprep.subr.mxu0 %v2415_v29  ;;  %2251 = vmatprep.mubr.f32.mxu0 %v12269_v0  ;;  %v2547_v60 = vmul.f32 %v2543_v57, %v8756_v28  ;;  %v2533_v62 = vpop.permute.xlu1 %2532 }
 0x22b   : > { %8102 = vmatmul.mubr.msk.f32.vlgmr.msra.gmra.mxu1 %vm1565_vm10, %v8098_v30  ;;  %2466 = vmatpush1.msra.mxu0 %v2414_v54 }
 0x22c   : > { %v2537_v63 = vpop.permute.xlu0 %2536  ;;  %8096 = vmatmul.mubr.msk.f32.gmra.mxu0 %vm1565_vm10, %v8092_v59  ;;  %2593 = vmatprep.subr.mxu1 %v2547_v60 }
 0x22d   : > { %v2540_v5 = vsel %vm1392_vm9, %v2533_v62, %v2537_v63  ;;  %v2542_v7 = vsel %vm1392_vm9, %v2537_v63, %v2533_v62  ;;  %2375 = vmatprep.mubr.f32.mxu1 %v12269_v0  ;;  %2594 = vmatpush1.msra.mxu1 %v2546_v58 }
 0x22e   : > { %v2544_v15 = vmul.f32 %v2540_v5, %v8780_v36  ;;  %2257 = vmatprep.mubr.f32.mxu0 %v12269_v0  ;;  %v2545_v4 = vmul.f32 %v2542_v7, %v8756_v28 }
 0x22f   : > { %8103 = vmatmul.mubr.msk.f32.gmra.mxu1 %vm1565_vm10, %v8099_v3 }
 0x230   : > { %8097 = vmatmul.mubr.msk.f32.gmra.mxu0 %vm1565_vm10, %v8093_v13  ;;  %2595 = vmatprep.subr.mxu1 %v2545_v4 }
 0x231   : > { %2381 = vmatprep.mubr.f32.mxu1 %v12269_v0  ;;  %2596 = vmatpush1.msra.mxu1 %v2544_v15 }
 0x232   : > { %2499 = vmatprep.mubr.f32.mxu0 %v12269_v0 }
 0x233   : > { %8104 = vmatmul.mubr.msk.f32.gmra.mxu1 %vm1565_vm10, %v8100_v11 }
 0x234   : > { %8110 = vmatmul.mubr.msk.f32.vlgmr.msra.gmra.mxu0 %vm1565_vm10, %v8106_v20  ;;  %2387 = vmatprep.mubr.f32.mxu1 %v12269_v0 }
 0x235   : > { %2505 = vmatprep.mubr.f32.mxu0 %v12269_v0 }
 0x237   : > { %8105 = vmatmul.mubr.msk.f32.gmra.mxu1 %vm1565_vm10, %v8101_v23 }
 0x238   : > { %8111 = vmatmul.mubr.msk.f32.gmra.mxu0 %vm1565_vm10, %v8107_v6  ;;  %2629 = vmatprep.mubr.f32.mxu1 %v12269_v0 }
 0x239   : > { %2511 = vmatprep.mubr.f32.mxu0 %v12269_v0  ;;  %v9240_v41 = vpop.permute.xlu0 %2678 }
 0x23b   : > { %8118 = vmatmul.mubr.msk.f32.vlgmr.msra.gmra.mxu1 %vm1565_vm10, %v8114_v21 }
 0x23c   : > { %8112 = vmatmul.mubr.msk.f32.gmra.mxu0 %vm1565_vm10, %v8108_v1  ;;  %2635 = vmatprep.mubr.f32.mxu1 %v12269_v0 }
 0x23d   : > { %2517 = vmatprep.mubr.f32.mxu0 %v12269_v0 }
 0x23f   : > { %8119 = vmatmul.mubr.msk.f32.gmra.mxu1 %vm1565_vm10, %v8115_v24 }
 0x240   : > { %8113 = vmatmul.mubr.msk.f32.gmra.mxu0 %vm1565_vm10, %v8109_v26  ;;  %2641 = vmatprep.mubr.f32.mxu1 %v12269_v0 }
 0x241   : > { %2852 = vmatprep.mubr.f32.mxu0 %v12269_v0 }
 0x243   : > { %8120 = vmatmul.mubr.msk.f32.gmra.mxu1 %vm1565_vm10, %v8116_v31 }
 0x244   : > { %2647 = vmatprep.mubr.f32.mxu1 %v12269_v0 }
 0x247   : > { %8121 = vmatmul.mubr.msk.f32.gmra.mxu1 %vm1565_vm10, %v8117_v32 }
 0x248   : > { %2953 = vmatprep.mubr.f32.mxu1 %v12269_v0 }
 0x2ba   : > { %v1644_v33 = vpop.f32.mrf.mxu1 }
 0x2bc   : > { %v1646_v10 = vpop.f32.mrf.mxu1 }
 0x2be   : > { %v9184_v34 = vpop.f32.mrf.mxu1 }
 0x2c0   : > { %v9186_v35 = vpop.f32.mrf.mxu1 }
 0x2c2   : > { %v9188_v37 = vpop.f32.mrf.mxu1 }
 0x2c4   : > { %v9190_v40 = vpop.f32.mrf.mxu1  ;;  %v1745_v9 = vpop.f32.mrf.mxu0 }
 0x2c6   : > { %v1662_v42 = vpop.f32.mrf.mxu1  ;;  %v1747_v43 = vpop.f32.mrf.mxu0 }
 0x2c7   : > { %v1748_v28 = vadd.f32 %v1747_v43, %v1646_v10 }
 0x2c8   : > { %v9192_v44 = vpop.f32.mrf.mxu1  ;;  %v9194_v45 = vpop.f32.mrf.mxu0 }
 0x2ca   : > { %v9196_v46 = vpop.f32.mrf.mxu0  ;;  %v1867_v47 = vpop.f32.mrf.mxu1 }
 0x2cc   : > { %v9198_v48 = vpop.f32.mrf.mxu0  ;;  %v1869_v27 = vpop.f32.mrf.mxu1 }
 0x2cd   : > { %v1891_v14 = vadd.f32 %v1869_v27, %v1748_v28 }
 0x2ce   : > { %v9200_v25 = vpop.f32.mrf.mxu0 }
 0x2cf   : > { %v9202_v49 = vpop.f32.mrf.mxu1 }
 0x2d0   : > { %v1763_v51 = vpop.f32.mrf.mxu0 }
 0x2d1   : > { %v1764_v52 = vadd.f32 %v1763_v51, %v1662_v42  ;;  %v9204_v53 = vpop.f32.mrf.mxu1 }
 0x2d2   : > { %v9206_v30 = vpop.f32.mrf.mxu0 }
 0x2d3   : > { %v9208_v29 = vpop.f32.mrf.mxu1 }
 0x2d4   : > { %v1997_v54 = vpop.f32.mrf.mxu0 }
 0x2d5   : > { %v9210_v55 = vpop.f32.mrf.mxu1 }
 0x2d6   : > { %v1999_v57 = vpop.f32.mrf.mxu0 }
 0x2d7   : > { %v1885_v59 = vpop.f32.mrf.mxu1  ;;  %v2021_v56 = vadd.f32 %v1999_v57, %v1891_v14  ;;  %v1754_v57 = vadd.f32 %v9196_v46, %v9186_v35 }
 0x2d8   : > { %v1896_v58 = vadd.f32 %v1885_v59, %v1764_v52  ;;  %v2003_v60 = vpop.f32.mrf.mxu0 }
 0x2d9   : > { %v9212_v62 = vpop.f32.mrf.mxu1 }
 0x2da   : > { %v2005_v63 = vpop.f32.mrf.mxu0 }
 0x2db   : > { %v2111_v3 = vpop.f32.mrf.mxu1 }
 0x2dc   : > { %v9214_v5 = vpop.f32.mrf.mxu0 }
 0x2dd   : > { %v2113_v7 = vpop.f32.mrf.mxu1 }
 0x2de   : > { %v9216_v13 = vpop.f32.mrf.mxu0 }
 0x2df   : > { %v2117_v15 = vpop.f32.mrf.mxu1 }
 0x2e0   : > { %v2015_v4 = vpop.f32.mrf.mxu0 }
 0x2e1   : > { %v2026_v11 = vadd.f32 %v2015_v4, %v1896_v58  ;;  %v2119_v20 = vpop.f32.mrf.mxu1  ;;  %v1746_v4 = vadd.f32 %v1745_v9, %v1644_v33  ;;  %v2135_v33 = vadd.f32 %v2113_v7, %v2021_v56  ;;  %v2669_v7 = vpop.permute.xlu0 %2668 }
 0x2e2   : > { %v9218_v23 = vpop.f32.mrf.mxu0 }
 0x2e3   : > { %v9220_v6 = vpop.f32.mrf.mxu1  ;;  %v1890_v2 = vadd.f32 %v1867_v47, %v1746_v4 }
 0x2e4   : > { %v2241_v21 = vpop.f32.mrf.mxu0 }
 0x2e5   : > { %v9222_v1 = vpop.f32.mrf.mxu1 }
 0x2e6   : > { %v2243_v24 = vpop.f32.mrf.mxu0 }
 0x2e7   : > { %v2129_v26 = vpop.f32.mrf.mxu1  ;;  %v2265_v43 = vadd.f32 %v2243_v24, %v2135_v33  ;;  %v1893_v24 = vadd.f32 %v9204_v53, %v1754_v57  ;;  %v9260_v53 = vpop.permute.xlu1 %2683 }
 0x2e8   : > { %v9224_v31 = vadd.f32 %v2129_v26, %v2026_v11  ;;  %v2247_v32 = vpop.f32.mrf.mxu0  ;;  %v2020_v11 = vadd.f32 %v1997_v54, %v1890_v2  ;;  %v1752_v2 = vadd.f32 %v9194_v45, %v9184_v34 }
 0x2e9   : > { %v9226_v42 = vpop.f32.mrf.mxu1 }
 0x2ea   : > { %v2249_v51 = vpop.f32.mrf.mxu0  ;;  %v2134_v38 = vadd.f32 %v2111_v3, %v2020_v11 }
 0x2eb   : > { %v2371_v52 = vpop.f32.mrf.mxu1 }
 0x2ec   : > { %v9228_v59 = vpop.f32.mrf.mxu0  ;;  %v2264_v9 = vadd.f32 %v2241_v21, %v2134_v38  ;;  %v1892_v38 = vadd.f32 %v9202_v49, %v1752_v2 }
 0x2ed   : > { %v2373_v58 = vpop.f32.mrf.mxu1 }
 0x2ee   : > { %v9230_v0 = vpop.f32.mrf.mxu0  ;;  %v2394_v47 = vadd.f32 %v2371_v52, %v2264_v9  ;;  %v2395_v27 = vadd.f32 %v2373_v58, %v2265_v43  ;;  %v2022_v52 = vadd.f32 %v2003_v60, %v1892_v38  ;;  %v2023_v9 = vadd.f32 %v2005_v63, %v1893_v24 }
 0x2ef   : > { %v2377_v36 = vpop.f32.mrf.mxu1 }
 0x2f0   : > { %v9232_v12 = vpop.f32.mrf.mxu0  ;;  %v2136_v17 = vadd.f32 %v2117_v15, %v2022_v52  ;;  %v2137_v58 = vadd.f32 %v2119_v20, %v2023_v9 }
 0x2f1   : > { %v2379_v61 = vpop.f32.mrf.mxu1 }
 0x2f2   : > { %v9234_v26 = vpop.f32.mrf.mxu0  ;;  %v2266_v43 = vadd.f32 %v2247_v32, %v2136_v17  ;;  %v2267_v49 = vadd.f32 %v2249_v51, %v2137_v58 }
 0x2f3   : > { %v9236_v50 = vpop.f32.mrf.mxu1 }
 0x2f4   : > { %v2501_v22 = vpop.f32.mrf.mxu0  ;;  %v2397_v63 = vadd.f32 %v2379_v61, %v2267_v49  ;;  %v1760_v61 = vadd.f32 %v9200_v25, %v9190_v40 }
 0x2f5   : > { %v9238_v39 = vpop.f32.mrf.mxu1  ;;  %v2524_v14 = vadd.f32 %v2501_v22, %v2394_v47  ;;  %v2396_v47 = vadd.f32 %v2377_v36, %v2266_v43  ;;  %v1758_v36 = vadd.f32 %v9198_v48, %v9188_v37 }
 0x2f6   : > { %v2503_v4 = vpop.f32.mrf.mxu0 }
 0x2f7   : > { %v9242_v10 = vpop.f32.mrf.mxu1  ;;  %v2525_v56 = vadd.f32 %v2503_v4, %v2395_v27  ;;  %v2674_v4 = vpop.permute.xlu1 %2673  ;;  %v1894_v2 = vadd.f32 %v9208_v29, %v1758_v36  ;;  %v3970_v36 = vld [vmem:[%s12257_s7 + $0x10] sm:$0xff] }
 0x2f8   : > { %v2507_v45 = vpop.f32.mrf.mxu0 }
 0x2f9   : > { %v9244_v28 = vpop.f32.mrf.mxu1  ;;  %v2526_v15 = vadd.f32 %v2507_v45, %v2396_v47 }
 0x2fa   : > { %v2509_v60 = vpop.f32.mrf.mxu0 }
 0x2fb   : > { %v2631_v54 = vpop.f32.mrf.mxu1  ;;  %v2527_v20 = vadd.f32 %v2509_v60, %v2397_v63 }
 0x2fc   : > { %v2654_v3 = vadd.f32 %v2631_v54, %v2524_v14  ;;  %v1895_v14 = vadd.f32 %v9210_v55, %v1760_v61  ;;  %v2024_v54 = vadd.f32 %v9214_v5, %v1894_v2  ;;  %v2513_v40 = vpop.f32.mrf.mxu0  ;;  %v3968_v2 = vld [vmem:[%s12257_s7] sm:$0xff] }
 0x2fd   : > { %v2633_v21 = vpop.f32.mrf.mxu1 }
 0x2fe   : > { %v2686_v11 = vadd.f32 %v2669_v7, %v2654_v3  ;;  %v2655_v33 = vadd.f32 %v2633_v21, %v2525_v56  ;;  %v2025_v37 = vadd.f32 %v9216_v13, %v1895_v14  ;;  %v2138_v48 = vadd.f32 %v9220_v6, %v2024_v54  ;;  %v2515_v56 = vpop.f32.mrf.mxu0 }
 0x2ff   : > { %v2637_v46 = vpop.f32.mrf.mxu1 }
 0x300   : > { %v9252_v34 = vmax.f32 %v2686_v11, 0.0  ;;  %v2687_v22 = vadd.f32 %v2669_v7, %v2655_v33  ;;  %v2656_v32 = vadd.f32 %v2637_v46, %v2526_v15  ;;  %v2139_v25 = vadd.f32 %v9222_v1, %v2025_v37  ;;  %v2519_v9 = vpop.f32.mrf.mxu0 }
 0x301   : > { %v2639_v17 = vpop.f32.mrf.mxu1  ;;  %v2268_v29 = vadd.f32 %v9228_v59, %v2138_v48 }
 0x302   : > { %v9254_v35 = vmax.f32 %v2687_v22, 0.0  ;;  %2738 = vrot.lane.b32.xlu1 %v9252_v34, %s8430_s19  ;;  %v2657_v51 = vadd.f32 %v2639_v17, %v2527_v20  ;;  %v2688_v27 = vadd.f32 %v2674_v4, %v2656_v32  ;;  %v2269_v13 = vadd.f32 %v9230_v0, %v2139_v25  ;;  %v3971_v20 = vld [vmem:[%s12257_s7 + $0x18] sm:$0xff] }
 0x303   : > { %v2643_v5 = vpop.f32.mrf.mxu1  ;;  %v2398_v6 = vadd.f32 %v9236_v50, %v2268_v29  ;;  %v1766_v50 = vadd.f32 %v9206_v30, %v9192_v44  ;;  %v2270_v30 = vadd.f32 %v9232_v12, %v9224_v31 }
 0x304   : > { %2746 = vrot.lane.b32.xlu0 %v9254_v35, %s8430_s19  ;;  %v2689_v57 = vadd.f32 %v2674_v4, %v2657_v51  ;;  %v9281_v38 = vmax.f32 %v2688_v27, 0.0  ;;  %v2399_v3 = vadd.f32 %v9238_v39, %v2269_v13  ;;  %v3969_v4 = vld [vmem:[%s12257_s7 + $0x8] sm:$0xff] }
 0x305   : > { %v2528_v7 = vadd.f32 %v2513_v40, %v2398_v6  ;;  %v2645_v1 = vpop.f32.mrf.mxu1  ;;  %v1897_v11 = vadd.f32 %v9212_v62, %v1766_v50  ;;  %v2400_v45 = vadd.f32 %v9242_v10, %v2270_v30 }
 0x306   : > { %2702 = vrot.lane.b32.xlu1 %v9252_v34, %s8431_s20  ;;  %v9287_v55 = vmax.f32 %v2689_v57, 0.0  ;;  %v2529_v59 = vadd.f32 %v2515_v56, %v2399_v3 }
 0x307   : > { %v2658_v21 = vadd.f32 %v2643_v5, %v2528_v7  ;;  %v2649_v62 = vpop.f32.mrf.mxu1  ;;  %v2530_v43 = vadd.f32 %v2519_v9, %v2400_v45 }
 0x308   : > { %2710 = vrot.lane.b32.xlu0 %v9254_v35, %s8431_s20  ;;  %v2659_v24 = vadd.f32 %v2645_v1, %v2529_v59 }
 0x309   : > { %v2690_v0 = vadd.f32 %v9240_v41, %v2658_v21  ;;  %v2660_v31 = vadd.f32 %v2649_v62, %v2530_v43 }
 0x30a   : > { %2978 = vrot.lane.b32.xlu1 %v9252_v34, %s8432_s21  ;;  %v2691_v39 = vadd.f32 %v9240_v41, %v2659_v24  ;;  %v2027_v41 = vadd.f32 %v9218_v23, %v1897_v11  ;;  %v2521_v23 = vpop.f32.mrf.mxu0 }
 0x30b   : > { %v9310_v52 = vmax.f32 %v2690_v0, 0.0 }
 0x30c   : > { %2986 = vrot.lane.b32.xlu0 %v9254_v35, %s8432_s21  ;;  %v9315_v33 = vmax.f32 %v2691_v39, 0.0  ;;  %v2141_v44 = vadd.f32 %v9226_v42, %v2027_v41  ;;  %v2651_v42 = vpop.f32.mrf.mxu1 }
 0x30e   : > { %3124 = vrot.lane.b32.xlu1 %v9252_v34, %s8433_s22  ;;  %v2271_v22 = vadd.f32 %v9234_v26, %v2141_v44  ;;  %v2692_v26 = vadd.f32 %v9260_v53, %v2660_v31 }
 0x310   : > { %3132 = vrot.lane.b32.xlu0 %v9254_v35, %s8433_s22  ;;  %v2401_v58 = vadd.f32 %v9244_v28, %v2271_v22  ;;  %v9344_v28 = vmax.f32 %v2692_v26, 0.0 }
 0x312   : > { %2740 = vrot.lane.b32.xlu1 %v9281_v38, %s8430_s19  ;;  %v2531_v12 = vadd.f32 %v2521_v23, %v2401_v58 }
 0x314   : > { %2748 = vrot.lane.b32.xlu0 %v9287_v55, %s8430_s19  ;;  %v2661_v46 = vadd.f32 %v2651_v42, %v2531_v12 }
 0x316   : > { %2704 = vrot.lane.b32.xlu1 %v9281_v38, %s8431_s20  ;;  %v2693_v10 = vadd.f32 %v9260_v53, %v2661_v46 }
 0x318   : > { %2712 = vrot.lane.b32.xlu0 %v9287_v55, %s8431_s20  ;;  %v9348_v49 = vmax.f32 %v2693_v10, 0.0 }
 0x31a   : > { %2980 = vrot.lane.b32.xlu1 %v9281_v38, %s8432_s21 }
 0x31c   : > { %2988 = vrot.lane.b32.xlu0 %v9287_v55, %s8432_s21 }
 0x31e   : > { %3126 = vrot.lane.b32.xlu1 %v9281_v38, %s8433_s22 }
 0x320   : > { %3134 = vrot.lane.b32.xlu0 %v9287_v55, %s8433_s22 }
 0x322   : > { %2742 = vrot.lane.b32.xlu1 %v9310_v52, %s8430_s19 }
 0x324   : > { %2750 = vrot.lane.b32.xlu0 %v9315_v33, %s8430_s19 }
 0x326   : > { %2706 = vrot.lane.b32.xlu1 %v9310_v52, %s8431_s20 }
 0x328   : > { %2714 = vrot.lane.b32.xlu0 %v9315_v33, %s8431_s20 }
 0x32a   : > { %2982 = vrot.lane.b32.xlu1 %v9310_v52, %s8432_s21 }
 0x32c   : > { %2990 = vrot.lane.b32.xlu0 %v9315_v33, %s8432_s21 }
 0x32e   : > { %3128 = vrot.lane.b32.xlu1 %v9310_v52, %s8433_s22 }
 0x330   : > { %3136 = vrot.lane.b32.xlu0 %v9315_v33, %s8433_s22 }
 0x332   : > { %3388 = vrot.lane.b32.xlu1 %v9310_v52, %s8434_s23 }
 0x334   : > { %3396 = vrot.lane.b32.xlu0 %v9315_v33, %s8434_s23 }
 0x336   : > { %2744 = vrot.lane.b32.xlu1 %v9344_v28, %s8430_s19 }
 0x338   : > { %2752 = vrot.lane.b32.xlu0 %v9348_v49, %s8430_s19 }
 0x33a   : > { %3386 = vrot.lane.b32.xlu1 %v9281_v38, %s8434_s23 }
 0x33c   : > { %3394 = vrot.lane.b32.xlu0 %v9287_v55, %s8434_s23 }
 0x33e   : > { %2708 = vrot.lane.b32.xlu1 %v9344_v28, %s8431_s20 }
 0x340   : > { %3542 = vrot.lane.b32.xlu0 %v9315_v33, %s12338_s24 }
 0x342   : > { %2984 = vrot.lane.b32.xlu1 %v9344_v28, %s8432_s21 }
 0x344   : > { %2716 = vrot.lane.b32.xlu0 %v9348_v49, %s8431_s20 }
 0x346   : > { %3130 = vrot.lane.b32.xlu1 %v9344_v28, %s8433_s22 }
 0x348   : > { %2992 = vrot.lane.b32.xlu0 %v9348_v49, %s8432_s21 }
 0x34a   : > { %3390 = vrot.lane.b32.xlu1 %v9344_v28, %s8434_s23 }
 0x34c   : > { %3392 = vrot.lane.b32.xlu0 %v9254_v35, %s8434_s23 }
 0x34e   : > { %3536 = vrot.lane.b32.xlu1 %v9344_v28, %s12338_s24 }
 0x350   : > { %3540 = vrot.lane.b32.xlu0 %v9287_v55, %s12338_s24 }
 0x352   : > { %3534 = vrot.lane.b32.xlu1 %v9310_v52, %s12338_s24 }
 0x354   : > { %3538 = vrot.lane.b32.xlu0 %v9254_v35, %s12338_s24 }
 0x356   : > { %3384 = vrot.lane.b32.xlu1 %v9252_v34, %s8434_s23 }
 0x358   : > { %3138 = vrot.lane.b32.xlu0 %v9348_v49, %s8433_s22 }
 0x35a   : > { %3532 = vrot.lane.b32.xlu1 %v9281_v38, %s12338_s24 }
 0x35c   : > { %3688 = vrot.lane.b32.xlu0 %v9315_v33, %s12339_s25 }
 0x35e   : > { %3530 = vrot.lane.b32.xlu1 %v9252_v34, %s12338_s24 }
 0x360   : > { %3686 = vrot.lane.b32.xlu0 %v9287_v55, %s12339_s25 }
 0x362   : > { %3682 = vrot.lane.b32.xlu1 %v9344_v28, %s12339_s25 }
 0x364   : > { %3398 = vrot.lane.b32.xlu0 %v9348_v49, %s8434_s23 }
 0x366   : > { %3680 = vrot.lane.b32.xlu1 %v9310_v52, %s12339_s25 }
 0x368   : > { %3544 = vrot.lane.b32.xlu0 %v9348_v49, %s12338_s24 }
 0x36a   : > { %3828 = vrot.lane.b32.xlu1 %v9344_v28, %s8437_s26 }
 0x36c   : > { %3834 = vrot.lane.b32.xlu0 %v9315_v33, %s8437_s26 }
 0x36e   : > { %3678 = vrot.lane.b32.xlu1 %v9281_v38, %s12339_s25 }
 0x370   : > { %3684 = vrot.lane.b32.xlu0 %v9254_v35, %s12339_s25 }
 0x372   : > { %3826 = vrot.lane.b32.xlu1 %v9310_v52, %s8437_s26 }
 0x374   : > { %3690 = vrot.lane.b32.xlu0 %v9348_v49, %s12339_s25  ;;  %v2739_v47 = vpop.permute.xlu1 %2738 }
 0x376   : > { %v2747_v53 = vpop.permute.xlu0 %2746  ;;  %3676 = vrot.lane.b32.xlu1 %v9252_v34, %s12339_s25 }
 0x377   : > { %v2754_v23 = vsel %vm515_vm0, %v2739_v47, %v2747_v53  ;;  %v2758_v43 = vsel %vm515_vm0, %v2747_v53, %v2739_v47 }
 0x378   : > { %3836 = vrot.lane.b32.xlu0 %v9348_v49, %s8437_s26  ;;  %v9418_v60 = vpop.permute.xlu1 %2702  ;;  %v2763_v26 = vmul.f32 %v2754_v23, %v8601_v19  ;;  %v2762_v10 = vmul.f32 %v2758_v43, %v8598_v18  ;;  %v12343_v43 = vld [vmem:[#allocation3_spill] sm:$0xff] }
 0x37a   : > { %v9420_v63 = vpop.permute.xlu0 %2710  ;;  %3824 = vrot.lane.b32.xlu1 %v9281_v38, %s8437_s26 }
 0x37c   : > { %3832 = vrot.lane.b32.xlu0 %v9287_v55, %s8437_s26  ;;  %v9426_v15 = vpop.permute.xlu1 %2978 }
 0x37e   : > { %v9428_v17 = vpop.permute.xlu0 %2986  ;;  %3822 = vrot.lane.b32.xlu1 %v9252_v34, %s8437_s26 }
 0x380   : > { %3830 = vrot.lane.b32.xlu0 %v9254_v35, %s8437_s26  ;;  %v9437_v32 = vpop.permute.xlu1 %3124 }
 0x382   : > { %v9442_v51 = vpop.permute.xlu0 %3132  ;;  %3989 = vperm.xlu1 %8419, %v3971_v20   ;;  %v8122_v20 = vld [vmem:[%s12256_s6 + $0x20] sm:$0xff] }
 0x384   : > { %3984 = vperm.xlu0 %8418, %v3970_v36   ;;  %v2741_v61 = vpop.permute.xlu1 %2740 }
 0x386   : > { %v2749_v27 = vpop.permute.xlu0 %2748  ;;  %3979 = vperm.xlu1 %8419, %v3969_v4  }
 0x387   : > { %v2755_v30 = vsel %vm515_vm0, %v2741_v61, %v2749_v27  ;;  %v2759_v62 = vsel %vm515_vm0, %v2749_v27, %v2741_v61  ;;  %v8123_v27 = vld [vmem:[%s12256_s6 + $0x28] sm:$0xff] }
 0x388   : > { %3974 = vperm.xlu0 %8418, %v3968_v2   ;;  %v9450_v14 = vpop.permute.xlu1 %2704  ;;  %v2765_v12 = vmul.f32 %v2755_v30, %v8601_v19  ;;  %v2764_v31 = vmul.f32 %v2759_v62, %v8598_v18  ;;  %v12340_v2 = vmov 0.0   ;;  %v12342_v62 = vld [vmem:[#allocation6_spill] sm:$0xff] }
 0x38a   : > { %v2713_v54 = vpop.permute.xlu0 %2712 }
 0x38c   : > { %v9452_v57 = vpop.permute.xlu1 %2980 }
 0x38e   : > { %v9454_v37 = vpop.permute.xlu0 %2988 }
 0x390   : > { %v9456_v48 = vpop.permute.xlu1 %3126 }
 0x392   : > { %v9458_v40 = vpop.permute.xlu0 %3134 }
 0x394   : > { %v2743_v25 = vpop.permute.xlu1 %2742 }
 0x396   : > { %v2751_v29 = vpop.permute.xlu0 %2750 }
 0x397   : > { %v2756_v0 = vsel %vm515_vm0, %v2743_v25, %v2751_v29  ;;  %v2760_v11 = vsel %vm515_vm0, %v2751_v29, %v2743_v25 }
 0x398   : > { %v2707_v5 = vpop.permute.xlu1 %2706  ;;  %v2767_v45 = vmul.f32 %v2756_v0, %v8601_v19  ;;  %v2766_v58 = vmul.f32 %v2760_v11, %v8598_v18  ;;  %v2723_v11 = vsel %vm493_vm1, %v2713_v54, %v9450_v14 }
 0x39a   : > { %v2715_v13 = vpop.permute.xlu0 %2714 }
 0x39b   : > { %v2720_v36 = vsel %vm493_vm1, %v2707_v5, %v2715_v13  ;;  %v2724_v25 = vsel %vm493_vm1, %v2715_v13, %v2707_v5 }
 0x39c   : > { %v9460_v6 = vpop.permute.xlu1 %2982 }
 0x39e   : > { %v9462_v56 = vpop.permute.xlu0 %2990 }
 0x3a0   : > { %v9464_v3 = vpop.permute.xlu1 %3128 }
 0x3a2   : > { %v9466_v7 = vpop.permute.xlu0 %3136 }
 0x3a4   : > { %v9468_v1 = vpop.permute.xlu1 %3388 }
 0x3a6   : > { %v9470_v59 = vpop.permute.xlu0 %3396 }
 0x3a8   : > { %v2745_v21 = vpop.permute.xlu1 %2744 }
 0x3aa   : > { %v2753_v24 = vpop.permute.xlu0 %2752 }
 0x3ab   : > { %v2757_v39 = vsel %vm515_vm0, %v2745_v21, %v2753_v24  ;;  %v2761_v50 = vsel %vm515_vm0, %v2753_v24, %v2745_v21  ;;  %v12341_v24 = vld [vmem:[#allocation2_spill] sm:$0xff] }
 0x3ac   : > { %v2768_v41 = vmul.f32 %v2761_v50, %v8598_v18  ;;  %v9481_v9 = vpop.permute.xlu1 %3386  ;;  %v2769_v44 = vmul.f32 %v2757_v39, %v8601_v19  ;;  %v2719_v39 = vsel %vm493_vm1, %v9450_v14, %v2713_v54  ;;  %v2718_v50 = vsel %vm493_vm1, %v9418_v60, %v9420_v63  ;;  %v8124_v14 = vld [vmem:[%s12256_s6 + $0x30] sm:$0xff] }
 0x3ad   : > { %v2731_v13 = vmul.f32 %v2720_v36, %v12341_v24  ;;  %v2996_v54 = vsel %vm718_vm2, %v9460_v6, %v9462_v56  ;;  %v8125_v36 = vld [vmem:[%s12256_s6 + $0x38] sm:$0xff] }
 0x3ae   : > { %v9488_v22 = vpop.permute.xlu0 %3394  ;;  %2812 = vmatprep.subr.mxu0 %v2769_v44 }
 0x3af   : > { %2813 = vmatpush1.msra.mxu0 %v2768_v41  ;;  %v2730_v41 = vmul.f32 %v2724_v25, %v8592_v16 }
 0x3b0   : > { %2814 = vmatprep.subr.mxu0 %v2767_v45  ;;  %v2709_v42 = vpop.permute.xlu1 %2708 }
 0x3b1   : > { %2815 = vmatpush1.msra.mxu0 %v2766_v58  ;;  %v2729_v58 = vmul.f32 %v2719_v39, %v12341_v24  ;;  %v8134_v39 = vld [vmem:[%s12256_s6 + $0x40] sm:$0xff] }
 0x3b2   : > { %v9498_v46 = vpop.permute.xlu0 %3542  ;;  %2816 = vmatprep.subr.mxu0 %v2765_v12  ;;  %v2722_v12 = vsel %vm493_vm1, %v9420_v63, %v9418_v60  ;;  %v2995_v60 = vsel %vm718_vm2, %v9452_v57, %v9454_v37  ;;  %v3007_v63 = vmul.f32 %v2996_v54, %v12343_v43 }
 0x3b3   : > { %2817 = vmatpush1.msra.mxu0 %v2764_v31  ;;  %v2728_v31 = vmul.f32 %v2723_v11, %v8592_v16 }
 0x3b4   : > { %2818 = vmatprep.subr.mxu0 %v2763_v26  ;;  %v2985_v47 = vpop.permute.xlu1 %2984  ;;  %v3000_v26 = vsel %vm718_vm2, %v9462_v56, %v9460_v6  ;;  %v2999_v6 = vsel %vm718_vm2, %v9454_v37, %v9452_v57  ;;  %v2998_v57 = vsel %vm718_vm2, %v9428_v17, %v9426_v15 }
 0x3b5   : > { %2819 = vmatpush1.msra.mxu0 %v2762_v10  ;;  %v3006_v56 = vmul.f32 %v3000_v26, %v12342_v62  ;;  %v3004_v25 = vmul.f32 %v2999_v6, %v12342_v62  ;;  %v3402_v6 = vsel %vm1044_vm6, %v9468_v1, %v9470_v59 }
 0x3b6   : > { %v2717_v53 = vpop.permute.xlu0 %2716  ;;  %8126 = vmatmul.mubr.msk.f32.vlgmr.msra.gmra.mxu0 %vm2775_vm11, %v8122_v20  ;;  %v2727_v20 = vmul.f32 %v2718_v50, %v12341_v24 }
 0x3b7   : > { %v2721_v4 = vsel %vm493_vm1, %v2709_v42, %v2717_v53  ;;  %v2725_v61 = vsel %vm493_vm1, %v2717_v53, %v2709_v42  ;;  %2858 = vmatprep.mubr.f32.mxu0 %v12340_v2 }
 0x3b8   : > { %v2732_v29 = vmul.f32 %v2725_v61, %v8592_v16  ;;  %v9519_v21 = vpop.permute.xlu1 %3130  ;;  %v2733_v0 = vmul.f32 %v2721_v4, %v12341_v24  ;;  %v2734_v4 = vld [vmem:[%s12256_s6] sm:$0xff]  ;;  %v2994_v61 = vsel %vm718_vm2, %v9426_v15, %v9428_v17  ;;  %v2735_v15 = vld [vmem:[%s12256_s6 + $0x8] sm:$0xff]  ;;  %v3002_v17 = vmul.f32 %v2998_v57, %v12342_v62 }
 0x3ba   : > { %v2993_v5 = vpop.permute.xlu0 %2992  ;;  %8127 = vmatmul.mubr.msk.f32.gmra.mxu0 %vm2775_vm11, %v8123_v27  ;;  %2913 = vmatprep.subr.mxu1 %v2733_v0  ;;  %v3005_v27 = vmul.f32 %v2995_v60, %v12343_v43 }
 0x3bb   : > { %v2997_v44 = vsel %vm718_vm2, %v2985_v47, %v2993_v5  ;;  %v3001_v30 = vsel %vm718_vm2, %v2993_v5, %v2985_v47  ;;  %2914 = vmatpush1.msra.mxu1 %v2732_v29  ;;  %2864 = vmatprep.mubr.f32.mxu0 %v12340_v2  ;;  %v2726_v47 = vmul.f32 %v2722_v12, %v8592_v16  ;;  %v2736_v5 = vld [vmem:[%s12256_s6 + $0x10] sm:$0xff] }
 0x3bc   : > { %v3008_v45 = vmul.f32 %v3001_v30, %v12342_v62  ;;  %2915 = vmatprep.subr.mxu1 %v2731_v13  ;;  %v9548_v23 = vpop.permute.xlu1 %3390  ;;  %v3009_v42 = vmul.f32 %v2997_v44, %v12343_v43  ;;  %v3003_v29 = vmul.f32 %v2994_v61, %v12343_v43  ;;  %v8135_v13 = vld [vmem:[%s12256_s6 + $0x48] sm:$0xff]  ;;  %v12344_v44 = vld [vmem:[#allocation5_spill] sm:$0xff]  ;;  %v12346_v61 = vld [vmem:[#allocation8_spill] sm:$0xff] }
 0x3bd   : > { %2916 = vmatpush1.msra.mxu1 %v2730_v41 }
 0x3be   : > { %v9561_v10 = vpop.permute.xlu0 %3392  ;;  %8128 = vmatmul.mubr.msk.f32.gmra.mxu0 %vm2775_vm11, %v8124_v14  ;;  %2917 = vmatprep.subr.mxu1 %v2729_v58  ;;  %v3142_v14 = vsel %vm834_vm5, %v9464_v3, %v9466_v7 }
 0x3bf   : > { %3051 = vmatprep.subr.mxu0 %v3009_v42  ;;  %2918 = vmatpush1.msra.mxu1 %v2728_v31  ;;  %v3140_v42 = vsel %vm834_vm5, %v9437_v32, %v9442_v51 }
 0x3c0   : > { %3052 = vmatpush1.msra.mxu0 %v3008_v45  ;;  %2919 = vmatprep.subr.mxu1 %v2727_v20  ;;  %v9576_v53 = vpop.permute.xlu1 %3536  ;;  %v3146_v45 = vsel %vm834_vm5, %v9466_v7, %v9464_v3  ;;  %v3145_v3 = vsel %vm834_vm5, %v9458_v40, %v9456_v48  ;;  %v3149_v20 = vmul.f32 %v3140_v42, %v12344_v44 }
 0x3c1   : > { %3053 = vmatprep.subr.mxu0 %v3007_v63  ;;  %2870 = vmatprep.mubr.f32.mxu0 %v12340_v2 }
 0x3c2   : > { %2920 = vmatpush1.msra.mxu1 %v2726_v47  ;;  %3054 = vmatpush1.msra.mxu0 %v3006_v56  ;;  %v9593_v37 = vpop.permute.xlu0 %3540 }
 0x3c3   : > { %8129 = vmatmul.mubr.msk.f32.gmra.mxu0 %vm2775_vm11, %v8125_v36  ;;  %8130 = vmatmul.mubr.msk.f32.vlgmr.msra.gmra.mxu1 %vm2775_vm11, %v2734_v4  ;;  %v3406_v4 = vsel %vm1044_vm6, %v9470_v59, %v9468_v1  ;;  %v8151_v1 = vld [vmem:[%s12256_s6 + $0x88] sm:$0xff]  ;;  %v3405_v59 = vsel %vm1044_vm6, %v9488_v22, %v9481_v9 }
 0x3c4   : > { %3055 = vmatprep.subr.mxu0 %v3005_v27  ;;  %v9600_v0 = vpop.permute.xlu1 %3534  ;;  %2959 = vmatprep.mubr.f32.mxu1 %v12340_v2 }
 0x3c5   : > { %3056 = vmatpush1.msra.mxu0 %v3004_v25  ;;  %3091 = vmatprep.mubr.f32.mxu0 %v12340_v2  ;;  %v12347_v25 = vld [vmem:[#allocation7_spill] sm:$0xff] }
 0x3c6   : > { %3057 = vmatprep.subr.mxu0 %v3003_v29  ;;  %v9611_v50 = vpop.permute.xlu0 %3538 }
 0x3c7   : > { %3058 = vmatpush1.msra.mxu0 %v3002_v17  ;;  %8131 = vmatmul.mubr.msk.f32.gmra.mxu1 %vm2775_vm11, %v2735_v15  ;;  %v3412_v17 = vmul.f32 %v3402_v6, %v12346_v61 }
 0x3c8   : > { %8138 = vmatmul.mubr.msk.f32.vlgmr.msra.gmra.mxu0 %vm2775_vm11, %v8134_v39  ;;  %3311 = vmatprep.subr.mxu0 %v9348_v49  ;;  %v9616_v11 = vpop.permute.xlu1 %3384 }
 0x3c9   : > { %3312 = vmatpush1.msra.mxu0 %v9344_v28  ;;  %2965 = vmatprep.mubr.f32.mxu1 %v12340_v2 }
 0x3ca   : > { %3313 = vmatprep.subr.mxu0 %v9315_v33  ;;  %3097 = vmatprep.mubr.f32.mxu0 %v12340_v2  ;;  %v3139_v41 = vpop.permute.xlu0 %3138 }
 0x3cb   : > { %3314 = vmatpush1.msra.mxu0 %v9310_v52  ;;  %v3143_v49 = vsel %vm834_vm5, %v9519_v21, %v3139_v41  ;;  %v3147_v28 = vsel %vm834_vm5, %v3139_v41, %v9519_v21  ;;  %8132 = vmatmul.mubr.msk.f32.gmra.mxu1 %vm2775_vm11, %v2736_v5  ;;  %v2737_v52 = vld [vmem:[%s12256_s6 + $0x18] sm:$0xff]  ;;  %v12345_v21 = vld [vmem:[#allocation4_spill] sm:$0xff]  ;;  %v3401_v41 = vsel %vm1044_vm6, %v9481_v9, %v9488_v22 }
 0x3cc   : > { %8139 = vmatmul.mubr.msk.f32.gmra.mxu0 %vm2775_vm11, %v8135_v13  ;;  %3315 = vmatprep.subr.mxu0 %v9287_v55  ;;  %v9638_v33 = vpop.permute.xlu1 %3532  ;;  %v3155_v30 = vmul.f32 %v3143_v49, %v12344_v44  ;;  %v3154_v54 = vmul.f32 %v3147_v28, %v12345_v21  ;;  %v8136_v55 = vld [vmem:[%s12256_s6 + $0x50] sm:$0xff]  ;;  %v3150_v26 = vmul.f32 %v3145_v3, %v12345_v21 }
 0x3cd   : > { %3316 = vmatpush1.msra.mxu0 %v9281_v38  ;;  %2971 = vmatprep.mubr.f32.mxu1 %v12340_v2  ;;  %v3141_v38 = vsel %vm834_vm5, %v9456_v48, %v9458_v40  ;;  %v8137_v48 = vld [vmem:[%s12256_s6 + $0x58] sm:$0xff]  ;;  %v3144_v40 = vsel %vm834_vm5, %v9442_v51, %v9437_v32  ;;  %v8142_v32 = vld [vmem:[%s12256_s6 + $0x60] sm:$0xff]  ;;  %v3413_v13 = vmul.f32 %v3406_v4, %v12347_v25  ;;  %v12348_v49 = vld [vmem:[#allocation12_spill] sm:$0xff] }
 0x3ce   : > { %3317 = vmatprep.subr.mxu0 %v9254_v35  ;;  %3103 = vmatprep.mubr.f32.mxu0 %v12340_v2  ;;  %v9660_v58 = vpop.permute.xlu0 %3688  ;;  %v3153_v35 = vmul.f32 %v3142_v14, %v12344_v44  ;;  %v3151_v31 = vmul.f32 %v3141_v38, %v12344_v44  ;;  %v3148_v63 = vmul.f32 %v3144_v40, %v12345_v21  ;;  %v8150_v51 = vld [vmem:[%s12256_s6 + $0x80] sm:$0xff]  ;;  %v8144_v22 = vld [vmem:[%s12256_s6 + $0x70] sm:$0xff] }
 0x3cf   : > { %3318 = vmatpush1.msra.mxu0 %v9252_v34  ;;  %8133 = vmatmul.mubr.msk.f32.gmra.mxu1 %vm2775_vm11, %v2737_v52  ;;  %v3152_v34 = vmul.f32 %v3146_v45, %v12345_v21  ;;  %v3404_v9 = vsel %vm1044_vm6, %v9561_v10, %v9616_v11  ;;  %v8152_v38 = vld [vmem:[%s12256_s6 + $0x90] sm:$0xff]  ;;  %v3410_v3 = vmul.f32 %v3401_v41, %v12346_v61  ;;  %v12350_v4 = vld [vmem:[#allocation10_spill] sm:$0xff] }
 0x3d0   : > { %8140 = vmatmul.mubr.msk.f32.gmra.mxu0 %vm2775_vm11, %v8136_v55  ;;  %3197 = vmatprep.subr.mxu1 %v3155_v30  ;;  %v9674_v7 = vpop.permute.xlu1 %3530  ;;  %v12349_v30 = vld [vmem:[#allocation9_spill] sm:$0xff]  ;;  %v3400_v55 = vsel %vm1044_vm6, %v9616_v11, %v9561_v10  ;;  %v3551_v10 = vsel %vm1160_vm7, %v9593_v37, %v9638_v33  ;;  %v3409_v11 = vmul.f32 %v3404_v9, %v12347_v25 }
 0x3d1   : > { %3198 = vmatpush1.msra.mxu1 %v3154_v54  ;;  %3109 = vmatprep.mubr.f32.mxu0 %v12340_v2  ;;  %v3411_v54 = vmul.f32 %v3405_v59, %v12347_v25 }
 0x3d2   : > { %3199 = vmatprep.subr.mxu1 %v3153_v35  ;;  %v9689_v12 = vpop.permute.xlu0 %3686  ;;  %3237 = vmatprep.mubr.f32.mxu1 %v12340_v2  ;;  %v3548_v35 = vsel %vm1160_vm7, %v9600_v0, %v9498_v46 }
 0x3d3   : > { %3200 = vmatpush1.msra.mxu1 %v3152_v34  ;;  %v3558_v40 = vmul.f32 %v3548_v35, %v12348_v49 }
 0x3d4   : > { %8141 = vmatmul.mubr.msk.f32.gmra.mxu0 %vm2775_vm11, %v8137_v48  ;;  %3201 = vmatprep.subr.mxu1 %v3151_v31  ;;  %v9696_v60 = vpop.permute.xlu1 %3682  ;;  %v3408_v48 = vmul.f32 %v3400_v55, %v12346_v61  ;;  %v3550_v31 = vsel %vm1160_vm7, %v9611_v50, %v9674_v7 }
 0x3d5   : > { %3202 = vmatpush1.msra.mxu1 %v3150_v26  ;;  %3351 = vmatprep.mubr.f32.mxu0 %v12340_v2 }
 0x3d6   : > { %3203 = vmatprep.subr.mxu1 %v3149_v20  ;;  %v3399_v47 = vpop.permute.xlu0 %3398 }
 0x3d7   : > { %3204 = vmatpush1.msra.mxu1 %v3148_v63  ;;  %v3403_v56 = vsel %vm1044_vm6, %v9548_v23, %v3399_v47  ;;  %v3407_v36 = vsel %vm1044_vm6, %v3399_v47, %v9548_v23  ;;  %v8143_v23 = vld [vmem:[%s12256_s6 + $0x68] sm:$0xff]  ;;  %v8153_v63 = vld [vmem:[%s12256_s6 + $0x98] sm:$0xff] }
 0x3d8   : > { %v3414_v57 = vmul.f32 %v3403_v56, %v12346_v61  ;;  %8146 = vmatmul.mubr.msk.f32.vlgmr.msra.gmra.mxu1 %vm2775_vm11, %v8142_v32  ;;  %8154 = vmatmul.mubr.msk.f32.vlgmr.msra.gmra.mxu0 %vm2775_vm11, %v8150_v51  ;;  %v9723_v27 = vpop.permute.xlu1 %3680  ;;  %v3415_v29 = vmul.f32 %v3407_v36, %v12347_v25 }
 0x3d9   : > { %3243 = vmatprep.mubr.f32.mxu1 %v12340_v2  ;;  %3357 = vmatprep.mubr.f32.mxu0 %v12340_v2  ;;  %v3698_v6 = vsel %vm1276_vm8, %v9660_v58, %v9723_v27 }
 0x3da   : > { %v3545_v15 = vpop.permute.xlu0 %3544  ;;  %3457 = vmatprep.subr.mxu1 %v3415_v29  ;;  %v8166_v29 = vld [vmem:[%s12256_s6 + $0xc0] sm:$0xff] }
 0x3db   : > { %v3549_v39 = vsel %vm1160_vm7, %v9576_v53, %v3545_v15  ;;  %v3553_v5 = vsel %vm1160_vm7, %v3545_v15, %v9576_v53  ;;  %3458 = vmatpush1.msra.mxu1 %v3414_v57  ;;  %v3552_v53 = vsel %vm1160_vm7, %v9498_v46, %v9600_v0  ;;  %v3547_v46 = vsel %vm1160_vm7, %v9638_v33, %v9593_v37  ;;  %v8145_v0 = vld [vmem:[%s12256_s6 + $0x78] sm:$0xff] }
 0x3dc   : > { %v3560_v28 = vmul.f32 %v3549_v39, %v12348_v49  ;;  %8147 = vmatmul.mubr.msk.f32.gmra.mxu1 %vm2775_vm11, %v8143_v23  ;;  %8155 = vmatmul.mubr.msk.f32.gmra.mxu0 %vm2775_vm11, %v8151_v1  ;;  %v9753_v52 = vpop.permute.xlu1 %3828  ;;  %v3561_v14 = vmul.f32 %v3553_v5, %v12349_v30  ;;  %v3559_v42 = vmul.f32 %v3552_v53, %v12349_v30  ;;  %v12351_v1 = vld [vmem:[#allocation11_spill] sm:$0xff]  ;;  %v12352_v53 = vld [vmem:[#allocation13_spill] sm:$0xff] }
 0x3dd   : > { %3459 = vmatprep.subr.mxu1 %v3413_v13  ;;  %3249 = vmatprep.mubr.f32.mxu1 %v12340_v2  ;;  %v3546_v37 = vsel %vm1160_vm7, %v9674_v7, %v9611_v50  ;;  %v3557_v33 = vmul.f32 %v3551_v10, %v12349_v30  ;;  %v3556_v20 = vmul.f32 %v3547_v46, %v12348_v49  ;;  %v8158_v7 = vld [vmem:[%s12256_s6 + $0xa0] sm:$0xff] }
 0x3de   : > { %3460 = vmatpush1.msra.mxu1 %v3412_v17  ;;  %v9773_v45 = vpop.permute.xlu0 %3834  ;;  %3603 = vmatprep.subr.mxu0 %v3561_v14  ;;  %v3555_v50 = vmul.f32 %v3550_v31, %v12349_v30  ;;  %v3554_v51 = vmul.f32 %v3546_v37, %v12348_v49  ;;  %v3694_v15 = vsel %vm1276_vm8, %v9723_v27, %v9660_v58  ;;  %v8159_v17 = vld [vmem:[%s12256_s6 + $0xa8] sm:$0xff] }
 0x3df   : > { %3461 = vmatprep.subr.mxu1 %v3411_v54  ;;  %3363 = vmatprep.mubr.f32.mxu0 %v12340_v2  ;;  %v3705_v5 = vmul.f32 %v3698_v6, %v12351_v1  ;;  %v3704_v41 = vmul.f32 %v3694_v15, %v12350_v4  ;;  %v12353_v54 = vld [vmem:[#allocation14_spill] sm:$0xff] }
 0x3e0   : > { %8148 = vmatmul.mubr.msk.f32.gmra.mxu1 %vm2775_vm11, %v8144_v22  ;;  %3604 = vmatpush1.msra.mxu0 %v3560_v28  ;;  %v3679_v34 = vpop.permute.xlu1 %3678  ;;  %v8182_v6 = vld [vmem:[%s12256_s6 + $0x100] sm:$0xff] }
 0x3e1   : > { %3462 = vmatpush1.msra.mxu1 %v3410_v3  ;;  %8156 = vmatmul.mubr.msk.f32.gmra.mxu0 %vm2775_vm11, %v8152_v38  ;;  %v3693_v58 = vsel %vm1276_vm8, %v3679_v34, %v9689_v12  ;;  %v8160_v38 = vld [vmem:[%s12256_s6 + $0xb0] sm:$0xff] }
 0x3e2   : > { %3463 = vmatprep.subr.mxu1 %v3409_v11  ;;  %3605 = vmatprep.subr.mxu0 %v3559_v42  ;;  %v3685_v26 = vpop.permute.xlu0 %3684  ;;  %v3702_v3 = vmul.f32 %v3693_v58, %v12350_v4 }
 0x3e3   : > { %3255 = vmatprep.mubr.f32.mxu1 %v12340_v2  ;;  %3464 = vmatpush1.msra.mxu1 %v3408_v48 }
 0x3e4   : > { %3606 = vmatpush1.msra.mxu0 %v3558_v40  ;;  %8149 = vmatmul.mubr.msk.f32.gmra.mxu1 %vm2775_vm11, %v8145_v0  ;;  %v3827_v32 = vpop.permute.xlu1 %3826 }
 0x3e5   : > { %3607 = vmatprep.subr.mxu0 %v3557_v33  ;;  %3369 = vmatprep.mubr.f32.mxu0 %v12340_v2  ;;  %v3840_v35 = vsel %vm1392_vm9, %v3827_v32, %v9773_v45 }
 0x3e6   : > { %3608 = vmatpush1.msra.mxu0 %v3556_v20  ;;  %3497 = vmatprep.mubr.f32.mxu1 %v12340_v2  ;;  %v3691_v47 = vpop.permute.xlu0 %3690  ;;  %v3850_v40 = vmul.f32 %v3840_v35, %v12353_v54  ;;  %v8161_v20 = vld [vmem:[%s12256_s6 + $0xb8] sm:$0xff] }
 0x3e7   : > { %8157 = vmatmul.mubr.msk.f32.gmra.mxu0 %vm2775_vm11, %v8153_v63  ;;  %3609 = vmatprep.subr.mxu0 %v3555_v50  ;;  %v3695_v56 = vsel %vm1276_vm8, %v9696_v60, %v3691_v47  ;;  %v3699_v36 = vsel %vm1276_vm8, %v3691_v47, %v9696_v60  ;;  %v3697_v60 = vsel %vm1276_vm8, %v9689_v12, %v3679_v34  ;;  %v8167_v12 = vld [vmem:[%s12256_s6 + $0xc8] sm:$0xff]  ;;  %v8169_v50 = vld [vmem:[%s12256_s6 + $0xd8] sm:$0xff]  ;;  %v8174_v47 = vld [vmem:[%s12256_s6 + $0xe0] sm:$0xff] }
 0x3e8   : > { %3610 = vmatpush1.msra.mxu0 %v3554_v51  ;;  %v3706_v57 = vmul.f32 %v3695_v56, %v12350_v4  ;;  %8162 = vmatmul.mubr.msk.f32.vlgmr.msra.gmra.mxu1 %vm2775_vm11, %v8158_v7  ;;  %v3677_v23 = vpop.permute.xlu1 %3676  ;;  %v3707_v59 = vmul.f32 %v3699_v36, %v12351_v1  ;;  %v3703_v14 = vmul.f32 %v3697_v60, %v12351_v1  ;;  %v8175_v56 = vld [vmem:[%s12256_s6 + $0xe8] sm:$0xff] }
 0x3e9   : > { %3643 = vmatprep.mubr.f32.mxu0 %v12340_v2  ;;  %3503 = vmatprep.mubr.f32.mxu1 %v12340_v2  ;;  %v3696_v22 = vsel %vm1276_vm8, %v3685_v26, %v3677_v23  ;;  %v3692_v11 = vsel %vm1276_vm8, %v3677_v23, %v3685_v26  ;;  %v8183_v36 = vld [vmem:[%s12256_s6 + $0x108] sm:$0xff]  ;;  %v8177_v23 = vld [vmem:[%s12256_s6 + $0xf8] sm:$0xff] }
 0x3ea   : > { %v3837_v39 = vpop.permute.xlu0 %3836  ;;  %3749 = vmatprep.subr.mxu1 %v3707_v59  ;;  %v3701_v48 = vmul.f32 %v3696_v22, %v12351_v1  ;;  %v3700_v31 = vmul.f32 %v3692_v11, %v12350_v4  ;;  %v8185_v59 = vld [vmem:[%s12256_s6 + $0x118] sm:$0xff] }
 0x3eb   : > { %8170 = vmatmul.mubr.msk.f32.vlgmr.msra.gmra.mxu0 %vm2775_vm11, %v8166_v29  ;;  %v3841_v27 = vsel %vm1392_vm9, %v9753_v52, %v3837_v39  ;;  %v3845_v13 = vsel %vm1392_vm9, %v3837_v39, %v9753_v52  ;;  %3750 = vmatpush1.msra.mxu1 %v3706_v57  ;;  %v3844_v52 = vsel %vm1392_vm9, %v9773_v45, %v3827_v32  ;;  %v8168_v45 = vld [vmem:[%s12256_s6 + $0xd0] sm:$0xff] }
 0x3ec   : > { %8163 = vmatmul.mubr.msk.f32.gmra.mxu1 %vm2775_vm11, %v8159_v17  ;;  %3649 = vmatprep.mubr.f32.mxu0 %v12340_v2  ;;  %v3825_v28 = vpop.permute.xlu1 %3824  ;;  %v3853_v9 = vmul.f32 %v3845_v13, %v12352_v53  ;;  %v3852_v55 = vmul.f32 %v3841_v27, %v12353_v54  ;;  %v3851_v46 = vmul.f32 %v3844_v52, %v12352_v53  ;;  %v8176_v57 = vld [vmem:[%s12256_s6 + $0xf0] sm:$0xff] }
 0x3ed   : > { %3751 = vmatprep.subr.mxu1 %v3705_v5  ;;  %3509 = vmatprep.mubr.f32.mxu1 %v12340_v2  ;;  %v8184_v29 = vld [vmem:[%s12256_s6 + $0x110] sm:$0xff] }
 0x3ee   : > { %3752 = vmatpush1.msra.mxu1 %v3704_v41  ;;  %v3833_v10 = vpop.permute.xlu0 %3832  ;;  %3895 = vmatprep.subr.mxu0 %v3853_v9 }
 0x3ef   : > { %8171 = vmatmul.mubr.msk.f32.gmra.mxu0 %vm2775_vm11, %v8167_v12  ;;  %v3839_v42 = vsel %vm1392_vm9, %v3825_v28, %v3833_v10  ;;  %v3843_v34 = vsel %vm1392_vm9, %v3833_v10, %v3825_v28  ;;  %3753 = vmatprep.subr.mxu1 %v3703_v14 }
 0x3f0   : > { %8164 = vmatmul.mubr.msk.f32.gmra.mxu1 %vm2775_vm11, %v8160_v38  ;;  %3655 = vmatprep.mubr.f32.mxu0 %v12340_v2  ;;  %v3849_v0 = vmul.f32 %v3843_v34, %v12352_v53  ;;  %v3848_v26 = vmul.f32 %v3839_v42, %v12353_v54  ;;  %v3823_v37 = vpop.permute.xlu1 %3822 }
 0x3f1   : > { %3754 = vmatpush1.msra.mxu1 %v3702_v3  ;;  %3896 = vmatpush1.msra.mxu0 %v3852_v55 }
 0x3f2   : > { %3755 = vmatprep.subr.mxu1 %v3701_v48  ;;  %3897 = vmatprep.subr.mxu0 %v3851_v46  ;;  %v3831_v33 = vpop.permute.xlu0 %3830 }
 0x3f3   : > { %8172 = vmatmul.mubr.msk.f32.gmra.mxu0 %vm2775_vm11, %v8168_v45  ;;  %3515 = vmatprep.mubr.f32.mxu1 %v12340_v2  ;;  %v3838_v63 = vsel %vm1392_vm9, %v3823_v37, %v3831_v33  ;;  %v3842_v32 = vsel %vm1392_vm9, %v3831_v33, %v3823_v37 }
 0x3f4   : > { %3756 = vmatpush1.msra.mxu1 %v3700_v31  ;;  %3898 = vmatpush1.msra.mxu0 %v3850_v40  ;;  %v3847_v7 = vmul.f32 %v3842_v32, %v12352_v53  ;;  %v3846_v51 = vmul.f32 %v3838_v63, %v12353_v54 }
 0x3f5   : > { %8165 = vmatmul.mubr.msk.f32.gmra.mxu1 %vm2775_vm11, %v8161_v20  ;;  %3899 = vmatprep.subr.mxu0 %v3849_v0 }
 0x3f6   : > { %3661 = vmatprep.mubr.f32.mxu0 %v12340_v2  ;;  %3900 = vmatpush1.msra.mxu0 %v3848_v26 }
 0x3f7   : > { %8173 = vmatmul.mubr.msk.f32.gmra.mxu0 %vm2775_vm11, %v8169_v50  ;;  %3789 = vmatprep.mubr.f32.mxu1 %v12340_v2 }
 0x3f8   : > { %3901 = vmatprep.subr.mxu0 %v3847_v7  ;;  %3935 = vmatprep.mubr.f32.mxu0 %v12340_v2 }
 0x3f9   : > { %8178 = vmatmul.mubr.msk.f32.vlgmr.msra.gmra.mxu1 %vm2775_vm11, %v8174_v47  ;;  %3902 = vmatpush1.msra.mxu0 %v3846_v51 }
 0x3fa   : > { %3795 = vmatprep.mubr.f32.mxu1 %v12340_v2 }
 0x3fb   : > { %8186 = vmatmul.mubr.msk.f32.vlgmr.msra.gmra.mxu0 %vm2775_vm11, %v8182_v6 }
 0x3fc   : > { %3941 = vmatprep.mubr.f32.mxu0 %v12340_v2 }
 0x3fd   : > { %8179 = vmatmul.mubr.msk.f32.gmra.mxu1 %vm2775_vm11, %v8175_v56 }
 0x3fe   : > { %3801 = vmatprep.mubr.f32.mxu1 %v12340_v2 }
 0x3ff   : > { %8187 = vmatmul.mubr.msk.f32.gmra.mxu0 %vm2775_vm11, %v8183_v36 }
 0x400   : > { %3947 = vmatprep.mubr.f32.mxu0 %v12340_v2 }
 0x401   : > { %8180 = vmatmul.mubr.msk.f32.gmra.mxu1 %vm2775_vm11, %v8176_v57 }
 0x402   : > { %3807 = vmatprep.mubr.f32.mxu1 %v12340_v2 }
 0x403   : > { %8188 = vmatmul.mubr.msk.f32.gmra.mxu0 %vm2775_vm11, %v8184_v29 }
 0x404   : > { %3953 = vmatprep.mubr.f32.mxu0 %v12340_v2 }
 0x405   : > { %8181 = vmatmul.mubr.msk.f32.gmra.mxu1 %vm2775_vm11, %v8177_v23 }
 0x406   : > { %4157 = vmatprep.mubr.f32.mxu1 %v12340_v2 }
 0x407   : > { %8189 = vmatmul.mubr.msk.f32.gmra.mxu0 %vm2775_vm11, %v8185_v59 }
 0x408   : > { %4258 = vmatprep.mubr.f32.mxu0 %v12340_v2 }
 0x476   : > { %v2854_v15 = vpop.f32.mrf.mxu0 }
 0x478   : > { %v2856_v60 = vpop.f32.mrf.mxu0 }
 0x47a   : > { %v2860_v17 = vpop.f32.mrf.mxu0 }
 0x47c   : > { %v9962_v39 = vpop.f32.mrf.mxu0 }
 0x47e   : > { %v9964_v5 = vpop.f32.mrf.mxu0 }
 0x480   : > { %v9966_v58 = vpop.f32.mrf.mxu0 }
 0x483   : > { %v2872_v27 = vpop.f32.mrf.mxu0  ;;  %v2955_v13 = vpop.f32.mrf.mxu1 }
 0x484   : > { %v2956_v59 = vadd.f32 %v2955_v13, %v2854_v15 }
 0x485   : > { %v9968_v41 = vpop.f32.mrf.mxu0  ;;  %v2957_v12 = vpop.f32.mrf.mxu1 }
 0x487   : > { %v2961_v28 = vpop.f32.mrf.mxu1 }
 0x488   : > { %v3093_v14 = vpop.f32.mrf.mxu0  ;;  %v2962_v15 = vadd.f32 %v2961_v28, %v2860_v17 }
 0x489   : > { %v2963_v9 = vpop.f32.mrf.mxu1 }
 0x48a   : > { %v3095_v52 = vpop.f32.mrf.mxu0 }
 0x48b   : > { %v9970_v22 = vpop.f32.mrf.mxu1 }
 0x48c   : > { %v3099_v55 = vpop.f32.mrf.mxu0 }
 0x48d   : > { %v9972_v38 = vpop.f32.mrf.mxu1 }
 0x48e   : > { %v3101_v3 = vpop.f32.mrf.mxu0 }
 0x48f   : > { %v2973_v35 = vpop.f32.mrf.mxu1 }
 0x490   : > { %v2974_v10 = vadd.f32 %v2973_v35, %v2872_v27  ;;  %v9974_v11 = vpop.f32.mrf.mxu0 }
 0x491   : > { %v9978_v48 = vpop.f32.mrf.mxu1 }
 0x492   : > { %v9976_v42 = vpop.f32.mrf.mxu0 }
 0x494   : > { %v3111_v34 = vpop.f32.mrf.mxu0 }
 0x495   : > { %v3122_v45 = vadd.f32 %v3111_v34, %v2974_v10  ;;  %v2958_v10 = vadd.f32 %v2957_v12, %v2856_v60  ;;  %v3116_v34 = vadd.f32 %v3093_v14, %v2956_v59  ;;  %v10006_v14 = vpop.permute.xlu0 %3984 }
 0x496   : > { %v9980_v46 = vpop.f32.mrf.mxu0 }
 0x497   : > { %v3117_v1 = vadd.f32 %v3095_v52, %v2958_v10  ;;  %v2964_v52 = vadd.f32 %v2963_v9, %v9962_v39 }
 0x498   : > { %v3239_v0 = vpop.f32.mrf.mxu1  ;;  %v3353_v40 = vpop.f32.mrf.mxu0 }
 0x499   : > { %v3262_v4 = vadd.f32 %v3239_v0, %v3116_v34  ;;  %v3975_v9 = vpop.permute.xlu0 %3974 }
 0x49a   : > { %v3241_v31 = vpop.f32.mrf.mxu1  ;;  %v3355_v26 = vpop.f32.mrf.mxu0 }
 0x49c   : > { %v3245_v37 = vpop.f32.mrf.mxu1  ;;  %v3359_v33 = vpop.f32.mrf.mxu0 }
 0x49e   : > { %v3247_v20 = vpop.f32.mrf.mxu1  ;;  %v3361_v63 = vpop.f32.mrf.mxu0 }
 0x4a0   : > { %v9982_v32 = vpop.f32.mrf.mxu1 }
 0x4a1   : > { %v9984_v50 = vpop.f32.mrf.mxu0 }
 0x4a2   : > { %v9986_v7 = vpop.f32.mrf.mxu1 }
 0x4a3   : > { %v9988_v51 = vpop.f32.mrf.mxu0 }
 0x4a4   : > { %v3257_v47 = vpop.f32.mrf.mxu1 }
 0x4a5   : > { %v3268_v6 = vadd.f32 %v3257_v47, %v3122_v45  ;;  %v3263_v45 = vadd.f32 %v3241_v31, %v3117_v1  ;;  %v3118_v1 = vadd.f32 %v3099_v55, %v2962_v15 }
 0x4a6   : > { %v9990_v56 = vpop.f32.mrf.mxu1 }
 0x4a7   : > { %v3371_v36 = vpop.f32.mrf.mxu0  ;;  %v3377_v13 = vadd.f32 %v3355_v26, %v3263_v45  ;;  %v3264_v59 = vadd.f32 %v3245_v37, %v3118_v1  ;;  %v2968_v1 = vadd.f32 %v9970_v22, %v9964_v5 }
 0x4a8   : > { %v9992_v57 = vadd.f32 %v3371_v36, %v3268_v6  ;;  %v3499_v29 = vpop.f32.mrf.mxu1  ;;  %v3376_v6 = vadd.f32 %v3353_v40, %v3262_v4  ;;  %v3119_v40 = vadd.f32 %v3101_v3, %v2964_v52 }
 0x4a9   : > { %v9994_v23 = vpop.f32.mrf.mxu0  ;;  %v3378_v44 = vadd.f32 %v3359_v33, %v3264_v59 }
 0x4aa   : > { %v3501_v27 = vpop.f32.mrf.mxu1  ;;  %v3522_v21 = vadd.f32 %v3499_v29, %v3376_v6  ;;  %v3265_v26 = vadd.f32 %v3247_v20, %v3119_v40 }
 0x4ab   : > { %v3645_v35 = vpop.f32.mrf.mxu0  ;;  %v3523_v0 = vadd.f32 %v3501_v27, %v3377_v13 }
 0x4ac   : > { %v3505_v54 = vpop.f32.mrf.mxu1  ;;  %v3668_v10 = vadd.f32 %v3645_v35, %v3522_v21  ;;  %v3379_v27 = vadd.f32 %v3361_v63, %v3265_v26 }
 0x4ad   : > { %v3647_v53 = vpop.f32.mrf.mxu0  ;;  %v3524_v15 = vadd.f32 %v3505_v54, %v3378_v44 }
 0x4ae   : > { %v3507_v30 = vpop.f32.mrf.mxu1  ;;  %v3669_v29 = vadd.f32 %v3647_v53, %v3523_v0 }
 0x4af   : > { %v3651_v49 = vpop.f32.mrf.mxu0  ;;  %v3525_v37 = vadd.f32 %v3507_v30, %v3379_v27 }
 0x4b0   : > { %v9996_v47 = vpop.f32.mrf.mxu1  ;;  %v3670_v52 = vadd.f32 %v3651_v49, %v3524_v15  ;;  %v3120_v49 = vadd.f32 %v9974_v11, %v2968_v1 }
 0x4b1   : > { %v3653_v25 = vpop.f32.mrf.mxu0 }
 0x4b2   : > { %v9998_v36 = vpop.f32.mrf.mxu1  ;;  %v3671_v63 = vadd.f32 %v3653_v25, %v3525_v37  ;;  %v3266_v25 = vadd.f32 %v9982_v32, %v3120_v49 }
 0x4b3   : > { %v10000_v61 = vpop.f32.mrf.mxu0 }
 0x4b5   : > { %v10002_v60 = vpop.f32.mrf.mxu1  ;;  %v10004_v12 = vpop.f32.mrf.mxu0 }
 0x4b7   : > { %v10009_v31 = vpop.f32.mrf.mxu1  ;;  %v10011_v4 = vpop.f32.mrf.mxu0 }
 0x4b9   : > { %v10013_v17 = vpop.f32.mrf.mxu0  ;;  %v3791_v28 = vpop.f32.mrf.mxu1 }
 0x4ba   : > { %v3814_v34 = vadd.f32 %v3791_v28, %v3668_v10 }
 0x4bb   : > { %v3793_v45 = vpop.f32.mrf.mxu1  ;;  %v3937_v6 = vpop.f32.mrf.mxu0 }
 0x4bc   : > { %v3815_v43 = vadd.f32 %v3793_v45, %v3669_v29  ;;  %v3960_v39 = vadd.f32 %v3937_v6, %v3814_v34 }
 0x4bd   : > { %v3939_v55 = vpop.f32.mrf.mxu0  ;;  %v3797_v3 = vpop.f32.mrf.mxu1 }
 0x4be   : > { %v3992_v13 = vadd.f32 %v3975_v9, %v3960_v39  ;;  %v3961_v62 = vadd.f32 %v3939_v55, %v3815_v43  ;;  %v3816_v44 = vadd.f32 %v3797_v3, %v3670_v52  ;;  %v10025_v43 = vpop.permute.xlu1 %3989 }
 0x4bf   : > { %v3799_v53 = vpop.f32.mrf.mxu1  ;;  %v3943_v33 = vpop.f32.mrf.mxu0 }
 0x4c0   : > { %v10015_v21 = vmax.f32 %v3992_v13, 0.0  ;;  %v3993_v35 = vadd.f32 %v3975_v9, %v3961_v62  ;;  %v2970_v62 = vadd.f32 %v9972_v38, %v9966_v58  ;;  %v3817_v30 = vadd.f32 %v3799_v53, %v3671_v63 }
 0x4c1   : > { %v3945_v54 = vpop.f32.mrf.mxu0  ;;  %v3962_v5 = vadd.f32 %v3943_v33, %v3816_v44  ;;  %v3380_v38 = vadd.f32 %v9984_v50, %v3266_v25 }
 0x4c2   : > { %v10017_v20 = vmax.f32 %v3993_v35, 0.0  ;;  %4044 = vrot.lane.b32.xlu1 %v10015_v21, %s8430_s19  ;;  %v3121_v0 = vadd.f32 %v9976_v42, %v2970_v62  ;;  %v3963_v40 = vadd.f32 %v3945_v54, %v3817_v30  ;;  %v3980_v58 = vpop.permute.xlu1 %3979  ;;  %v5276_v30 = vld [vmem:[%s12259_s9 + $0x18] sm:$0xff] }
 0x4c3   : > { %v3994_v11 = vadd.f32 %v3980_v58, %v3962_v5  ;;  %v3526_v32 = vadd.f32 %v9996_v47, %v3380_v38  ;;  %v3949_v47 = vpop.f32.mrf.mxu0  ;;  %v5274_v5 = vld [vmem:[%s12259_s9 + $0x8] sm:$0xff] }
 0x4c4   : > { %4052 = vrot.lane.b32.xlu0 %v10017_v20, %s8430_s19  ;;  %v3267_v22 = vadd.f32 %v9986_v7, %v3121_v0  ;;  %v3995_v59 = vadd.f32 %v3980_v58, %v3963_v40  ;;  %v3803_v7 = vpop.f32.mrf.mxu1  ;;  %v5275_v0 = vld [vmem:[%s12259_s9 + $0x10] sm:$0xff]  ;;  %v5273_v40 = vld [vmem:[%s12259_s9] sm:$0xff] }
 0x4c5   : > { %v10047_v28 = vmax.f32 %v3994_v11, 0.0  ;;  %v3672_v50 = vadd.f32 %v10000_v61, %v3526_v32  ;;  %v3951_v45 = vpop.f32.mrf.mxu0  ;;  %v2976_v61 = vadd.f32 %v9978_v48, %v9968_v41  ;;  %v3528_v48 = vadd.f32 %v10002_v60, %v9992_v57 }
 0x4c6   : > { %4008 = vrot.lane.b32.xlu1 %v10015_v21, %s8431_s20  ;;  %v3381_v42 = vadd.f32 %v9988_v51, %v3267_v22  ;;  %v10052_v26 = vmax.f32 %v3995_v59, 0.0  ;;  %v3805_v51 = vpop.f32.mrf.mxu1 }
 0x4c7   : > { %v3818_v34 = vadd.f32 %v3803_v7, %v3672_v50  ;;  %v3674_v13 = vadd.f32 %v10011_v4, %v3528_v48  ;;  %v3955_v3 = vpop.f32.mrf.mxu0 }
 0x4c8   : > { %4016 = vrot.lane.b32.xlu0 %v10017_v20, %s8431_s20  ;;  %v3527_v10 = vadd.f32 %v9998_v36, %v3381_v42 }
 0x4c9   : > { %v3964_v6 = vadd.f32 %v3949_v47, %v3818_v34 }
 0x4ca   : > { %4283 = vrot.lane.b32.xlu1 %v10015_v21, %s8432_s21  ;;  %v3673_v29 = vadd.f32 %v10004_v12, %v3527_v10  ;;  %v3123_v12 = vadd.f32 %v9980_v46, %v2976_v61 }
 0x4cb   : > { %v3996_v9 = vadd.f32 %v10006_v14, %v3964_v6 }
 0x4cc   : > { %4291 = vrot.lane.b32.xlu0 %v10017_v20, %s8432_s21  ;;  %v3819_v36 = vadd.f32 %v3805_v51, %v3673_v29  ;;  %v3269_v55 = vadd.f32 %v9990_v56, %v3123_v12  ;;  %v3809_v56 = vpop.f32.mrf.mxu1 }
 0x4cd   : > { %v10075_v15 = vmax.f32 %v3996_v9, 0.0  ;;  %v3820_v60 = vadd.f32 %v3809_v56, %v3674_v13 }
 0x4ce   : > { %4429 = vrot.lane.b32.xlu1 %v10015_v21, %s8433_s22  ;;  %v3965_v39 = vadd.f32 %v3951_v45, %v3819_v36  ;;  %v3383_v41 = vadd.f32 %v9994_v23, %v3269_v55  ;;  %v3811_v23 = vpop.f32.mrf.mxu1 }
 0x4cf   : > { %v3966_v35 = vadd.f32 %v3955_v3, %v3820_v60 }
 0x4d0   : > { %4437 = vrot.lane.b32.xlu0 %v10017_v20, %s8433_s22  ;;  %v3997_v27 = vadd.f32 %v10006_v14, %v3965_v39  ;;  %v3529_v14 = vadd.f32 %v10009_v31, %v3383_v41  ;;  %v3957_v31 = vpop.f32.mrf.mxu0 }
 0x4d1   : > { %v3998_v52 = vadd.f32 %v10025_v43, %v3966_v35 }
 0x4d2   : > { %4046 = vrot.lane.b32.xlu1 %v10047_v28, %s8430_s19  ;;  %v10082_v46 = vmax.f32 %v3997_v27, 0.0  ;;  %v3675_v57 = vadd.f32 %v10013_v17, %v3529_v14 }
 0x4d3   : > { %v10107_v53 = vmax.f32 %v3998_v52, 0.0 }
 0x4d4   : > { %4054 = vrot.lane.b32.xlu0 %v10052_v26, %s8430_s19  ;;  %v3821_v37 = vadd.f32 %v3811_v23, %v3675_v57 }
 0x4d6   : > { %4010 = vrot.lane.b32.xlu1 %v10047_v28, %s8431_s20  ;;  %v3967_v4 = vadd.f32 %v3957_v31, %v3821_v37 }
 0x4d8   : > { %4018 = vrot.lane.b32.xlu0 %v10052_v26, %s8431_s20  ;;  %v3999_v17 = vadd.f32 %v10025_v43, %v3967_v4 }
 0x4da   : > { %4285 = vrot.lane.b32.xlu1 %v10047_v28, %s8432_s21  ;;  %v10111_v33 = vmax.f32 %v3999_v17, 0.0 }
 0x4dc   : > { %4293 = vrot.lane.b32.xlu0 %v10052_v26, %s8432_s21 }
 0x4de   : > { %4431 = vrot.lane.b32.xlu1 %v10047_v28, %s8433_s22 }
 0x4e0   : > { %4439 = vrot.lane.b32.xlu0 %v10052_v26, %s8433_s22 }
 0x4e2   : > { %4048 = vrot.lane.b32.xlu1 %v10075_v15, %s8430_s19 }
 0x4e4   : > { %4056 = vrot.lane.b32.xlu0 %v10082_v46, %s8430_s19 }
 0x4e6   : > { %4012 = vrot.lane.b32.xlu1 %v10075_v15, %s8431_s20 }
 0x4e8   : > { %4020 = vrot.lane.b32.xlu0 %v10082_v46, %s8431_s20 }
 0x4ea   : > { %4287 = vrot.lane.b32.xlu1 %v10075_v15, %s8432_s21 }
 0x4ec   : > { %4295 = vrot.lane.b32.xlu0 %v10082_v46, %s8432_s21 }
 0x4ee   : > { %4433 = vrot.lane.b32.xlu1 %v10075_v15, %s8433_s22 }
 0x4f0   : > { %4441 = vrot.lane.b32.xlu0 %v10082_v46, %s8433_s22 }
 0x4f2   : > { %4693 = vrot.lane.b32.xlu1 %v10075_v15, %s8434_s23 }
 0x4f4   : > { %4701 = vrot.lane.b32.xlu0 %v10082_v46, %s8434_s23 }
 0x4f6   : > { %4050 = vrot.lane.b32.xlu1 %v10107_v53, %s8430_s19 }
 0x4f8   : > { %4058 = vrot.lane.b32.xlu0 %v10111_v33, %s8430_s19 }
 0x4fa   : > { %4691 = vrot.lane.b32.xlu1 %v10047_v28, %s8434_s23 }
 0x4fc   : > { %4699 = vrot.lane.b32.xlu0 %v10052_v26, %s8434_s23 }
 0x4fe   : > { %4014 = vrot.lane.b32.xlu1 %v10107_v53, %s8431_s20 }
 0x500   : > { %4847 = vrot.lane.b32.xlu0 %v10082_v46, %s12338_s24 }
 0x502   : > { %4289 = vrot.lane.b32.xlu1 %v10107_v53, %s8432_s21 }
 0x504   : > { %4022 = vrot.lane.b32.xlu0 %v10111_v33, %s8431_s20 }
 0x506   : > { %4435 = vrot.lane.b32.xlu1 %v10107_v53, %s8433_s22 }
 0x508   : > { %4297 = vrot.lane.b32.xlu0 %v10111_v33, %s8432_s21 }
 0x50a   : > { %4695 = vrot.lane.b32.xlu1 %v10107_v53, %s8434_s23 }
 0x50c   : > { %4697 = vrot.lane.b32.xlu0 %v10017_v20, %s8434_s23 }
 0x50e   : > { %4841 = vrot.lane.b32.xlu1 %v10107_v53, %s12338_s24 }
 0x510   : > { %4845 = vrot.lane.b32.xlu0 %v10052_v26, %s12338_s24 }
 0x512   : > { %4839 = vrot.lane.b32.xlu1 %v10075_v15, %s12338_s24 }
 0x514   : > { %4843 = vrot.lane.b32.xlu0 %v10017_v20, %s12338_s24 }
 0x516   : > { %4689 = vrot.lane.b32.xlu1 %v10015_v21, %s8434_s23 }
 0x518   : > { %4443 = vrot.lane.b32.xlu0 %v10111_v33, %s8433_s22 }
 0x51a   : > { %4837 = vrot.lane.b32.xlu1 %v10047_v28, %s12338_s24 }
 0x51c   : > { %4993 = vrot.lane.b32.xlu0 %v10082_v46, %s12339_s25 }
 0x51e   : > { %4835 = vrot.lane.b32.xlu1 %v10015_v21, %s12338_s24 }
 0x520   : > { %4991 = vrot.lane.b32.xlu0 %v10052_v26, %s12339_s25 }
 0x522   : > { %4987 = vrot.lane.b32.xlu1 %v10107_v53, %s12339_s25 }
 0x524   : > { %4703 = vrot.lane.b32.xlu0 %v10111_v33, %s8434_s23 }
 0x526   : > { %4985 = vrot.lane.b32.xlu1 %v10075_v15, %s12339_s25 }
 0x528   : > { %4849 = vrot.lane.b32.xlu0 %v10111_v33, %s12338_s24 }
 0x52a   : > { %5133 = vrot.lane.b32.xlu1 %v10107_v53, %s8437_s26 }
 0x52c   : > { %5139 = vrot.lane.b32.xlu0 %v10082_v46, %s8437_s26 }
 0x52e   : > { %4983 = vrot.lane.b32.xlu1 %v10047_v28, %s12339_s25 }
 0x530   : > { %4989 = vrot.lane.b32.xlu0 %v10017_v20, %s12339_s25 }
 0x532   : > { %5131 = vrot.lane.b32.xlu1 %v10075_v15, %s8437_s26 }
 0x534   : > { %4995 = vrot.lane.b32.xlu0 %v10111_v33, %s12339_s25  ;;  %v4045_v1 = vpop.permute.xlu1 %4044 }
 0x536   : > { %v4053_v63 = vpop.permute.xlu0 %4052  ;;  %4981 = vrot.lane.b32.xlu1 %v10015_v21, %s12339_s25 }
 0x537   : > { %v4060_v60 = vsel %vm515_vm0, %v4045_v1, %v4053_v63  ;;  %v4064_v31 = vsel %vm515_vm0, %v4053_v63, %v4045_v1 }
 0x538   : > { %5141 = vrot.lane.b32.xlu0 %v10111_v33, %s8437_s26  ;;  %v10181_v44 = vpop.permute.xlu1 %4008 }
 0x53a   : > { %v10183_v43 = vpop.permute.xlu0 %4016  ;;  %5129 = vrot.lane.b32.xlu1 %v10047_v28, %s8437_s26 }
 0x53c   : > { %5137 = vrot.lane.b32.xlu0 %v10052_v26, %s8437_s26  ;;  %v10189_v62 = vpop.permute.xlu1 %4283 }
 0x53e   : > { %v10191_v49 = vpop.permute.xlu0 %4291  ;;  %5127 = vrot.lane.b32.xlu1 %v10015_v21, %s8437_s26 }
 0x540   : > { %5135 = vrot.lane.b32.xlu0 %v10017_v20, %s8437_s26  ;;  %v10200_v54 = vpop.permute.xlu1 %4429 }
 0x542   : > { %v10205_v25 = vpop.permute.xlu0 %4437  ;;  %5294 = vperm.xlu1 %8419, %v5276_v30   ;;  %v4069_v30 = vmul.f32 %v4060_v60, %v8601_v19 }
 0x544   : > { %5289 = vperm.xlu0 %8418, %v5275_v0   ;;  %v4047_v22 = vpop.permute.xlu1 %4046  ;;  %v4068_v0 = vmul.f32 %v4064_v31, %v8598_v18  ;;  %v12355_v31 = vld [vmem:[#allocation3_spill] sm:$0xff] }
 0x546   : > { %v4055_v58 = vpop.permute.xlu0 %4054  ;;  %5284 = vperm.xlu1 %8419, %v5274_v5   ;;  %v8190_v5 = vld [vmem:[%s12258_s8 + $0x20] sm:$0xff] }
 0x547   : > { %v4061_v13 = vsel %vm515_vm0, %v4047_v22, %v4055_v58  ;;  %v4065_v23 = vsel %vm515_vm0, %v4055_v58, %v4047_v22 }
 0x548   : > { %5279 = vperm.xlu0 %8418, %v5273_v40   ;;  %v4011_v38 = vpop.permute.xlu1 %4010  ;;  %v4071_v4 = vmul.f32 %v4061_v13, %v8601_v19  ;;  %v4070_v52 = vmul.f32 %v4065_v23, %v8598_v18  ;;  %v12354_v23 = vld [vmem:[#allocation6_spill] sm:$0xff] }
 0x54a   : > { %v4019_v11 = vpop.permute.xlu0 %4018 }
 0x54c   : > { %v10213_v42 = vpop.permute.xlu1 %4285 }
 0x54e   : > { %v10215_v32 = vpop.permute.xlu0 %4293 }
 0x550   : > { %v10217_v59 = vpop.permute.xlu1 %4431 }
 0x552   : > { %v10219_v7 = vpop.permute.xlu0 %4439 }
 0x554   : > { %v4049_v10 = vpop.permute.xlu1 %4048 }
 0x556   : > { %v4057_v50 = vpop.permute.xlu0 %4056 }
 0x557   : > { %v4062_v9 = vsel %vm515_vm0, %v4049_v10, %v4057_v50  ;;  %v4066_v41 = vsel %vm515_vm0, %v4057_v50, %v4049_v10  ;;  %v8191_v10 = vld [vmem:[%s12258_s8 + $0x28] sm:$0xff] }
 0x558   : > { %v4013_v51 = vpop.permute.xlu1 %4012  ;;  %v4073_v57 = vmul.f32 %v4062_v9, %v8601_v19  ;;  %v4072_v37 = vmul.f32 %v4066_v41, %v8598_v18  ;;  %v4029_v41 = vsel %vm493_vm1, %v4019_v11, %v4011_v38 }
 0x55a   : > { %v4021_v47 = vpop.permute.xlu0 %4020 }
 0x55b   : > { %v4026_v22 = vsel %vm493_vm1, %v4013_v51, %v4021_v47  ;;  %v4030_v50 = vsel %vm493_vm1, %v4021_v47, %v4013_v51 }
 0x55c   : > { %v10221_v29 = vpop.permute.xlu1 %4287  ;;  %v4037_v51 = vmul.f32 %v4026_v22, %v12341_v24  ;;  %v4036_v47 = vmul.f32 %v4030_v50, %v8592_v16  ;;  %v8193_v22 = vld [vmem:[%s12258_s8 + $0x38] sm:$0xff] }
 0x55e   : > { %v10223_v34 = vpop.permute.xlu0 %4295 }
 0x560   : > { %v10225_v36 = vpop.permute.xlu1 %4433 }
 0x562   : > { %v10227_v45 = vpop.permute.xlu0 %4441 }
 0x564   : > { %v10229_v6 = vpop.permute.xlu1 %4693 }
 0x566   : > { %v10231_v61 = vpop.permute.xlu0 %4701 }
 0x568   : > { %v4051_v39 = vpop.permute.xlu1 %4050 }
 0x56a   : > { %v4059_v12 = vpop.permute.xlu0 %4058 }
 0x56b   : > { %v4063_v55 = vsel %vm515_vm0, %v4051_v39, %v4059_v12  ;;  %v4067_v27 = vsel %vm515_vm0, %v4059_v12, %v4051_v39 }
 0x56c   : > { %v4074_v48 = vmul.f32 %v4067_v27, %v8598_v18  ;;  %v10242_v56 = vpop.permute.xlu1 %4691  ;;  %v4075_v14 = vmul.f32 %v4063_v55, %v8601_v19  ;;  %v4025_v55 = vsel %vm493_vm1, %v4011_v38, %v4019_v11  ;;  %v4024_v27 = vsel %vm493_vm1, %v10181_v44, %v10183_v43  ;;  %v8192_v38 = vld [vmem:[%s12258_s8 + $0x30] sm:$0xff] }
 0x56d   : > { %v4301_v11 = vsel %vm718_vm2, %v10221_v29, %v10223_v34 }
 0x56e   : > { %v10249_v3 = vpop.permute.xlu0 %4699  ;;  %4117 = vmatprep.subr.mxu1 %v4075_v14 }
 0x56f   : > { %4118 = vmatpush1.msra.mxu1 %v4074_v48 }
 0x570   : > { %4119 = vmatprep.subr.mxu1 %v4073_v57  ;;  %v4015_v35 = vpop.permute.xlu1 %4014 }
 0x571   : > { %4120 = vmatpush1.msra.mxu1 %v4072_v37  ;;  %v4035_v37 = vmul.f32 %v4025_v55, %v12341_v24  ;;  %v8202_v55 = vld [vmem:[%s12258_s8 + $0x40] sm:$0xff] }
 0x572   : > { %v10259_v17 = vpop.permute.xlu0 %4847  ;;  %4121 = vmatprep.subr.mxu1 %v4071_v4  ;;  %v4028_v4 = vsel %vm493_vm1, %v10183_v43, %v10181_v44  ;;  %v4300_v44 = vsel %vm718_vm2, %v10213_v42, %v10215_v32  ;;  %v4312_v43 = vmul.f32 %v4301_v11, %v12355_v31 }
 0x573   : > { %4122 = vmatpush1.msra.mxu1 %v4070_v52  ;;  %v4034_v52 = vmul.f32 %v4029_v41, %v8592_v16 }
 0x574   : > { %4123 = vmatprep.subr.mxu1 %v4069_v30  ;;  %v4290_v1 = vpop.permute.xlu1 %4289  ;;  %v4305_v30 = vsel %vm718_vm2, %v10223_v34, %v10221_v29  ;;  %v4304_v29 = vsel %vm718_vm2, %v10215_v32, %v10213_v42  ;;  %v4303_v42 = vsel %vm718_vm2, %v10191_v49, %v10189_v62 }
 0x575   : > { %4124 = vmatpush1.msra.mxu1 %v4068_v0  ;;  %v4311_v34 = vmul.f32 %v4305_v30, %v12354_v23  ;;  %v4309_v50 = vmul.f32 %v4304_v29, %v12354_v23  ;;  %v4707_v29 = vsel %vm1044_vm6, %v10229_v6, %v10231_v61 }
 0x576   : > { %v4023_v63 = vpop.permute.xlu0 %4022  ;;  %8194 = vmatmul.mubr.msk.f32.vlgmr.msra.gmra.mxu1 %vm2775_vm11, %v8190_v5  ;;  %v4033_v5 = vmul.f32 %v4024_v27, %v12341_v24 }
 0x577   : > { %v4027_v40 = vsel %vm493_vm1, %v4015_v35, %v4023_v63  ;;  %v4031_v58 = vsel %vm493_vm1, %v4023_v63, %v4015_v35  ;;  %4163 = vmatprep.mubr.f32.mxu1 %v12340_v2 }
 0x578   : > { %v4038_v39 = vmul.f32 %v4031_v58, %v8592_v16  ;;  %v10280_v12 = vpop.permute.xlu1 %4435  ;;  %v4039_v9 = vmul.f32 %v4027_v40, %v12341_v24  ;;  %v4040_v40 = vld [vmem:[%s12258_s8] sm:$0xff]  ;;  %v4299_v58 = vsel %vm718_vm2, %v10189_v62, %v10191_v49  ;;  %v4041_v62 = vld [vmem:[%s12258_s8 + $0x8] sm:$0xff]  ;;  %v4307_v49 = vmul.f32 %v4303_v42, %v12354_v23 }
 0x57a   : > { %v4298_v48 = vpop.permute.xlu0 %4297  ;;  %8195 = vmatmul.mubr.msk.f32.gmra.mxu1 %vm2775_vm11, %v8191_v10  ;;  %4218 = vmatprep.subr.mxu0 %v4039_v9  ;;  %v4310_v10 = vmul.f32 %v4300_v44, %v12355_v31 }
 0x57b   : > { %v4302_v14 = vsel %vm718_vm2, %v4290_v1, %v4298_v48  ;;  %v4306_v13 = vsel %vm718_vm2, %v4298_v48, %v4290_v1  ;;  %4219 = vmatpush1.msra.mxu0 %v4038_v39  ;;  %4169 = vmatprep.mubr.f32.mxu1 %v12340_v2  ;;  %v4032_v1 = vmul.f32 %v4028_v4, %v8592_v16  ;;  %v4042_v48 = vld [vmem:[%s12258_s8 + $0x10] sm:$0xff] }
 0x57c   : > { %v4313_v57 = vmul.f32 %v4306_v13, %v12354_v23  ;;  %4220 = vmatprep.subr.mxu0 %v4037_v51  ;;  %v10307_v60 = vpop.permute.xlu1 %4695  ;;  %v4314_v35 = vmul.f32 %v4302_v14, %v12355_v31  ;;  %v4308_v39 = vmul.f32 %v4299_v58, %v12355_v31  ;;  %v8203_v51 = vld [vmem:[%s12258_s8 + $0x48] sm:$0xff]  ;;  %v12356_v14 = vld [vmem:[#allocation5_spill] sm:$0xff]  ;;  %v12358_v58 = vld [vmem:[#allocation8_spill] sm:$0xff] }
 0x57d   : > { %4221 = vmatpush1.msra.mxu0 %v4036_v47 }
 0x57e   : > { %v10320_v0 = vpop.permute.xlu0 %4697  ;;  %8196 = vmatmul.mubr.msk.f32.gmra.mxu1 %vm2775_vm11, %v8192_v38  ;;  %4222 = vmatprep.subr.mxu0 %v4035_v37  ;;  %v4447_v38 = vsel %vm834_vm5, %v10225_v36, %v10227_v45 }
 0x57f   : > { %4356 = vmatprep.subr.mxu1 %v4314_v35  ;;  %4223 = vmatpush1.msra.mxu0 %v4034_v52  ;;  %v4445_v35 = vsel %vm834_vm5, %v10200_v54, %v10205_v25 }
 0x580   : > { %4357 = vmatpush1.msra.mxu1 %v4313_v57  ;;  %4224 = vmatprep.subr.mxu0 %v4033_v5  ;;  %v10335_v63 = vpop.permute.xlu1 %4841  ;;  %v4451_v57 = vsel %vm834_vm5, %v10227_v45, %v10225_v36  ;;  %v4450_v36 = vsel %vm834_vm5, %v10219_v7, %v10217_v59  ;;  %v4454_v5 = vmul.f32 %v4445_v35, %v12356_v14 }
 0x581   : > { %4358 = vmatprep.subr.mxu1 %v4312_v43  ;;  %4175 = vmatprep.mubr.f32.mxu1 %v12340_v2 }
 0x582   : > { %4225 = vmatpush1.msra.mxu0 %v4032_v1  ;;  %4359 = vmatpush1.msra.mxu1 %v4311_v34  ;;  %v10352_v32 = vpop.permute.xlu0 %4845 }
 0x583   : > { %8197 = vmatmul.mubr.msk.f32.gmra.mxu1 %vm2775_vm11, %v8193_v22  ;;  %8198 = vmatmul.mubr.msk.f32.vlgmr.msra.gmra.mxu0 %vm2775_vm11, %v4040_v40  ;;  %v4711_v40 = vsel %vm1044_vm6, %v10231_v61, %v10229_v6  ;;  %v8219_v6 = vld [vmem:[%s12258_s8 + $0x88] sm:$0xff]  ;;  %v4710_v61 = vsel %vm1044_vm6, %v10249_v3, %v10242_v56 }
 0x584   : > { %4360 = vmatprep.subr.mxu1 %v4310_v10  ;;  %v10359_v9 = vpop.permute.xlu1 %4839  ;;  %4264 = vmatprep.mubr.f32.mxu0 %v12340_v2 }
 0x585   : > { %4361 = vmatpush1.msra.mxu1 %v4309_v50  ;;  %4396 = vmatprep.mubr.f32.mxu1 %v12340_v2  ;;  %v12359_v50 = vld [vmem:[#allocation7_spill] sm:$0xff] }
 0x586   : > { %4362 = vmatprep.subr.mxu1 %v4308_v39  ;;  %v10370_v27 = vpop.permute.xlu0 %4843 }
 0x587   : > { %4363 = vmatpush1.msra.mxu1 %v4307_v49  ;;  %8199 = vmatmul.mubr.msk.f32.gmra.mxu0 %vm2775_vm11, %v4041_v62  ;;  %v4717_v49 = vmul.f32 %v4707_v29, %v12358_v58 }
 0x588   : > { %8206 = vmatmul.mubr.msk.f32.vlgmr.msra.gmra.mxu1 %vm2775_vm11, %v8202_v55  ;;  %4616 = vmatprep.subr.mxu1 %v10111_v33  ;;  %v10375_v41 = vpop.permute.xlu1 %4689 }
 0x589   : > { %4617 = vmatpush1.msra.mxu1 %v10107_v53  ;;  %4270 = vmatprep.mubr.f32.mxu0 %v12340_v2 }
 0x58a   : > { %4618 = vmatprep.subr.mxu1 %v10082_v46  ;;  %4402 = vmatprep.mubr.f32.mxu1 %v12340_v2  ;;  %v4444_v47 = vpop.permute.xlu0 %4443 }
 0x58b   : > { %4619 = vmatpush1.msra.mxu1 %v10075_v15  ;;  %v4448_v33 = vsel %vm834_vm5, %v10280_v12, %v4444_v47  ;;  %v4452_v53 = vsel %vm834_vm5, %v4444_v47, %v10280_v12  ;;  %8200 = vmatmul.mubr.msk.f32.gmra.mxu0 %vm2775_vm11, %v4042_v48  ;;  %v4043_v15 = vld [vmem:[%s12258_s8 + $0x18] sm:$0xff]  ;;  %v12357_v12 = vld [vmem:[#allocation4_spill] sm:$0xff]  ;;  %v4706_v47 = vsel %vm1044_vm6, %v10242_v56, %v10249_v3 }
 0x58c   : > { %8207 = vmatmul.mubr.msk.f32.gmra.mxu1 %vm2775_vm11, %v8203_v51  ;;  %4620 = vmatprep.subr.mxu1 %v10052_v26  ;;  %v10397_v46 = vpop.permute.xlu1 %4837  ;;  %v4460_v13 = vmul.f32 %v4448_v33, %v12356_v14  ;;  %v4459_v11 = vmul.f32 %v4452_v53, %v12357_v12  ;;  %v8204_v26 = vld [vmem:[%s12258_s8 + $0x50] sm:$0xff]  ;;  %v4455_v30 = vmul.f32 %v4450_v36, %v12357_v12 }
 0x58d   : > { %4621 = vmatpush1.msra.mxu1 %v10047_v28  ;;  %4276 = vmatprep.mubr.f32.mxu0 %v12340_v2  ;;  %v4446_v28 = vsel %vm834_vm5, %v10217_v59, %v10219_v7  ;;  %v8205_v59 = vld [vmem:[%s12258_s8 + $0x58] sm:$0xff]  ;;  %v4449_v7 = vsel %vm834_vm5, %v10205_v25, %v10200_v54  ;;  %v8210_v54 = vld [vmem:[%s12258_s8 + $0x60] sm:$0xff]  ;;  %v4718_v51 = vmul.f32 %v4711_v40, %v12359_v50  ;;  %v12360_v33 = vld [vmem:[#allocation12_spill] sm:$0xff] }
 0x58e   : > { %4622 = vmatprep.subr.mxu1 %v10017_v20  ;;  %4408 = vmatprep.mubr.f32.mxu1 %v12340_v2  ;;  %v10419_v37 = vpop.permute.xlu0 %4993  ;;  %v4458_v20 = vmul.f32 %v4447_v38, %v12356_v14  ;;  %v4456_v52 = vmul.f32 %v4446_v28, %v12356_v14  ;;  %v4453_v43 = vmul.f32 %v4449_v7, %v12357_v12  ;;  %v8218_v25 = vld [vmem:[%s12258_s8 + $0x80] sm:$0xff]  ;;  %v8212_v3 = vld [vmem:[%s12258_s8 + $0x70] sm:$0xff] }
 0x58f   : > { %4623 = vmatpush1.msra.mxu1 %v10015_v21  ;;  %8201 = vmatmul.mubr.msk.f32.gmra.mxu0 %vm2775_vm11, %v4043_v15  ;;  %v4457_v21 = vmul.f32 %v4451_v57, %v12357_v12  ;;  %v4709_v56 = vsel %vm1044_vm6, %v10320_v0, %v10375_v41  ;;  %v8220_v28 = vld [vmem:[%s12258_s8 + $0x90] sm:$0xff]  ;;  %v4715_v36 = vmul.f32 %v4706_v47, %v12358_v58  ;;  %v12362_v40 = vld [vmem:[#allocation10_spill] sm:$0xff] }
 0x590   : > { %8208 = vmatmul.mubr.msk.f32.gmra.mxu1 %vm2775_vm11, %v8204_v26  ;;  %4502 = vmatprep.subr.mxu0 %v4460_v13  ;;  %v10433_v45 = vpop.permute.xlu1 %4835  ;;  %v12361_v13 = vld [vmem:[#allocation9_spill] sm:$0xff]  ;;  %v4705_v26 = vsel %vm1044_vm6, %v10375_v41, %v10320_v0  ;;  %v4856_v0 = vsel %vm1160_vm7, %v10352_v32, %v10397_v46  ;;  %v4714_v41 = vmul.f32 %v4709_v56, %v12359_v50 }
 0x591   : > { %4503 = vmatpush1.msra.mxu0 %v4459_v11  ;;  %4414 = vmatprep.mubr.f32.mxu1 %v12340_v2  ;;  %v4716_v11 = vmul.f32 %v4710_v61, %v12359_v50 }
 0x592   : > { %4504 = vmatprep.subr.mxu0 %v4458_v20  ;;  %v10448_v4 = vpop.permute.xlu0 %4991  ;;  %4542 = vmatprep.mubr.f32.mxu0 %v12340_v2  ;;  %v4853_v20 = vsel %vm1160_vm7, %v10359_v9, %v10259_v17 }
 0x593   : > { %4505 = vmatpush1.msra.mxu0 %v4457_v21  ;;  %v4863_v7 = vmul.f32 %v4853_v20, %v12360_v33 }
 0x594   : > { %8209 = vmatmul.mubr.msk.f32.gmra.mxu1 %vm2775_vm11, %v8205_v59  ;;  %4506 = vmatprep.subr.mxu0 %v4456_v52  ;;  %v10455_v44 = vpop.permute.xlu1 %4987  ;;  %v4713_v59 = vmul.f32 %v4705_v26, %v12358_v58  ;;  %v4855_v52 = vsel %vm1160_vm7, %v10370_v27, %v10433_v45 }
 0x595   : > { %4507 = vmatpush1.msra.mxu0 %v4455_v30  ;;  %4656 = vmatprep.mubr.f32.mxu1 %v12340_v2 }
 0x596   : > { %4508 = vmatprep.subr.mxu0 %v4454_v5  ;;  %v4704_v1 = vpop.permute.xlu0 %4703 }
 0x597   : > { %4509 = vmatpush1.msra.mxu0 %v4453_v43  ;;  %v4708_v34 = vsel %vm1044_vm6, %v10307_v60, %v4704_v1  ;;  %v4712_v22 = vsel %vm1044_vm6, %v4704_v1, %v10307_v60  ;;  %v8211_v60 = vld [vmem:[%s12258_s8 + $0x68] sm:$0xff]  ;;  %v8221_v43 = vld [vmem:[%s12258_s8 + $0x98] sm:$0xff] }
 0x598   : > { %v4719_v42 = vmul.f32 %v4708_v34, %v12358_v58  ;;  %8214 = vmatmul.mubr.msk.f32.vlgmr.msra.gmra.mxu0 %vm2775_vm11, %v8210_v54  ;;  %8222 = vmatmul.mubr.msk.f32.vlgmr.msra.gmra.mxu1 %vm2775_vm11, %v8218_v25  ;;  %v10482_v10 = vpop.permute.xlu1 %4985  ;;  %v4720_v39 = vmul.f32 %v4712_v22, %v12359_v50 }
 0x599   : > { %4548 = vmatprep.mubr.f32.mxu0 %v12340_v2  ;;  %4662 = vmatprep.mubr.f32.mxu1 %v12340_v2  ;;  %v5003_v29 = vsel %vm1276_vm8, %v10419_v37, %v10482_v10 }
 0x59a   : > { %v4850_v62 = vpop.permute.xlu0 %4849  ;;  %4762 = vmatprep.subr.mxu0 %v4720_v39  ;;  %v8234_v39 = vld [vmem:[%s12258_s8 + $0xc0] sm:$0xff] }
 0x59b   : > { %v4854_v55 = vsel %vm1160_vm7, %v10335_v63, %v4850_v62  ;;  %v4858_v48 = vsel %vm1160_vm7, %v4850_v62, %v10335_v63  ;;  %4763 = vmatpush1.msra.mxu0 %v4719_v42  ;;  %v4857_v63 = vsel %vm1160_vm7, %v10259_v17, %v10359_v9  ;;  %v4852_v17 = vsel %vm1160_vm7, %v10397_v46, %v10352_v32  ;;  %v8213_v9 = vld [vmem:[%s12258_s8 + $0x78] sm:$0xff] }
 0x59c   : > { %v4865_v53 = vmul.f32 %v4854_v55, %v12360_v33  ;;  %8215 = vmatmul.mubr.msk.f32.gmra.mxu0 %vm2775_vm11, %v8211_v60  ;;  %8223 = vmatmul.mubr.msk.f32.gmra.mxu1 %vm2775_vm11, %v8219_v6  ;;  %v10512_v15 = vpop.permute.xlu1 %5133  ;;  %v4866_v38 = vmul.f32 %v4858_v48, %v12361_v13  ;;  %v4864_v35 = vmul.f32 %v4857_v63, %v12361_v13  ;;  %v12363_v6 = vld [vmem:[#allocation11_spill] sm:$0xff]  ;;  %v12364_v63 = vld [vmem:[#allocation13_spill] sm:$0xff] }
 0x59d   : > { %4764 = vmatprep.subr.mxu0 %v4718_v51  ;;  %4554 = vmatprep.mubr.f32.mxu0 %v12340_v2  ;;  %v4851_v32 = vsel %vm1160_vm7, %v10433_v45, %v10370_v27  ;;  %v4862_v46 = vmul.f32 %v4856_v0, %v12361_v13  ;;  %v4861_v5 = vmul.f32 %v4852_v17, %v12360_v33  ;;  %v8226_v45 = vld [vmem:[%s12258_s8 + $0xa0] sm:$0xff] }
 0x59e   : > { %4765 = vmatpush1.msra.mxu0 %v4717_v49  ;;  %v10532_v57 = vpop.permute.xlu0 %5139  ;;  %4908 = vmatprep.subr.mxu1 %v4866_v38  ;;  %v4860_v27 = vmul.f32 %v4855_v52, %v12361_v13  ;;  %v4859_v25 = vmul.f32 %v4851_v32, %v12360_v33  ;;  %v4999_v62 = vsel %vm1276_vm8, %v10482_v10, %v10419_v37  ;;  %v8227_v49 = vld [vmem:[%s12258_s8 + $0xa8] sm:$0xff] }
 0x59f   : > { %4766 = vmatprep.subr.mxu0 %v4716_v11  ;;  %4668 = vmatprep.mubr.f32.mxu1 %v12340_v2  ;;  %v5010_v48 = vmul.f32 %v5003_v29, %v12363_v6  ;;  %v5009_v47 = vmul.f32 %v4999_v62, %v12362_v40  ;;  %v12365_v11 = vld [vmem:[#allocation14_spill] sm:$0xff] }
 0x5a0   : > { %8216 = vmatmul.mubr.msk.f32.gmra.mxu0 %vm2775_vm11, %v8212_v3  ;;  %4909 = vmatpush1.msra.mxu1 %v4865_v53  ;;  %v4984_v21 = vpop.permute.xlu1 %4983  ;;  %v8250_v29 = vld [vmem:[%s12258_s8 + $0x100] sm:$0xff] }
 0x5a1   : > { %4767 = vmatpush1.msra.mxu0 %v4715_v36  ;;  %8224 = vmatmul.mubr.msk.f32.gmra.mxu1 %vm2775_vm11, %v8220_v28  ;;  %v4998_v37 = vsel %vm1276_vm8, %v4984_v21, %v10448_v4  ;;  %v8228_v28 = vld [vmem:[%s12258_s8 + $0xb0] sm:$0xff] }
 0x5a2   : > { %4768 = vmatprep.subr.mxu0 %v4714_v41  ;;  %4910 = vmatprep.subr.mxu1 %v4864_v35  ;;  %v4990_v30 = vpop.permute.xlu0 %4989  ;;  %v5007_v36 = vmul.f32 %v4998_v37, %v12362_v40 }
 0x5a3   : > { %4560 = vmatprep.mubr.f32.mxu0 %v12340_v2  ;;  %4769 = vmatpush1.msra.mxu0 %v4713_v59 }
 0x5a4   : > { %4911 = vmatpush1.msra.mxu1 %v4863_v7  ;;  %8217 = vmatmul.mubr.msk.f32.gmra.mxu0 %vm2775_vm11, %v8213_v9  ;;  %v5132_v54 = vpop.permute.xlu1 %5131 }
 0x5a5   : > { %4912 = vmatprep.subr.mxu1 %v4862_v46  ;;  %4674 = vmatprep.mubr.f32.mxu1 %v12340_v2  ;;  %v5145_v20 = vsel %vm1392_vm9, %v5132_v54, %v10532_v57 }
 0x5a6   : > { %4913 = vmatpush1.msra.mxu1 %v4861_v5  ;;  %4802 = vmatprep.mubr.f32.mxu0 %v12340_v2  ;;  %v4996_v1 = vpop.permute.xlu0 %4995  ;;  %v5155_v7 = vmul.f32 %v5145_v20, %v12365_v11  ;;  %v8229_v5 = vld [vmem:[%s12258_s8 + $0xb8] sm:$0xff] }
 0x5a7   : > { %8225 = vmatmul.mubr.msk.f32.gmra.mxu1 %vm2775_vm11, %v8221_v43  ;;  %4914 = vmatprep.subr.mxu1 %v4860_v27  ;;  %v5000_v34 = vsel %vm1276_vm8, %v10455_v44, %v4996_v1  ;;  %v5004_v22 = vsel %vm1276_vm8, %v4996_v1, %v10455_v44  ;;  %v5002_v44 = vsel %vm1276_vm8, %v10448_v4, %v4984_v21  ;;  %v8235_v4 = vld [vmem:[%s12258_s8 + $0xc8] sm:$0xff]  ;;  %v8237_v27 = vld [vmem:[%s12258_s8 + $0xd8] sm:$0xff]  ;;  %v8242_v1 = vld [vmem:[%s12258_s8 + $0xe0] sm:$0xff] }
 0x5a8   : > { %4915 = vmatpush1.msra.mxu1 %v4859_v25  ;;  %v5011_v42 = vmul.f32 %v5000_v34, %v12362_v40  ;;  %8230 = vmatmul.mubr.msk.f32.vlgmr.msra.gmra.mxu0 %vm2775_vm11, %v8226_v45  ;;  %v4982_v60 = vpop.permute.xlu1 %4981  ;;  %v5012_v61 = vmul.f32 %v5004_v22, %v12363_v6  ;;  %v5008_v38 = vmul.f32 %v5002_v44, %v12363_v6  ;;  %v8243_v34 = vld [vmem:[%s12258_s8 + $0xe8] sm:$0xff] }
 0x5a9   : > { %4948 = vmatprep.mubr.f32.mxu1 %v12340_v2  ;;  %4808 = vmatprep.mubr.f32.mxu0 %v12340_v2  ;;  %v5001_v3 = vsel %vm1276_vm8, %v4990_v30, %v4982_v60  ;;  %v4997_v41 = vsel %vm1276_vm8, %v4982_v60, %v4990_v30  ;;  %v8251_v22 = vld [vmem:[%s12258_s8 + $0x108] sm:$0xff]  ;;  %v8245_v60 = vld [vmem:[%s12258_s8 + $0xf8] sm:$0xff] }
 0x5aa   : > { %v5142_v55 = vpop.permute.xlu0 %5141  ;;  %5054 = vmatprep.subr.mxu0 %v5012_v61  ;;  %v5006_v59 = vmul.f32 %v5001_v3, %v12363_v6  ;;  %v5005_v52 = vmul.f32 %v4997_v41, %v12362_v40  ;;  %v8253_v61 = vld [vmem:[%s12258_s8 + $0x118] sm:$0xff] }
 0x5ab   : > { %8238 = vmatmul.mubr.msk.f32.vlgmr.msra.gmra.mxu1 %vm2775_vm11, %v8234_v39  ;;  %v5146_v10 = vsel %vm1392_vm9, %v10512_v15, %v5142_v55  ;;  %v5150_v51 = vsel %vm1392_vm9, %v5142_v55, %v10512_v15  ;;  %5055 = vmatpush1.msra.mxu0 %v5011_v42  ;;  %v5149_v15 = vsel %vm1392_vm9, %v10532_v57, %v5132_v54  ;;  %v8236_v57 = vld [vmem:[%s12258_s8 + $0xd0] sm:$0xff] }
 0x5ac   : > { %8231 = vmatmul.mubr.msk.f32.gmra.mxu0 %vm2775_vm11, %v8227_v49  ;;  %4954 = vmatprep.mubr.f32.mxu1 %v12340_v2  ;;  %v5130_v53 = vpop.permute.xlu1 %5129  ;;  %v5158_v56 = vmul.f32 %v5150_v51, %v12364_v63  ;;  %v5157_v26 = vmul.f32 %v5146_v10, %v12365_v11  ;;  %v5156_v17 = vmul.f32 %v5149_v15, %v12364_v63  ;;  %v8244_v42 = vld [vmem:[%s12258_s8 + $0xf0] sm:$0xff] }
 0x5ad   : > { %5056 = vmatprep.subr.mxu0 %v5010_v48  ;;  %4814 = vmatprep.mubr.f32.mxu0 %v12340_v2  ;;  %v8252_v39 = vld [vmem:[%s12258_s8 + $0x110] sm:$0xff] }
 0x5ae   : > { %5057 = vmatpush1.msra.mxu0 %v5009_v47  ;;  %v5138_v0 = vpop.permute.xlu0 %5137  ;;  %5200 = vmatprep.subr.mxu1 %v5158_v56 }
 0x5af   : > { %8239 = vmatmul.mubr.msk.f32.gmra.mxu1 %vm2775_vm11, %v8235_v4  ;;  %v5144_v35 = vsel %vm1392_vm9, %v5130_v53, %v5138_v0  ;;  %v5148_v21 = vsel %vm1392_vm9, %v5138_v0, %v5130_v53  ;;  %5058 = vmatprep.subr.mxu0 %v5008_v38 }
 0x5b0   : > { %8232 = vmatmul.mubr.msk.f32.gmra.mxu0 %vm2775_vm11, %v8228_v28  ;;  %4960 = vmatprep.mubr.f32.mxu1 %v12340_v2  ;;  %v5154_v9 = vmul.f32 %v5148_v21, %v12364_v63  ;;  %v5153_v30 = vmul.f32 %v5144_v35, %v12365_v11  ;;  %v5128_v32 = vpop.permute.xlu1 %5127 }
 0x5b1   : > { %5059 = vmatpush1.msra.mxu0 %v5007_v36  ;;  %5201 = vmatpush1.msra.mxu1 %v5157_v26 }
 0x5b2   : > { %5060 = vmatprep.subr.mxu0 %v5006_v59  ;;  %5202 = vmatprep.subr.mxu1 %v5156_v17  ;;  %v5136_v46 = vpop.permute.xlu0 %5135 }
 0x5b3   : > { %8240 = vmatmul.mubr.msk.f32.gmra.mxu1 %vm2775_vm11, %v8236_v57  ;;  %4820 = vmatprep.mubr.f32.mxu0 %v12340_v2  ;;  %v5143_v43 = vsel %vm1392_vm9, %v5128_v32, %v5136_v46  ;;  %v5147_v54 = vsel %vm1392_vm9, %v5136_v46, %v5128_v32 }
 0x5b4   : > { %5061 = vmatpush1.msra.mxu0 %v5005_v52  ;;  %5203 = vmatpush1.msra.mxu1 %v5155_v7  ;;  %v5152_v45 = vmul.f32 %v5147_v54, %v12364_v63  ;;  %v5151_v25 = vmul.f32 %v5143_v43, %v12365_v11 }
 0x5b5   : > { %8233 = vmatmul.mubr.msk.f32.gmra.mxu0 %vm2775_vm11, %v8229_v5  ;;  %5204 = vmatprep.subr.mxu1 %v5154_v9 }
 0x5b6   : > { %4966 = vmatprep.mubr.f32.mxu1 %v12340_v2  ;;  %5205 = vmatpush1.msra.mxu1 %v5153_v30 }
 0x5b7   : > { %8241 = vmatmul.mubr.msk.f32.gmra.mxu1 %vm2775_vm11, %v8237_v27  ;;  %5094 = vmatprep.mubr.f32.mxu0 %v12340_v2 }
 0x5b8   : > { %5206 = vmatprep.subr.mxu1 %v5152_v45  ;;  %5240 = vmatprep.mubr.f32.mxu1 %v12340_v2 }
 0x5b9   : > { %8246 = vmatmul.mubr.msk.f32.vlgmr.msra.gmra.mxu0 %vm2775_vm11, %v8242_v1  ;;  %5207 = vmatpush1.msra.mxu1 %v5151_v25 }
 0x5ba   : > { %5100 = vmatprep.mubr.f32.mxu0 %v12340_v2 }
 0x5bb   : > { %8254 = vmatmul.mubr.msk.f32.vlgmr.msra.gmra.mxu1 %vm2775_vm11, %v8250_v29 }
 0x5bc   : > { %5246 = vmatprep.mubr.f32.mxu1 %v12340_v2 }
 0x5bd   : > { %8247 = vmatmul.mubr.msk.f32.gmra.mxu0 %vm2775_vm11, %v8243_v34 }
 0x5be   : > { %5106 = vmatprep.mubr.f32.mxu0 %v12340_v2 }
 0x5bf   : > { %8255 = vmatmul.mubr.msk.f32.gmra.mxu1 %vm2775_vm11, %v8251_v22 }
 0x5c0   : > { %5252 = vmatprep.mubr.f32.mxu1 %v12340_v2 }
 0x5c1   : > { %8248 = vmatmul.mubr.msk.f32.gmra.mxu0 %vm2775_vm11, %v8244_v42 }
 0x5c2   : > { %5112 = vmatprep.mubr.f32.mxu0 %v12340_v2 }
 0x5c3   : > { %8256 = vmatmul.mubr.msk.f32.gmra.mxu1 %vm2775_vm11, %v8252_v39 }
 0x5c4   : > { %5258 = vmatprep.mubr.f32.mxu1 %v12340_v2 }
 0x5c5   : > { %8249 = vmatmul.mubr.msk.f32.gmra.mxu0 %vm2775_vm11, %v8245_v60 }
 0x5c6   : > { %5462 = vmatprep.mubr.f32.mxu0 %v12340_v2 }
 0x5c7   : > { %8257 = vmatmul.mubr.msk.f32.gmra.mxu1 %vm2775_vm11, %v8253_v61 }
 0x5c8   : > { %5563 = vmatprep.mubr.f32.mxu1 %v12340_v2 }
 0x636   : > { %v4159_v62 = vpop.f32.mrf.mxu1 }
 0x638   : > { %v4161_v44 = vpop.f32.mrf.mxu1 }
 0x63a   : > { %v10721_v49 = vpop.f32.mrf.mxu1 }
 0x63c   : > { %v10723_v55 = vpop.f32.mrf.mxu1 }
 0x63e   : > { %v10725_v48 = vpop.f32.mrf.mxu1 }
 0x640   : > { %v10727_v37 = vpop.f32.mrf.mxu1 }
 0x643   : > { %v4177_v10 = vpop.f32.mrf.mxu1  ;;  %v4260_v51 = vpop.f32.mrf.mxu0 }
 0x645   : > { %v4179_v47 = vpop.f32.mrf.mxu1  ;;  %v4262_v4 = vpop.f32.mrf.mxu0 }
 0x647   : > { %v4266_v53 = vpop.f32.mrf.mxu0 }
 0x648   : > { %v4398_v38 = vpop.f32.mrf.mxu1 }
 0x649   : > { %v4268_v56 = vpop.f32.mrf.mxu0 }
 0x64a   : > { %v4400_v15 = vpop.f32.mrf.mxu1 }
 0x64b   : > { %v10729_v3 = vpop.f32.mrf.mxu0 }
 0x64c   : > { %v4404_v26 = vpop.f32.mrf.mxu1 }
 0x64d   : > { %v10731_v28 = vpop.f32.mrf.mxu0 }
 0x64e   : > { %v4406_v36 = vpop.f32.mrf.mxu1 }
 0x64f   : > { %v4278_v20 = vpop.f32.mrf.mxu0 }
 0x650   : > { %v4279_v0 = vadd.f32 %v4278_v20, %v4177_v10  ;;  %v10733_v41 = vpop.f32.mrf.mxu1  ;;  %v4261_v20 = vadd.f32 %v4260_v51, %v4159_v62  ;;  %v4267_v51 = vadd.f32 %v4266_v53, %v10721_v49 }
 0x651   : > { %v4280_v35 = vpop.f32.mrf.mxu0 }
 0x652   : > { %v4281_v21 = vadd.f32 %v4280_v35, %v4179_v47  ;;  %v10735_v57 = vpop.f32.mrf.mxu1 }
 0x654   : > { %v4416_v59 = vpop.f32.mrf.mxu1 }
 0x655   : > { %v4427_v17 = vadd.f32 %v4416_v59, %v4279_v0  ;;  %v4263_v59 = vadd.f32 %v4262_v4, %v4161_v44 }
 0x656   : > { %v4418_v9 = vpop.f32.mrf.mxu1 }
 0x657   : > { %v4428_v7 = vadd.f32 %v4418_v9, %v4281_v21  ;;  %v4421_v9 = vadd.f32 %v4398_v38, %v4261_v20  ;;  %v4422_v6 = vadd.f32 %v4400_v15, %v4263_v59  ;;  %v10760_v15 = vpop.permute.xlu0 %5289 }
 0x658   : > { %v4544_v52 = vpop.f32.mrf.mxu0  ;;  %v4658_v30 = vpop.f32.mrf.mxu1 }
 0x659   : > { %v4567_v40 = vadd.f32 %v4544_v52, %v4421_v9  ;;  %v4423_v52 = vadd.f32 %v4404_v26, %v4267_v51 }
 0x65a   : > { %v4546_v32 = vpop.f32.mrf.mxu0  ;;  %v4660_v46 = vpop.f32.mrf.mxu1 }
 0x65c   : > { %v4550_v5 = vpop.f32.mrf.mxu0  ;;  %v4664_v43 = vpop.f32.mrf.mxu1 }
 0x65d   : > { %v4569_v20 = vadd.f32 %v4550_v5, %v4423_v52  ;;  %v4273_v52 = vadd.f32 %v10729_v3, %v10725_v48 }
 0x65e   : > { %v4552_v54 = vpop.f32.mrf.mxu0  ;;  %v4666_v27 = vpop.f32.mrf.mxu1 }
 0x65f   : > { %v4683_v33 = vadd.f32 %v4664_v43, %v4569_v20 }
 0x660   : > { %v10737_v45 = vpop.f32.mrf.mxu0 }
 0x661   : > { %v10739_v25 = vpop.f32.mrf.mxu1 }
 0x662   : > { %v10741_v1 = vpop.f32.mrf.mxu0 }
 0x663   : > { %v10743_v29 = vpop.f32.mrf.mxu1 }
 0x664   : > { %v4562_v34 = vpop.f32.mrf.mxu0 }
 0x665   : > { %v4573_v22 = vadd.f32 %v4562_v34, %v4427_v17  ;;  %v4568_v34 = vadd.f32 %v4546_v32, %v4422_v6  ;;  %v4269_v6 = vadd.f32 %v4268_v56, %v10723_v55  ;;  %v5280_v56 = vpop.permute.xlu0 %5279 }
 0x666   : > { %v4564_v42 = vpop.f32.mrf.mxu0 }
 0x667   : > { %v4574_v39 = vadd.f32 %v4564_v42, %v4428_v7  ;;  %v4676_v60 = vpop.f32.mrf.mxu1  ;;  %v4681_v42 = vadd.f32 %v4658_v30, %v4567_v40  ;;  %v4424_v30 = vadd.f32 %v4406_v36, %v4269_v6 }
 0x668   : > { %v10745_v61 = vadd.f32 %v4676_v60, %v4573_v22  ;;  %v4804_v10 = vpop.f32.mrf.mxu0 }
 0x669   : > { %v4678_v47 = vpop.f32.mrf.mxu1  ;;  %v4827_v44 = vadd.f32 %v4804_v10, %v4681_v42 }
 0x66a   : > { %v10747_v0 = vadd.f32 %v4678_v47, %v4574_v39  ;;  %v4806_v35 = vpop.f32.mrf.mxu0  ;;  %v4682_v39 = vadd.f32 %v4660_v46, %v4568_v34  ;;  %v4570_v46 = vadd.f32 %v4552_v54, %v4424_v30 }
 0x66b   : > { %v4950_v21 = vpop.f32.mrf.mxu1 }
 0x66c   : > { %v4810_v11 = vpop.f32.mrf.mxu0  ;;  %v4828_v32 = vadd.f32 %v4806_v35, %v4682_v39  ;;  %v4973_v59 = vadd.f32 %v4950_v21, %v4827_v44  ;;  %v4684_v35 = vadd.f32 %v4666_v27, %v4570_v46 }
 0x66d   : > { %v4952_v63 = vpop.f32.mrf.mxu1  ;;  %v4829_v51 = vadd.f32 %v4810_v11, %v4683_v33 }
 0x66e   : > { %v4812_v13 = vpop.f32.mrf.mxu0  ;;  %v4974_v10 = vadd.f32 %v4952_v63, %v4828_v32 }
 0x66f   : > { %v4956_v17 = vpop.f32.mrf.mxu1  ;;  %v4830_v5 = vadd.f32 %v4812_v13, %v4684_v35  ;;  %v4425_v13 = vadd.f32 %v10733_v41, %v4273_v52 }
 0x670   : > { %v10749_v7 = vpop.f32.mrf.mxu0  ;;  %v4975_v6 = vadd.f32 %v4956_v17, %v4829_v51 }
 0x671   : > { %v4958_v22 = vpop.f32.mrf.mxu1  ;;  %v4571_v48 = vadd.f32 %v10737_v45, %v4425_v13 }
 0x672   : > { %v10751_v60 = vpop.f32.mrf.mxu0  ;;  %v4976_v27 = vadd.f32 %v4958_v22, %v4830_v5 }
 0x673   : > { %v10753_v62 = vpop.f32.mrf.mxu1 }
 0x675   : > { %v10756_v4 = vpop.f32.mrf.mxu0  ;;  %v10758_v38 = vpop.f32.mrf.mxu1 }
 0x677   : > { %v10763_v47 = vpop.f32.mrf.mxu0  ;;  %v10765_v40 = vpop.f32.mrf.mxu1 }
 0x679   : > { %v10767_v49 = vpop.f32.mrf.mxu1  ;;  %v5096_v53 = vpop.f32.mrf.mxu0 }
 0x67a   : > { %v5119_v9 = vadd.f32 %v5096_v53, %v4973_v59 }
 0x67b   : > { %v5098_v34 = vpop.f32.mrf.mxu0  ;;  %v5242_v42 = vpop.f32.mrf.mxu1 }
 0x67c   : > { %v5120_v50 = vadd.f32 %v5098_v34, %v4974_v10  ;;  %v5265_v55 = vadd.f32 %v5242_v42, %v5119_v9 }
 0x67d   : > { %v5244_v26 = vpop.f32.mrf.mxu1  ;;  %v5102_v36 = vpop.f32.mrf.mxu0 }
 0x67e   : > { %v5297_v39 = vadd.f32 %v5280_v56, %v5265_v55  ;;  %v5266_v58 = vadd.f32 %v5244_v26, %v5120_v50  ;;  %v5121_v33 = vadd.f32 %v5102_v36, %v4975_v6  ;;  %v10779_v50 = vpop.permute.xlu1 %5294  ;;  %v4833_v26 = vadd.f32 %v10756_v4, %v10745_v61 }
 0x67f   : > { %v5104_v63 = vpop.f32.mrf.mxu0  ;;  %v5248_v43 = vpop.f32.mrf.mxu1 }
 0x680   : > { %v10769_v21 = vmax.f32 %v5297_v39, 0.0  ;;  %v5298_v44 = vadd.f32 %v5280_v56, %v5266_v58  ;;  %v4275_v58 = vadd.f32 %v10731_v28, %v10727_v37  ;;  %v5122_v11 = vadd.f32 %v5104_v63, %v4976_v27 }
 0x681   : > { %v5250_v17 = vpop.f32.mrf.mxu1  ;;  %v5267_v3 = vadd.f32 %v5248_v43, %v5121_v33  ;;  %v4685_v28 = vadd.f32 %v10739_v25, %v4571_v48  ;;  %v4979_v39 = vadd.f32 %v10765_v40, %v4833_v26 }
 0x682   : > { %v10771_v54 = vmax.f32 %v5298_v44, 0.0  ;;  %5349 = vrot.lane.b32.xlu1 %v10769_v21, %s8430_s19  ;;  %v4426_v32 = vadd.f32 %v10735_v57, %v4275_v58  ;;  %v5268_v30 = vadd.f32 %v5250_v17, %v5122_v11  ;;  %v5285_v37 = vpop.permute.xlu1 %5284  ;;  %v6581_v11 = vld [vmem:[%s12261_s11 + $0x18] sm:$0xff] }
 0x683   : > { %v5299_v41 = vadd.f32 %v5285_v37, %v5267_v3  ;;  %v4831_v45 = vadd.f32 %v10749_v7, %v4685_v28  ;;  %v5254_v7 = vpop.f32.mrf.mxu1  ;;  %v6579_v3 = vld [vmem:[%s12261_s11 + $0x8] sm:$0xff] }
 0x684   : > { %5357 = vrot.lane.b32.xlu0 %v10771_v54, %s8430_s19  ;;  %v4572_v22 = vadd.f32 %v10741_v1, %v4426_v32  ;;  %v5300_v20 = vadd.f32 %v5285_v37, %v5268_v30  ;;  %v5108_v1 = vpop.f32.mrf.mxu0  ;;  %v6580_v32 = vld [vmem:[%s12261_s11 + $0x10] sm:$0xff]  ;;  %v6578_v30 = vld [vmem:[%s12261_s11] sm:$0xff] }
 0x685   : > { %v10801_v53 = vmax.f32 %v5299_v41, 0.0  ;;  %v4977_v25 = vadd.f32 %v10753_v62, %v4831_v45  ;;  %v5256_v34 = vpop.f32.mrf.mxu1 }
 0x686   : > { %5313 = vrot.lane.b32.xlu1 %v10769_v21, %s8431_s20  ;;  %v4686_v57 = vadd.f32 %v10743_v29, %v4572_v22  ;;  %v10806_v46 = vmax.f32 %v5300_v20, 0.0  ;;  %v5110_v29 = vpop.f32.mrf.mxu0 }
 0x687   : > { %v5123_v9 = vadd.f32 %v5108_v1, %v4977_v25  ;;  %v5260_v5 = vpop.f32.mrf.mxu1 }
 0x688   : > { %5321 = vrot.lane.b32.xlu0 %v10771_v54, %s8431_s20  ;;  %v4832_v59 = vadd.f32 %v10751_v60, %v4686_v57  ;;  %v5114_v51 = vpop.f32.mrf.mxu0 }
 0x689   : > { %v5269_v42 = vadd.f32 %v5254_v7, %v5123_v9  ;;  %v5125_v4 = vadd.f32 %v5114_v51, %v4979_v39 }
 0x68a   : > { %5588 = vrot.lane.b32.xlu1 %v10769_v21, %s8432_s21  ;;  %v4978_v10 = vadd.f32 %v10758_v38, %v4832_v59  ;;  %v5116_v36 = vpop.f32.mrf.mxu0 }
 0x68b   : > { %v5301_v55 = vadd.f32 %v10760_v15, %v5269_v42 }
 0x68c   : > { %5596 = vrot.lane.b32.xlu0 %v10771_v54, %s8432_s21  ;;  %v5124_v60 = vadd.f32 %v5110_v29, %v4978_v10 }
 0x68d   : > { %v10825_v56 = vmax.f32 %v5301_v55, 0.0 }
 0x68e   : > { %5734 = vrot.lane.b32.xlu1 %v10769_v21, %s8433_s22  ;;  %v5270_v62 = vadd.f32 %v5256_v34, %v5124_v60 }
 0x690   : > { %5742 = vrot.lane.b32.xlu0 %v10771_v54, %s8433_s22  ;;  %v5302_v38 = vadd.f32 %v10760_v15, %v5270_v62  ;;  %v4834_v15 = vadd.f32 %v10763_v47, %v10747_v0  ;;  %v5262_v0 = vpop.f32.mrf.mxu1  ;;  %v5271_v47 = vadd.f32 %v5260_v5, %v5125_v4 }
 0x692   : > { %5351 = vrot.lane.b32.xlu1 %v10801_v53, %s8430_s19  ;;  %v10831_v35 = vmax.f32 %v5302_v38, 0.0  ;;  %v4980_v61 = vadd.f32 %v10767_v49, %v4834_v15  ;;  %v5303_v6 = vadd.f32 %v10779_v50, %v5271_v47 }
 0x694   : > { %5359 = vrot.lane.b32.xlu0 %v10806_v46, %s8430_s19  ;;  %v5126_v44 = vadd.f32 %v5116_v36, %v4980_v61  ;;  %v10857_v63 = vmax.f32 %v5303_v6, 0.0 }
 0x696   : > { %5315 = vrot.lane.b32.xlu1 %v10801_v53, %s8431_s20  ;;  %v5272_v40 = vadd.f32 %v5262_v0, %v5126_v44 }
 0x698   : > { %5323 = vrot.lane.b32.xlu0 %v10806_v46, %s8431_s20  ;;  %v5304_v49 = vadd.f32 %v10779_v50, %v5272_v40 }
 0x69a   : > { %5590 = vrot.lane.b32.xlu1 %v10801_v53, %s8432_s21  ;;  %v10861_v43 = vmax.f32 %v5304_v49, 0.0 }
 0x69c   : > { %5598 = vrot.lane.b32.xlu0 %v10806_v46, %s8432_s21 }
 0x69e   : > { %5736 = vrot.lane.b32.xlu1 %v10801_v53, %s8433_s22 }
 0x6a0   : > { %5744 = vrot.lane.b32.xlu0 %v10806_v46, %s8433_s22 }
 0x6a2   : > { %5353 = vrot.lane.b32.xlu1 %v10825_v56, %s8430_s19 }
 0x6a4   : > { %5361 = vrot.lane.b32.xlu0 %v10831_v35, %s8430_s19 }
 0x6a6   : > { %5317 = vrot.lane.b32.xlu1 %v10825_v56, %s8431_s20 }
 0x6a8   : > { %5325 = vrot.lane.b32.xlu0 %v10831_v35, %s8431_s20 }
 0x6aa   : > { %5592 = vrot.lane.b32.xlu1 %v10825_v56, %s8432_s21 }
 0x6ac   : > { %5600 = vrot.lane.b32.xlu0 %v10831_v35, %s8432_s21 }
 0x6ae   : > { %5738 = vrot.lane.b32.xlu1 %v10825_v56, %s8433_s22 }
 0x6b0   : > { %5746 = vrot.lane.b32.xlu0 %v10831_v35, %s8433_s22 }
 0x6b2   : > { %5998 = vrot.lane.b32.xlu1 %v10825_v56, %s8434_s23 }
 0x6b4   : > { %6006 = vrot.lane.b32.xlu0 %v10831_v35, %s8434_s23 }
 0x6b6   : > { %5355 = vrot.lane.b32.xlu1 %v10857_v63, %s8430_s19 }
 0x6b8   : > { %5363 = vrot.lane.b32.xlu0 %v10861_v43, %s8430_s19 }
 0x6ba   : > { %5996 = vrot.lane.b32.xlu1 %v10801_v53, %s8434_s23 }
 0x6bc   : > { %6004 = vrot.lane.b32.xlu0 %v10806_v46, %s8434_s23 }
 0x6be   : > { %5319 = vrot.lane.b32.xlu1 %v10857_v63, %s8431_s20 }
 0x6c0   : > { %6152 = vrot.lane.b32.xlu0 %v10831_v35, %s12338_s24 }
 0x6c2   : > { %5594 = vrot.lane.b32.xlu1 %v10857_v63, %s8432_s21 }
 0x6c4   : > { %5327 = vrot.lane.b32.xlu0 %v10861_v43, %s8431_s20 }
 0x6c6   : > { %5740 = vrot.lane.b32.xlu1 %v10857_v63, %s8433_s22 }
 0x6c8   : > { %5602 = vrot.lane.b32.xlu0 %v10861_v43, %s8432_s21 }
 0x6ca   : > { %6000 = vrot.lane.b32.xlu1 %v10857_v63, %s8434_s23 }
 0x6cc   : > { %6002 = vrot.lane.b32.xlu0 %v10771_v54, %s8434_s23 }
 0x6ce   : > { %6146 = vrot.lane.b32.xlu1 %v10857_v63, %s12338_s24 }
 0x6d0   : > { %6150 = vrot.lane.b32.xlu0 %v10806_v46, %s12338_s24 }
 0x6d2   : > { %6144 = vrot.lane.b32.xlu1 %v10825_v56, %s12338_s24 }
 0x6d4   : > { %6148 = vrot.lane.b32.xlu0 %v10771_v54, %s12338_s24 }
 0x6d6   : > { %5994 = vrot.lane.b32.xlu1 %v10769_v21, %s8434_s23 }
 0x6d8   : > { %5748 = vrot.lane.b32.xlu0 %v10861_v43, %s8433_s22 }
 0x6da   : > { %6142 = vrot.lane.b32.xlu1 %v10801_v53, %s12338_s24 }
 0x6dc   : > { %6298 = vrot.lane.b32.xlu0 %v10831_v35, %s12339_s25 }
 0x6de   : > { %6140 = vrot.lane.b32.xlu1 %v10769_v21, %s12338_s24 }
 0x6e0   : > { %6296 = vrot.lane.b32.xlu0 %v10806_v46, %s12339_s25 }
 0x6e2   : > { %6292 = vrot.lane.b32.xlu1 %v10857_v63, %s12339_s25 }
 0x6e4   : > { %6008 = vrot.lane.b32.xlu0 %v10861_v43, %s8434_s23 }
 0x6e6   : > { %6290 = vrot.lane.b32.xlu1 %v10825_v56, %s12339_s25 }
 0x6e8   : > { %6154 = vrot.lane.b32.xlu0 %v10861_v43, %s12338_s24 }
 0x6ea   : > { %6438 = vrot.lane.b32.xlu1 %v10857_v63, %s8437_s26 }
 0x6ec   : > { %6444 = vrot.lane.b32.xlu0 %v10831_v35, %s8437_s26 }
 0x6ee   : > { %6288 = vrot.lane.b32.xlu1 %v10801_v53, %s12339_s25 }
 0x6f0   : > { %6294 = vrot.lane.b32.xlu0 %v10771_v54, %s12339_s25 }
 0x6f2   : > { %6436 = vrot.lane.b32.xlu1 %v10825_v56, %s8437_s26 }
 0x6f4   : > { %6300 = vrot.lane.b32.xlu0 %v10861_v43, %s12339_s25  ;;  %v5350_v52 = vpop.permute.xlu1 %5349 }
 0x6f6   : > { %v5358_v27 = vpop.permute.xlu0 %5357  ;;  %6286 = vrot.lane.b32.xlu1 %v10769_v21, %s12339_s25 }
 0x6f7   : > { %v5365_v40 = vsel %vm515_vm0, %v5350_v52, %v5358_v27  ;;  %v5369_v49 = vsel %vm515_vm0, %v5358_v27, %v5350_v52 }
 0x6f8   : > { %6446 = vrot.lane.b32.xlu0 %v10861_v43, %s8437_s26  ;;  %v10931_v33 = vpop.permute.xlu1 %5313 }
 0x6fa   : > { %v10933_v50 = vpop.permute.xlu0 %5321  ;;  %6434 = vrot.lane.b32.xlu1 %v10801_v53, %s8437_s26 }
 0x6fc   : > { %6442 = vrot.lane.b32.xlu0 %v10806_v46, %s8437_s26  ;;  %v10939_v58 = vpop.permute.xlu1 %5588 }
 0x6fe   : > { %v10941_v13 = vpop.permute.xlu0 %5596  ;;  %6432 = vrot.lane.b32.xlu1 %v10769_v21, %s8437_s26 }
 0x700   : > { %6440 = vrot.lane.b32.xlu0 %v10771_v54, %s8437_s26  ;;  %v10950_v17 = vpop.permute.xlu1 %5734 }
 0x702   : > { %v10955_v48 = vpop.permute.xlu0 %5742  ;;  %6599 = vperm.xlu1 %8419, %v6581_v11  }
 0x704   : > { %6594 = vperm.xlu0 %8418, %v6580_v32   ;;  %v5352_v22 = vpop.permute.xlu1 %5351 }
 0x706   : > { %v5360_v37 = vpop.permute.xlu0 %5359  ;;  %6589 = vperm.xlu1 %8419, %v6579_v3  }
 0x707   : > { %v5366_v4 = vsel %vm515_vm0, %v5352_v22, %v5360_v37  ;;  %v5370_v44 = vsel %vm515_vm0, %v5360_v37, %v5352_v22  ;;  %v5373_v37 = vmul.f32 %v5369_v49, %v8598_v18 }
 0x708   : > { %6584 = vperm.xlu0 %8418, %v6578_v30   ;;  %v5316_v28 = vpop.permute.xlu1 %5315  ;;  %v5376_v32 = vmul.f32 %v5366_v4, %v8601_v19  ;;  %v5375_v3 = vmul.f32 %v5370_v44, %v8598_v18  ;;  %v5374_v30 = vmul.f32 %v5365_v40, %v8601_v19  ;;  %v5329_v4 = vsel %vm493_vm1, %v10931_v33, %v10933_v50 }
 0x70a   : > { %v5324_v41 = vpop.permute.xlu0 %5323 }
 0x70b   : > { %v5334_v44 = vsel %vm493_vm1, %v5324_v41, %v5316_v28 }
 0x70c   : > { %v10963_v57 = vpop.permute.xlu1 %5590 }
 0x70e   : > { %v10965_v45 = vpop.permute.xlu0 %5598 }
 0x710   : > { %v10967_v20 = vpop.permute.xlu1 %5736 }
 0x712   : > { %v10969_v1 = vpop.permute.xlu0 %5744 }
 0x714   : > { %v5354_v59 = vpop.permute.xlu1 %5353 }
 0x716   : > { %v5362_v25 = vpop.permute.xlu0 %5361 }
 0x717   : > { %v5367_v26 = vsel %vm515_vm0, %v5354_v59, %v5362_v25  ;;  %v5371_v39 = vsel %vm515_vm0, %v5362_v25, %v5354_v59  ;;  %v8258_v59 = vld [vmem:[%s12260_s10 + $0x20] sm:$0xff] }
 0x718   : > { %v5318_v29 = vpop.permute.xlu1 %5317  ;;  %v5378_v47 = vmul.f32 %v5367_v26, %v8601_v19  ;;  %v5377_v6 = vmul.f32 %v5371_v39, %v8598_v18  ;;  %v8259_v26 = vld [vmem:[%s12260_s10 + $0x28] sm:$0xff] }
 0x71a   : > { %v5326_v7 = vpop.permute.xlu0 %5325 }
 0x71b   : > { %v5331_v25 = vsel %vm493_vm1, %v5318_v29, %v5326_v7 }
 0x71c   : > { %v10971_v10 = vpop.permute.xlu1 %5592 }
 0x71e   : > { %v10973_v9 = vpop.permute.xlu0 %5600 }
 0x720   : > { %v10975_v60 = vpop.permute.xlu1 %5738 }
 0x722   : > { %v10977_v34 = vpop.permute.xlu0 %5746 }
 0x724   : > { %v10979_v42 = vpop.permute.xlu1 %5998 }
 0x726   : > { %v10981_v62 = vpop.permute.xlu0 %6006 }
 0x728   : > { %v5356_v55 = vpop.permute.xlu1 %5355 }
 0x72a   : > { %v5364_v38 = vpop.permute.xlu0 %5363 }
 0x72b   : > { %v5368_v51 = vsel %vm515_vm0, %v5356_v55, %v5364_v38  ;;  %v5372_v15 = vsel %vm515_vm0, %v5364_v38, %v5356_v55 }
 0x72c   : > { %v5379_v36 = vmul.f32 %v5372_v15, %v8598_v18  ;;  %v10992_v5 = vpop.permute.xlu1 %5996  ;;  %v5380_v61 = vmul.f32 %v5368_v51, %v8601_v19  ;;  %v5335_v51 = vsel %vm493_vm1, %v5326_v7, %v5318_v29  ;;  %v5342_v29 = vmul.f32 %v5331_v25, %v12341_v24 }
 0x72d   : > { %v5341_v7 = vmul.f32 %v5335_v51, %v8592_v16  ;;  %v5604_v51 = vsel %vm718_vm2, %v10939_v58, %v10941_v13 }
 0x72e   : > { %v10999_v0 = vpop.permute.xlu0 %6004  ;;  %5422 = vmatprep.subr.mxu0 %v5380_v61  ;;  %v5330_v61 = vsel %vm493_vm1, %v5316_v28, %v5324_v41  ;;  %v8260_v28 = vld [vmem:[%s12260_s10 + $0x30] sm:$0xff]  ;;  %v5606_v41 = vsel %vm718_vm2, %v10971_v10, %v10973_v9 }
 0x72f   : > { %5423 = vmatpush1.msra.mxu0 %v5379_v36 }
 0x730   : > { %5424 = vmatprep.subr.mxu0 %v5378_v47  ;;  %v5320_v11 = vpop.permute.xlu1 %5319 }
 0x731   : > { %5425 = vmatpush1.msra.mxu0 %v5377_v6 }
 0x732   : > { %v11009_v22 = vpop.permute.xlu0 %6152  ;;  %5426 = vmatprep.subr.mxu0 %v5376_v32  ;;  %v5340_v32 = vmul.f32 %v5330_v61, %v12341_v24  ;;  %v5613_v61 = vmul.f32 %v5604_v51, %v12355_v31  ;;  %v12366_v51 = vld [vmem:[#allocation8_spill] sm:$0xff] }
 0x733   : > { %5427 = vmatpush1.msra.mxu0 %v5375_v3 }
 0x734   : > { %5428 = vmatprep.subr.mxu0 %v5374_v30  ;;  %v5595_v52 = vpop.permute.xlu1 %5594  ;;  %v5333_v30 = vsel %vm493_vm1, %v10933_v50, %v10931_v33  ;;  %v5605_v33 = vsel %vm718_vm2, %v10963_v57, %v10965_v45  ;;  %v5617_v50 = vmul.f32 %v5606_v41, %v12355_v31  ;;  %v5752_v41 = vsel %vm834_vm5, %v10975_v60, %v10977_v34 }
 0x735   : > { %5429 = vmatpush1.msra.mxu0 %v5373_v37  ;;  %v5339_v37 = vmul.f32 %v5334_v44, %v8592_v16  ;;  %v5337_v25 = vmul.f32 %v5333_v30, %v8592_v16  ;;  %v8270_v44 = vld [vmem:[%s12260_s10 + $0x40] sm:$0xff] }
 0x736   : > { %v5328_v27 = vpop.permute.xlu0 %5327  ;;  %8262 = vmatmul.mubr.msk.f32.vlgmr.msra.gmra.mxu0 %vm2775_vm11, %v8258_v59  ;;  %v5610_v59 = vsel %vm718_vm2, %v10973_v9, %v10971_v10  ;;  %v5609_v10 = vsel %vm718_vm2, %v10965_v45, %v10963_v57  ;;  %v5608_v57 = vsel %vm718_vm2, %v10941_v13, %v10939_v58  ;;  %v5346_v58 = vld [vmem:[%s12260_s10 + $0x8] sm:$0xff] }
 0x737   : > { %v5332_v55 = vsel %vm493_vm1, %v5320_v11, %v5328_v27  ;;  %v5336_v38 = vsel %vm493_vm1, %v5328_v27, %v5320_v11  ;;  %5468 = vmatprep.mubr.f32.mxu0 %v12340_v2  ;;  %v5338_v27 = vmul.f32 %v5329_v4, %v12341_v24  ;;  %v5616_v9 = vmul.f32 %v5610_v59, %v12354_v23 }
 0x738   : > { %v5343_v15 = vmul.f32 %v5336_v38, %v8592_v16  ;;  %v11030_v39 = vpop.permute.xlu1 %5740  ;;  %v5344_v36 = vmul.f32 %v5332_v55, %v12341_v24  ;;  %v8261_v38 = vld [vmem:[%s12260_s10 + $0x38] sm:$0xff]  ;;  %v5612_v13 = vmul.f32 %v5608_v57, %v12354_v23 }
 0x73a   : > { %v5603_v47 = vpop.permute.xlu0 %5602  ;;  %8263 = vmatmul.mubr.msk.f32.gmra.mxu0 %vm2775_vm11, %v8259_v26  ;;  %5523 = vmatprep.subr.mxu1 %v5344_v36  ;;  %v5345_v26 = vld [vmem:[%s12260_s10] sm:$0xff]  ;;  %v5614_v36 = vmul.f32 %v5609_v10, %v12354_v23  ;;  %v6012_v10 = vsel %vm1044_vm6, %v10979_v42, %v10981_v62 }
 0x73b   : > { %v5607_v40 = vsel %vm718_vm2, %v5595_v52, %v5603_v47  ;;  %v5611_v6 = vsel %vm718_vm2, %v5603_v47, %v5595_v52  ;;  %5524 = vmatpush1.msra.mxu1 %v5343_v15  ;;  %5474 = vmatprep.mubr.f32.mxu0 %v12340_v2  ;;  %v5615_v15 = vmul.f32 %v5605_v33, %v12355_v31 }
 0x73c   : > { %v5618_v49 = vmul.f32 %v5611_v6, %v12354_v23  ;;  %5525 = vmatprep.subr.mxu1 %v5342_v29  ;;  %v11057_v11 = vpop.permute.xlu1 %6000  ;;  %v5619_v3 = vmul.f32 %v5607_v40, %v12355_v31  ;;  %v8271_v40 = vld [vmem:[%s12260_s10 + $0x48] sm:$0xff] }
 0x73d   : > { %5526 = vmatpush1.msra.mxu1 %v5341_v7  ;;  %v5347_v7 = vld [vmem:[%s12260_s10 + $0x10] sm:$0xff] }
 0x73e   : > { %v11070_v52 = vpop.permute.xlu0 %6002  ;;  %8264 = vmatmul.mubr.msk.f32.gmra.mxu0 %vm2775_vm11, %v8260_v28  ;;  %5527 = vmatprep.subr.mxu1 %v5340_v32 }
 0x73f   : > { %5661 = vmatprep.subr.mxu0 %v5619_v3  ;;  %5528 = vmatpush1.msra.mxu1 %v5339_v37  ;;  %v5750_v3 = vsel %vm834_vm5, %v10950_v17, %v10955_v48 }
 0x740   : > { %5662 = vmatpush1.msra.mxu0 %v5618_v49  ;;  %5529 = vmatprep.subr.mxu1 %v5338_v27  ;;  %v11085_v55 = vpop.permute.xlu1 %6146  ;;  %v5756_v49 = vsel %vm834_vm5, %v10977_v34, %v10975_v60  ;;  %v5755_v60 = vsel %vm834_vm5, %v10969_v1, %v10967_v20  ;;  %v5759_v27 = vmul.f32 %v5750_v3, %v12356_v14 }
 0x741   : > { %5663 = vmatprep.subr.mxu0 %v5617_v50  ;;  %5480 = vmatprep.mubr.f32.mxu0 %v12340_v2  ;;  %v5760_v59 = vmul.f32 %v5755_v60, %v12357_v12 }
 0x742   : > { %5530 = vmatpush1.msra.mxu1 %v5337_v25  ;;  %5664 = vmatpush1.msra.mxu0 %v5616_v9  ;;  %v11102_v45 = vpop.permute.xlu0 %6150 }
 0x743   : > { %8265 = vmatmul.mubr.msk.f32.gmra.mxu0 %vm2775_vm11, %v8261_v38  ;;  %8266 = vmatmul.mubr.msk.f32.vlgmr.msra.gmra.mxu1 %vm2775_vm11, %v5345_v26  ;;  %v6016_v26 = vsel %vm1044_vm6, %v10981_v62, %v10979_v42  ;;  %v8287_v42 = vld [vmem:[%s12260_s10 + $0x88] sm:$0xff]  ;;  %v6015_v62 = vsel %vm1044_vm6, %v10999_v0, %v10992_v5 }
 0x744   : > { %5665 = vmatprep.subr.mxu0 %v5615_v15  ;;  %v11109_v4 = vpop.permute.xlu1 %6144  ;;  %5569 = vmatprep.mubr.f32.mxu1 %v12340_v2  ;;  %v12367_v15 = vld [vmem:[#allocation7_spill] sm:$0xff] }
 0x745   : > { %5666 = vmatpush1.msra.mxu0 %v5614_v36  ;;  %5701 = vmatprep.mubr.f32.mxu0 %v12340_v2 }
 0x746   : > { %5667 = vmatprep.subr.mxu0 %v5613_v61  ;;  %v11120_v47 = vpop.permute.xlu0 %6148 }
 0x747   : > { %5668 = vmatpush1.msra.mxu0 %v5612_v13  ;;  %8267 = vmatmul.mubr.msk.f32.gmra.mxu1 %vm2775_vm11, %v5346_v58  ;;  %v6022_v13 = vmul.f32 %v6012_v10, %v12366_v51 }
 0x748   : > { %8274 = vmatmul.mubr.msk.f32.vlgmr.msra.gmra.mxu0 %vm2775_vm11, %v8270_v44  ;;  %5921 = vmatprep.subr.mxu0 %v10861_v43  ;;  %v11125_v29 = vpop.permute.xlu1 %5994 }
 0x749   : > { %5922 = vmatpush1.msra.mxu0 %v10857_v63  ;;  %5575 = vmatprep.mubr.f32.mxu1 %v12340_v2 }
 0x74a   : > { %5923 = vmatprep.subr.mxu0 %v10831_v35  ;;  %5707 = vmatprep.mubr.f32.mxu0 %v12340_v2  ;;  %v5749_v6 = vpop.permute.xlu0 %5748 }
 0x74b   : > { %5924 = vmatpush1.msra.mxu0 %v10825_v56  ;;  %v5753_v43 = vsel %vm834_vm5, %v11030_v39, %v5749_v6  ;;  %v5757_v63 = vsel %vm834_vm5, %v5749_v6, %v11030_v39  ;;  %8268 = vmatmul.mubr.msk.f32.gmra.mxu1 %vm2775_vm11, %v5347_v7  ;;  %v5348_v56 = vld [vmem:[%s12260_s10 + $0x18] sm:$0xff]  ;;  %v6011_v6 = vsel %vm1044_vm6, %v10992_v5, %v10999_v0  ;;  %v8280_v0 = vld [vmem:[%s12260_s10 + $0x70] sm:$0xff] }
 0x74c   : > { %v5765_v28 = vmul.f32 %v5753_v43, %v12356_v14  ;;  %8275 = vmatmul.mubr.msk.f32.gmra.mxu0 %vm2775_vm11, %v8271_v40  ;;  %5925 = vmatprep.subr.mxu0 %v10806_v46  ;;  %v11148_v35 = vpop.permute.xlu1 %6142  ;;  %v5764_v39 = vmul.f32 %v5757_v63, %v12357_v12  ;;  %v8272_v46 = vld [vmem:[%s12260_s10 + $0x50] sm:$0xff]  ;;  %v6023_v40 = vmul.f32 %v6016_v26, %v12367_v15  ;;  %v12370_v26 = vld [vmem:[#allocation10_spill] sm:$0xff] }
 0x74d   : > { %5926 = vmatpush1.msra.mxu0 %v10801_v53  ;;  %5581 = vmatprep.mubr.f32.mxu1 %v12340_v2  ;;  %v5751_v53 = vsel %vm834_vm5, %v10967_v20, %v10969_v1  ;;  %v8273_v20 = vld [vmem:[%s12260_s10 + $0x58] sm:$0xff]  ;;  %v5754_v1 = vsel %vm834_vm5, %v10955_v48, %v10950_v17  ;;  %v8278_v17 = vld [vmem:[%s12260_s10 + $0x60] sm:$0xff]  ;;  %v12368_v43 = vld [vmem:[#allocation12_spill] sm:$0xff]  ;;  %v6014_v5 = vsel %vm1044_vm6, %v11070_v52, %v11125_v29 }
 0x74e   : > { %5927 = vmatprep.subr.mxu0 %v10771_v54  ;;  %5713 = vmatprep.mubr.f32.mxu0 %v12340_v2  ;;  %v11169_v32 = vpop.permute.xlu0 %6298  ;;  %v5763_v54 = vmul.f32 %v5752_v41, %v12356_v14  ;;  %v5761_v37 = vmul.f32 %v5751_v53, %v12356_v14  ;;  %v5758_v50 = vmul.f32 %v5754_v1, %v12357_v12  ;;  %v8286_v48 = vld [vmem:[%s12260_s10 + $0x80] sm:$0xff]  ;;  %v8288_v53 = vld [vmem:[%s12260_s10 + $0x90] sm:$0xff] }
 0x74f   : > { %5928 = vmatpush1.msra.mxu0 %v10769_v21  ;;  %8269 = vmatmul.mubr.msk.f32.gmra.mxu1 %vm2775_vm11, %v5348_v56  ;;  %v5762_v21 = vmul.f32 %v5756_v49, %v12357_v12  ;;  %v6020_v60 = vmul.f32 %v6011_v6, %v12366_v51  ;;  %v6161_v3 = vsel %vm1160_vm7, %v11102_v45, %v11148_v35 }
 0x750   : > { %8276 = vmatmul.mubr.msk.f32.gmra.mxu0 %vm2775_vm11, %v8272_v46  ;;  %5807 = vmatprep.subr.mxu1 %v5765_v28  ;;  %v11183_v34 = vpop.permute.xlu1 %6140  ;;  %v12369_v28 = vld [vmem:[#allocation9_spill] sm:$0xff]  ;;  %v6010_v46 = vsel %vm1044_vm6, %v11125_v29, %v11070_v52  ;;  %v6019_v29 = vmul.f32 %v6014_v5, %v12367_v15 }
 0x751   : > { %5808 = vmatpush1.msra.mxu1 %v5764_v39  ;;  %5719 = vmatprep.mubr.f32.mxu0 %v12340_v2  ;;  %v6021_v39 = vmul.f32 %v6015_v62, %v12367_v15 }
 0x752   : > { %5809 = vmatprep.subr.mxu1 %v5763_v54  ;;  %v11198_v30 = vpop.permute.xlu0 %6296  ;;  %5847 = vmatprep.mubr.f32.mxu1 %v12340_v2  ;;  %v6158_v54 = vsel %vm1160_vm7, %v11109_v4, %v11009_v22 }
 0x753   : > { %5810 = vmatpush1.msra.mxu1 %v5762_v21  ;;  %v6168_v1 = vmul.f32 %v6158_v54, %v12368_v43 }
 0x754   : > { %8277 = vmatmul.mubr.msk.f32.gmra.mxu0 %vm2775_vm11, %v8273_v20  ;;  %5811 = vmatprep.subr.mxu1 %v5761_v37  ;;  %v11205_v33 = vpop.permute.xlu1 %6292  ;;  %v6018_v20 = vmul.f32 %v6010_v46, %v12366_v51  ;;  %v6160_v37 = vsel %vm1160_vm7, %v11120_v47, %v11183_v34 }
 0x755   : > { %5812 = vmatpush1.msra.mxu1 %v5760_v59  ;;  %5961 = vmatprep.mubr.f32.mxu0 %v12340_v2 }
 0x756   : > { %5813 = vmatprep.subr.mxu1 %v5759_v27  ;;  %v6009_v25 = vpop.permute.xlu0 %6008  ;;  %v6167_v27 = vmul.f32 %v6161_v3, %v12369_v28 }
 0x757   : > { %5814 = vmatpush1.msra.mxu1 %v5758_v50  ;;  %v6013_v9 = vsel %vm1044_vm6, %v11057_v11, %v6009_v25  ;;  %v6017_v38 = vsel %vm1044_vm6, %v6009_v25, %v11057_v11  ;;  %v8279_v11 = vld [vmem:[%s12260_s10 + $0x68] sm:$0xff]  ;;  %v8289_v50 = vld [vmem:[%s12260_s10 + $0x98] sm:$0xff] }
 0x758   : > { %v6024_v57 = vmul.f32 %v6013_v9, %v12366_v51  ;;  %v6025_v36 = vmul.f32 %v6017_v38, %v12367_v15  ;;  %8282 = vmatmul.mubr.msk.f32.vlgmr.msra.gmra.mxu1 %vm2775_vm11, %v8278_v17  ;;  %8290 = vmatmul.mubr.msk.f32.vlgmr.msra.gmra.mxu0 %vm2775_vm11, %v8286_v48  ;;  %v11233_v61 = vpop.permute.xlu1 %6290  ;;  %v6165_v48 = vmul.f32 %v6160_v37, %v12369_v28 }
 0x759   : > { %5853 = vmatprep.mubr.f32.mxu1 %v12340_v2  ;;  %5967 = vmatprep.mubr.f32.mxu0 %v12340_v2  ;;  %v6308_v10 = vsel %vm1276_vm8, %v11169_v32, %v11233_v61 }
 0x75a   : > { %v6155_v58 = vpop.permute.xlu0 %6154  ;;  %6067 = vmatprep.subr.mxu1 %v6025_v36  ;;  %v12371_v36 = vld [vmem:[#allocation11_spill] sm:$0xff] }
 0x75b   : > { %v6159_v44 = vsel %vm1160_vm7, %v11085_v55, %v6155_v58  ;;  %v6163_v7 = vsel %vm1160_vm7, %v6155_v58, %v11085_v55  ;;  %6068 = vmatpush1.msra.mxu1 %v6024_v57  ;;  %v6162_v55 = vsel %vm1160_vm7, %v11009_v22, %v11109_v4  ;;  %v6157_v22 = vsel %vm1160_vm7, %v11148_v35, %v11102_v45  ;;  %v8281_v4 = vld [vmem:[%s12260_s10 + $0x78] sm:$0xff] }
 0x75c   : > { %v6170_v63 = vmul.f32 %v6159_v44, %v12368_v43  ;;  %v6171_v56 = vmul.f32 %v6163_v7, %v12369_v28  ;;  %8283 = vmatmul.mubr.msk.f32.gmra.mxu1 %vm2775_vm11, %v8279_v11  ;;  %8291 = vmatmul.mubr.msk.f32.gmra.mxu0 %vm2775_vm11, %v8287_v42  ;;  %v11263_v41 = vpop.permute.xlu1 %6438  ;;  %v6169_v52 = vmul.f32 %v6162_v55, %v12369_v28  ;;  %v8302_v42 = vld [vmem:[%s12260_s10 + $0xc0] sm:$0xff] }
 0x75d   : > { %6069 = vmatprep.subr.mxu1 %v6023_v40  ;;  %5859 = vmatprep.mubr.f32.mxu1 %v12340_v2  ;;  %v6156_v45 = vsel %vm1160_vm7, %v11183_v34, %v11120_v47  ;;  %v6166_v35 = vmul.f32 %v6157_v22, %v12368_v43  ;;  %v8294_v47 = vld [vmem:[%s12260_s10 + $0xa0] sm:$0xff]  ;;  %v6304_v58 = vsel %vm1276_vm8, %v11233_v61, %v11169_v32 }
 0x75e   : > { %6070 = vmatpush1.msra.mxu1 %v6022_v13  ;;  %v11282_v49 = vpop.permute.xlu0 %6444  ;;  %6213 = vmatprep.subr.mxu0 %v6171_v56  ;;  %v6164_v34 = vmul.f32 %v6156_v45, %v12368_v43  ;;  %v8295_v13 = vld [vmem:[%s12260_s10 + $0xa8] sm:$0xff]  ;;  %v6315_v44 = vmul.f32 %v6308_v10, %v12371_v36  ;;  %v6314_v6 = vmul.f32 %v6304_v58, %v12370_v26  ;;  %v12372_v56 = vld [vmem:[#allocation13_spill] sm:$0xff]  ;;  %v8318_v10 = vld [vmem:[%s12260_s10 + $0x100] sm:$0xff] }
 0x75f   : > { %6071 = vmatprep.subr.mxu1 %v6021_v39  ;;  %5973 = vmatprep.mubr.f32.mxu0 %v12340_v2  ;;  %v12373_v39 = vld [vmem:[#allocation14_spill] sm:$0xff] }
 0x760   : > { %8284 = vmatmul.mubr.msk.f32.gmra.mxu1 %vm2775_vm11, %v8280_v0  ;;  %6214 = vmatpush1.msra.mxu0 %v6170_v63  ;;  %v6289_v21 = vpop.permute.xlu1 %6288 }
 0x761   : > { %6072 = vmatpush1.msra.mxu1 %v6020_v60  ;;  %8292 = vmatmul.mubr.msk.f32.gmra.mxu0 %vm2775_vm11, %v8288_v53  ;;  %v6303_v32 = vsel %vm1276_vm8, %v6289_v21, %v11198_v30  ;;  %v8296_v53 = vld [vmem:[%s12260_s10 + $0xb0] sm:$0xff] }
 0x762   : > { %6073 = vmatprep.subr.mxu1 %v6019_v29  ;;  %6215 = vmatprep.subr.mxu0 %v6169_v52  ;;  %v6295_v59 = vpop.permute.xlu0 %6294  ;;  %v6312_v60 = vmul.f32 %v6303_v32, %v12370_v26 }
 0x763   : > { %5865 = vmatprep.mubr.f32.mxu1 %v12340_v2  ;;  %6074 = vmatpush1.msra.mxu1 %v6018_v20 }
 0x764   : > { %6216 = vmatpush1.msra.mxu0 %v6168_v1  ;;  %8285 = vmatmul.mubr.msk.f32.gmra.mxu1 %vm2775_vm11, %v8281_v4  ;;  %v6437_v17 = vpop.permute.xlu1 %6436 }
 0x765   : > { %6217 = vmatprep.subr.mxu0 %v6167_v27  ;;  %5979 = vmatprep.mubr.f32.mxu0 %v12340_v2  ;;  %v6450_v54 = vsel %vm1392_vm9, %v6437_v17, %v11282_v49 }
 0x766   : > { %6218 = vmatpush1.msra.mxu0 %v6166_v35  ;;  %6107 = vmatprep.mubr.f32.mxu1 %v12340_v2  ;;  %v6301_v25 = vpop.permute.xlu0 %6300  ;;  %v6460_v1 = vmul.f32 %v6450_v54, %v12373_v39  ;;  %v8297_v35 = vld [vmem:[%s12260_s10 + $0xb8] sm:$0xff] }
 0x767   : > { %8293 = vmatmul.mubr.msk.f32.gmra.mxu0 %vm2775_vm11, %v8289_v50  ;;  %6219 = vmatprep.subr.mxu0 %v6165_v48  ;;  %v6305_v9 = vsel %vm1276_vm8, %v11205_v33, %v6301_v25  ;;  %v6309_v38 = vsel %vm1276_vm8, %v6301_v25, %v11205_v33  ;;  %v6307_v33 = vsel %vm1276_vm8, %v11198_v30, %v6289_v21  ;;  %v8303_v30 = vld [vmem:[%s12260_s10 + $0xc8] sm:$0xff]  ;;  %v8310_v25 = vld [vmem:[%s12260_s10 + $0xe0] sm:$0xff] }
 0x768   : > { %6220 = vmatpush1.msra.mxu0 %v6164_v34  ;;  %v6316_v57 = vmul.f32 %v6305_v9, %v12370_v26  ;;  %v6317_v11 = vmul.f32 %v6309_v38, %v12371_v36  ;;  %8298 = vmatmul.mubr.msk.f32.vlgmr.msra.gmra.mxu1 %vm2775_vm11, %v8294_v47  ;;  %v6287_v62 = vpop.permute.xlu1 %6286  ;;  %v6313_v63 = vmul.f32 %v6307_v33, %v12371_v36  ;;  %v8305_v47 = vld [vmem:[%s12260_s10 + $0xd8] sm:$0xff]  ;;  %v8311_v9 = vld [vmem:[%s12260_s10 + $0xe8] sm:$0xff] }
 0x769   : > { %6253 = vmatprep.mubr.f32.mxu0 %v12340_v2  ;;  %6113 = vmatprep.mubr.f32.mxu1 %v12340_v2  ;;  %v6306_v0 = vsel %vm1276_vm8, %v6295_v59, %v6287_v62  ;;  %v6302_v29 = vsel %vm1276_vm8, %v6287_v62, %v6295_v59  ;;  %v8319_v38 = vld [vmem:[%s12260_s10 + $0x108] sm:$0xff]  ;;  %v8321_v62 = vld [vmem:[%s12260_s10 + $0x118] sm:$0xff] }
 0x76a   : > { %v6447_v7 = vpop.permute.xlu0 %6446  ;;  %6359 = vmatprep.subr.mxu1 %v6317_v11  ;;  %v6311_v22 = vmul.f32 %v6306_v0, %v12371_v36  ;;  %v6310_v37 = vmul.f32 %v6302_v29, %v12370_v26  ;;  %v8320_v11 = vld [vmem:[%s12260_s10 + $0x110] sm:$0xff] }
 0x76b   : > { %8306 = vmatmul.mubr.msk.f32.vlgmr.msra.gmra.mxu0 %vm2775_vm11, %v8302_v42  ;;  %v6451_v61 = vsel %vm1392_vm9, %v11263_v41, %v6447_v7  ;;  %v6455_v40 = vsel %vm1392_vm9, %v6447_v7, %v11263_v41  ;;  %6360 = vmatpush1.msra.mxu1 %v6316_v57  ;;  %v6454_v41 = vsel %vm1392_vm9, %v11282_v49, %v6437_v17  ;;  %v8304_v49 = vld [vmem:[%s12260_s10 + $0xd0] sm:$0xff]  ;;  %v8313_v42 = vld [vmem:[%s12260_s10 + $0xf8] sm:$0xff] }
 0x76c   : > { %v6463_v55 = vmul.f32 %v6455_v40, %v12372_v56  ;;  %8299 = vmatmul.mubr.msk.f32.gmra.mxu1 %vm2775_vm11, %v8295_v13  ;;  %6259 = vmatprep.mubr.f32.mxu0 %v12340_v2  ;;  %v6435_v5 = vpop.permute.xlu1 %6434  ;;  %v6462_v46 = vmul.f32 %v6451_v61, %v12373_v39  ;;  %v6461_v20 = vmul.f32 %v6454_v41, %v12372_v56  ;;  %v8312_v57 = vld [vmem:[%s12260_s10 + $0xf0] sm:$0xff] }
 0x76d   : > { %6361 = vmatprep.subr.mxu1 %v6315_v44  ;;  %6119 = vmatprep.mubr.f32.mxu1 %v12340_v2 }
 0x76e   : > { %6362 = vmatpush1.msra.mxu1 %v6314_v6  ;;  %v6443_v52 = vpop.permute.xlu0 %6442  ;;  %6505 = vmatprep.subr.mxu0 %v6463_v55 }
 0x76f   : > { %8307 = vmatmul.mubr.msk.f32.gmra.mxu0 %vm2775_vm11, %v8303_v30  ;;  %v6449_v3 = vsel %vm1392_vm9, %v6435_v5, %v6443_v52  ;;  %v6453_v21 = vsel %vm1392_vm9, %v6443_v52, %v6435_v5  ;;  %6363 = vmatprep.subr.mxu1 %v6313_v63 }
 0x770   : > { %8300 = vmatmul.mubr.msk.f32.gmra.mxu1 %vm2775_vm11, %v8296_v53  ;;  %6265 = vmatprep.mubr.f32.mxu0 %v12340_v2  ;;  %v6459_v4 = vmul.f32 %v6453_v21, %v12372_v56  ;;  %v6458_v59 = vmul.f32 %v6449_v3, %v12373_v39  ;;  %v6433_v27 = vpop.permute.xlu1 %6432 }
 0x771   : > { %6364 = vmatpush1.msra.mxu1 %v6312_v60  ;;  %6506 = vmatpush1.msra.mxu0 %v6462_v46 }
 0x772   : > { %6365 = vmatprep.subr.mxu1 %v6311_v22  ;;  %6507 = vmatprep.subr.mxu0 %v6461_v20  ;;  %v6441_v45 = vpop.permute.xlu0 %6440 }
 0x773   : > { %8308 = vmatmul.mubr.msk.f32.gmra.mxu0 %vm2775_vm11, %v8304_v49  ;;  %6125 = vmatprep.mubr.f32.mxu1 %v12340_v2  ;;  %v6448_v50 = vsel %vm1392_vm9, %v6433_v27, %v6441_v45  ;;  %v6452_v17 = vsel %vm1392_vm9, %v6441_v45, %v6433_v27 }
 0x774   : > { %6366 = vmatpush1.msra.mxu1 %v6310_v37  ;;  %6508 = vmatpush1.msra.mxu0 %v6460_v1  ;;  %v6457_v48 = vmul.f32 %v6452_v17, %v12372_v56  ;;  %v6456_v34 = vmul.f32 %v6448_v50, %v12373_v39 }
 0x775   : > { %8301 = vmatmul.mubr.msk.f32.gmra.mxu1 %vm2775_vm11, %v8297_v35  ;;  %6509 = vmatprep.subr.mxu0 %v6459_v4 }
 0x776   : > { %6271 = vmatprep.mubr.f32.mxu0 %v12340_v2  ;;  %6510 = vmatpush1.msra.mxu0 %v6458_v59 }
 0x777   : > { %8309 = vmatmul.mubr.msk.f32.gmra.mxu0 %vm2775_vm11, %v8305_v47  ;;  %6399 = vmatprep.mubr.f32.mxu1 %v12340_v2 }
 0x778   : > { %6511 = vmatprep.subr.mxu0 %v6457_v48  ;;  %6545 = vmatprep.mubr.f32.mxu0 %v12340_v2 }
 0x779   : > { %8314 = vmatmul.mubr.msk.f32.vlgmr.msra.gmra.mxu1 %vm2775_vm11, %v8310_v25  ;;  %6512 = vmatpush1.msra.mxu0 %v6456_v34 }
 0x77a   : > { %6405 = vmatprep.mubr.f32.mxu1 %v12340_v2 }
 0x77b   : > { %8322 = vmatmul.mubr.msk.f32.vlgmr.msra.gmra.mxu0 %vm2775_vm11, %v8318_v10 }
 0x77c   : > { %6551 = vmatprep.mubr.f32.mxu0 %v12340_v2 }
 0x77d   : > { %8315 = vmatmul.mubr.msk.f32.gmra.mxu1 %vm2775_vm11, %v8311_v9 }
 0x77e   : > { %6411 = vmatprep.mubr.f32.mxu1 %v12340_v2 }
 0x77f   : > { %8323 = vmatmul.mubr.msk.f32.gmra.mxu0 %vm2775_vm11, %v8319_v38 }
 0x780   : > { %6557 = vmatprep.mubr.f32.mxu0 %v12340_v2 }
 0x781   : > { %8316 = vmatmul.mubr.msk.f32.gmra.mxu1 %vm2775_vm11, %v8312_v57 }
 0x782   : > { %6417 = vmatprep.mubr.f32.mxu1 %v12340_v2 }
 0x783   : > { %8324 = vmatmul.mubr.msk.f32.gmra.mxu0 %vm2775_vm11, %v8320_v11 }
 0x784   : > { %6563 = vmatprep.mubr.f32.mxu0 %v12340_v2 }
 0x785   : > { %8317 = vmatmul.mubr.msk.f32.gmra.mxu1 %vm2775_vm11, %v8313_v42 }
 0x786   : > { %6767 = vmatprep.mubr.f32.mxu1 %v12340_v2 }
 0x787   : > { %8325 = vmatmul.mubr.msk.f32.gmra.mxu0 %vm2775_vm11, %v8321_v62 }
 0x788   : > { %6868 = vmatprep.mubr.f32.mxu0 %v12340_v2 }
 0x7f6   : > { %v5464_v58 = vpop.f32.mrf.mxu0 }
 0x7f8   : > { %v5466_v33 = vpop.f32.mrf.mxu0 }
 0x7fa   : > { %v11471_v13 = vpop.f32.mrf.mxu0 }
 0x7fc   : > { %v11473_v44 = vpop.f32.mrf.mxu0 }
 0x7fe   : > { %v11475_v7 = vpop.f32.mrf.mxu0 }
 0x800   : > { %v11477_v32 = vpop.f32.mrf.mxu0 }
 0x803   : > { %v5482_v61 = vpop.f32.mrf.mxu0  ;;  %v5565_v40 = vpop.f32.mrf.mxu1 }
 0x805   : > { %v5484_v6 = vpop.f32.mrf.mxu0  ;;  %v5567_v63 = vpop.f32.mrf.mxu1 }
 0x807   : > { %v5571_v55 = vpop.f32.mrf.mxu1 }
 0x808   : > { %v5703_v30 = vpop.f32.mrf.mxu0 }
 0x809   : > { %v5573_v5 = vpop.f32.mrf.mxu1 }
 0x80a   : > { %v5705_v41 = vpop.f32.mrf.mxu0 }
 0x80b   : > { %v11479_v0 = vpop.f32.mrf.mxu1 }
 0x80c   : > { %v5709_v46 = vpop.f32.mrf.mxu0 }
 0x80d   : > { %v11481_v53 = vpop.f32.mrf.mxu1 }
 0x80e   : > { %v5711_v60 = vpop.f32.mrf.mxu0 }
 0x80f   : > { %v5583_v54 = vpop.f32.mrf.mxu1 }
 0x810   : > { %v5584_v52 = vadd.f32 %v5583_v54, %v5482_v61  ;;  %v11483_v29 = vpop.f32.mrf.mxu0  ;;  %v5566_v54 = vadd.f32 %v5565_v40, %v5464_v58  ;;  %v5572_v40 = vadd.f32 %v5571_v55, %v11471_v13 }
 0x811   : > { %v5585_v3 = vpop.f32.mrf.mxu1 }
 0x812   : > { %v5586_v21 = vadd.f32 %v5585_v3, %v5484_v6  ;;  %v11485_v20 = vpop.f32.mrf.mxu0 }
 0x814   : > { %v5721_v22 = vpop.f32.mrf.mxu0 }
 0x815   : > { %v5732_v49 = vadd.f32 %v5721_v22, %v5584_v52  ;;  %v5568_v22 = vadd.f32 %v5567_v63, %v5466_v33 }
 0x816   : > { %v5723_v4 = vpop.f32.mrf.mxu0 }
 0x817   : > { %v5733_v1 = vadd.f32 %v5723_v4, %v5586_v21  ;;  %v5726_v4 = vadd.f32 %v5703_v30, %v5566_v54  ;;  %v5727_v36 = vadd.f32 %v5705_v41, %v5568_v22  ;;  %v11510_v41 = vpop.permute.xlu0 %6594 }
 0x818   : > { %v5849_v37 = vpop.f32.mrf.mxu1  ;;  %v5963_v59 = vpop.f32.mrf.mxu0 }
 0x819   : > { %v5872_v26 = vadd.f32 %v5849_v37, %v5726_v4  ;;  %v5728_v37 = vadd.f32 %v5709_v46, %v5572_v40 }
 0x81a   : > { %v5851_v27 = vpop.f32.mrf.mxu1  ;;  %v5965_v45 = vpop.f32.mrf.mxu0 }
 0x81c   : > { %v5855_v35 = vpop.f32.mrf.mxu1  ;;  %v5969_v50 = vpop.f32.mrf.mxu0 }
 0x81d   : > { %v5874_v54 = vadd.f32 %v5855_v35, %v5728_v37  ;;  %v5578_v37 = vadd.f32 %v11479_v0, %v11475_v7 }
 0x81e   : > { %v5857_v17 = vpop.f32.mrf.mxu1  ;;  %v5971_v48 = vpop.f32.mrf.mxu0 }
 0x81f   : > { %v5988_v43 = vadd.f32 %v5969_v50, %v5874_v54 }
 0x820   : > { %v11487_v47 = vpop.f32.mrf.mxu1 }
 0x821   : > { %v11489_v34 = vpop.f32.mrf.mxu0 }
 0x822   : > { %v11491_v25 = vpop.f32.mrf.mxu1 }
 0x823   : > { %v11493_v10 = vpop.f32.mrf.mxu0 }
 0x824   : > { %v5867_v9 = vpop.f32.mrf.mxu1 }
 0x825   : > { %v5878_v38 = vadd.f32 %v5867_v9, %v5732_v49  ;;  %v5873_v9 = vadd.f32 %v5851_v27, %v5727_v36  ;;  %v5574_v36 = vadd.f32 %v5573_v5, %v11473_v44  ;;  %v6585_v5 = vpop.permute.xlu0 %6584 }
 0x826   : > { %v5869_v57 = vpop.f32.mrf.mxu1 }
 0x827   : > { %v5879_v11 = vadd.f32 %v5869_v57, %v5733_v1  ;;  %v5981_v42 = vpop.f32.mrf.mxu0  ;;  %v5986_v57 = vadd.f32 %v5963_v59, %v5872_v26  ;;  %v5729_v59 = vadd.f32 %v5711_v60, %v5574_v36 }
 0x828   : > { %v11495_v62 = vadd.f32 %v5981_v42, %v5878_v38  ;;  %v6109_v61 = vpop.f32.mrf.mxu1 }
 0x829   : > { %v5983_v6 = vpop.f32.mrf.mxu0  ;;  %v6132_v33 = vadd.f32 %v6109_v61, %v5986_v57 }
 0x82a   : > { %v11497_v52 = vadd.f32 %v5983_v6, %v5879_v11  ;;  %v6111_v3 = vpop.f32.mrf.mxu1  ;;  %v5987_v11 = vadd.f32 %v5965_v45, %v5873_v9  ;;  %v5875_v45 = vadd.f32 %v5857_v17, %v5729_v59 }
 0x82b   : > { %v6255_v21 = vpop.f32.mrf.mxu0 }
 0x82c   : > { %v6115_v39 = vpop.f32.mrf.mxu1  ;;  %v6133_v27 = vadd.f32 %v6111_v3, %v5987_v11  ;;  %v6278_v22 = vadd.f32 %v6255_v21, %v6132_v33  ;;  %v5989_v3 = vadd.f32 %v5971_v48, %v5875_v45 }
 0x82d   : > { %v6257_v56 = vpop.f32.mrf.mxu0  ;;  %v6134_v40 = vadd.f32 %v6115_v39, %v5988_v43 }
 0x82e   : > { %v6117_v28 = vpop.f32.mrf.mxu1  ;;  %v6279_v61 = vadd.f32 %v6257_v56, %v6133_v27 }
 0x82f   : > { %v6261_v49 = vpop.f32.mrf.mxu0  ;;  %v6135_v35 = vadd.f32 %v6117_v28, %v5989_v3  ;;  %v5730_v28 = vadd.f32 %v11483_v29, %v5578_v37 }
 0x830   : > { %v11499_v1 = vpop.f32.mrf.mxu1  ;;  %v6280_v36 = vadd.f32 %v6261_v49, %v6134_v40 }
 0x831   : > { %v6263_v38 = vpop.f32.mrf.mxu0  ;;  %v5876_v7 = vadd.f32 %v11487_v47, %v5730_v28 }
 0x832   : > { %v11501_v42 = vpop.f32.mrf.mxu1  ;;  %v6281_v48 = vadd.f32 %v6263_v38, %v6135_v35 }
 0x833   : > { %v11503_v58 = vpop.f32.mrf.mxu0 }
 0x835   : > { %v11506_v63 = vpop.f32.mrf.mxu1  ;;  %v11508_v30 = vpop.f32.mrf.mxu0 }
 0x837   : > { %v11513_v6 = vpop.f32.mrf.mxu1  ;;  %v11515_v26 = vpop.f32.mrf.mxu0 }
 0x839   : > { %v11517_v13 = vpop.f32.mrf.mxu0  ;;  %v6401_v55 = vpop.f32.mrf.mxu1 }
 0x83a   : > { %v6424_v4 = vadd.f32 %v6401_v55, %v6278_v22 }
 0x83b   : > { %v6403_v9 = vpop.f32.mrf.mxu1  ;;  %v6547_v57 = vpop.f32.mrf.mxu0 }
 0x83c   : > { %v6425_v15 = vadd.f32 %v6403_v9, %v6279_v61  ;;  %v6570_v44 = vadd.f32 %v6547_v57, %v6424_v4 }
 0x83d   : > { %v6549_v46 = vpop.f32.mrf.mxu0  ;;  %v6407_v60 = vpop.f32.mrf.mxu1 }
 0x83e   : > { %v6602_v11 = vadd.f32 %v6585_v5, %v6570_v44  ;;  %v6571_v51 = vadd.f32 %v6549_v46, %v6425_v15  ;;  %v6426_v43 = vadd.f32 %v6407_v60, %v6280_v36  ;;  %v11529_v15 = vpop.permute.xlu1 %6599  ;;  %v6138_v46 = vadd.f32 %v11506_v63, %v11495_v62 }
 0x83f   : > { %v6409_v56 = vpop.f32.mrf.mxu1  ;;  %v6553_v50 = vpop.f32.mrf.mxu0 }
 0x840   : > { %v11519_v21 = vmax.f32 %v6602_v11, 0.0  ;;  %v6603_v33 = vadd.f32 %v6585_v5, %v6571_v51  ;;  %v5580_v51 = vadd.f32 %v11481_v53, %v11477_v32  ;;  %v6427_v39 = vadd.f32 %v6409_v56, %v6281_v48 }
 0x841   : > { %v6555_v49 = vpop.f32.mrf.mxu0  ;;  %v6572_v0 = vadd.f32 %v6553_v50, %v6426_v43  ;;  %v5990_v53 = vadd.f32 %v11489_v34, %v5876_v7  ;;  %v6284_v11 = vadd.f32 %v11515_v26, %v6138_v46 }
 0x842   : > { %v11521_v17 = vmax.f32 %v6603_v33, 0.0  ;;  %6654 = vrot.lane.b32.xlu1 %v11519_v21, %s8430_s19  ;;  %v5731_v27 = vadd.f32 %v11485_v20, %v5580_v51  ;;  %v6573_v59 = vadd.f32 %v6555_v49, %v6427_v39  ;;  %v6590_v32 = vpop.permute.xlu1 %6589 }
 0x843   : > { %v6604_v29 = vadd.f32 %v6590_v32, %v6572_v0  ;;  %v6136_v47 = vadd.f32 %v11499_v1, %v5990_v53  ;;  %v6559_v1 = vpop.f32.mrf.mxu0  ;;  %v7883_v0 = vld [vmem:[%s12263_s13] sm:$0xff] }
 0x844   : > { %6662 = vrot.lane.b32.xlu0 %v11521_v17, %s8430_s19  ;;  %v5877_v38 = vadd.f32 %v11491_v25, %v5731_v27  ;;  %v6605_v54 = vadd.f32 %v6590_v32, %v6573_v59  ;;  %v6413_v25 = vpop.f32.mrf.mxu1  ;;  %v7884_v59 = vld [vmem:[%s12263_s13 + $0x8] sm:$0xff] }
 0x845   : > { %v11551_v55 = vmax.f32 %v6604_v29, 0.0  ;;  %v6282_v34 = vadd.f32 %v11503_v58, %v6136_v47  ;;  %v6561_v9 = vpop.f32.mrf.mxu0 }
 0x846   : > { %6618 = vrot.lane.b32.xlu1 %v11519_v21, %s8431_s20  ;;  %v5991_v20 = vadd.f32 %v11493_v10, %v5877_v38  ;;  %v11556_v45 = vmax.f32 %v6605_v54, 0.0  ;;  %v6415_v10 = vpop.f32.mrf.mxu1  ;;  %v7886_v54 = vld [vmem:[%s12263_s13 + $0x18] sm:$0xff] }
 0x847   : > { %v6428_v4 = vadd.f32 %v6413_v25, %v6282_v34  ;;  %v6565_v35 = vpop.f32.mrf.mxu0 }
 0x848   : > { %6626 = vrot.lane.b32.xlu0 %v11521_v17, %s8431_s20  ;;  %v6137_v22 = vadd.f32 %v11501_v42, %v5991_v20  ;;  %v6419_v40 = vpop.f32.mrf.mxu1  ;;  %v7885_v20 = vld [vmem:[%s12263_s13 + $0x10] sm:$0xff] }
 0x849   : > { %v6574_v57 = vadd.f32 %v6559_v1, %v6428_v4  ;;  %v6430_v63 = vadd.f32 %v6419_v40, %v6284_v11 }
 0x84a   : > { %6893 = vrot.lane.b32.xlu1 %v11519_v21, %s8432_s21  ;;  %v6283_v61 = vadd.f32 %v11508_v30, %v6137_v22  ;;  %v6421_v60 = vpop.f32.mrf.mxu1 }
 0x84b   : > { %v6606_v44 = vadd.f32 %v11510_v41, %v6574_v57 }
 0x84c   : > { %6901 = vrot.lane.b32.xlu0 %v11521_v17, %s8432_s21  ;;  %v6429_v42 = vadd.f32 %v6415_v10, %v6283_v61 }
 0x84d   : > { %v11575_v5 = vmax.f32 %v6606_v44, 0.0 }
 0x84e   : > { %7039 = vrot.lane.b32.xlu1 %v11519_v21, %s8433_s22  ;;  %v6575_v58 = vadd.f32 %v6561_v9, %v6429_v42 }
 0x850   : > { %7047 = vrot.lane.b32.xlu0 %v11521_v17, %s8433_s22  ;;  %v6607_v30 = vadd.f32 %v11510_v41, %v6575_v58  ;;  %v6139_v41 = vadd.f32 %v11513_v6, %v11497_v52  ;;  %v6567_v52 = vpop.f32.mrf.mxu0  ;;  %v6576_v6 = vadd.f32 %v6565_v35, %v6430_v63 }
 0x852   : > { %6656 = vrot.lane.b32.xlu1 %v11551_v55, %s8430_s19  ;;  %v11581_v3 = vmax.f32 %v6607_v30, 0.0  ;;  %v6285_v62 = vadd.f32 %v11517_v13, %v6139_v41  ;;  %v6608_v36 = vadd.f32 %v11529_v15, %v6576_v6 }
 0x854   : > { %6664 = vrot.lane.b32.xlu0 %v11556_v45, %s8430_s19  ;;  %v6431_v33 = vadd.f32 %v6421_v60, %v6285_v62  ;;  %v11607_v56 = vmax.f32 %v6608_v36, 0.0 }
 0x856   : > { %6620 = vrot.lane.b32.xlu1 %v11551_v55, %s8431_s20  ;;  %v6577_v26 = vadd.f32 %v6567_v52, %v6431_v33 }
 0x858   : > { %6628 = vrot.lane.b32.xlu0 %v11556_v45, %s8431_s20  ;;  %v6609_v13 = vadd.f32 %v11529_v15, %v6577_v26 }
 0x85a   : > { %6895 = vrot.lane.b32.xlu1 %v11551_v55, %s8432_s21  ;;  %v11611_v50 = vmax.f32 %v6609_v13, 0.0 }
 0x85c   : > { %6903 = vrot.lane.b32.xlu0 %v11556_v45, %s8432_s21 }
 0x85e   : > { %7041 = vrot.lane.b32.xlu1 %v11551_v55, %s8433_s22 }
 0x860   : > { %7049 = vrot.lane.b32.xlu0 %v11556_v45, %s8433_s22 }
 0x862   : > { %6658 = vrot.lane.b32.xlu1 %v11575_v5, %s8430_s19 }
 0x864   : > { %6666 = vrot.lane.b32.xlu0 %v11581_v3, %s8430_s19 }
 0x866   : > { %6622 = vrot.lane.b32.xlu1 %v11575_v5, %s8431_s20 }
 0x868   : > { %6630 = vrot.lane.b32.xlu0 %v11581_v3, %s8431_s20 }
 0x86a   : > { %6897 = vrot.lane.b32.xlu1 %v11575_v5, %s8432_s21 }
 0x86c   : > { %6905 = vrot.lane.b32.xlu0 %v11581_v3, %s8432_s21 }
 0x86e   : > { %7043 = vrot.lane.b32.xlu1 %v11575_v5, %s8433_s22 }
 0x870   : > { %7051 = vrot.lane.b32.xlu0 %v11581_v3, %s8433_s22 }
 0x872   : > { %7303 = vrot.lane.b32.xlu1 %v11575_v5, %s8434_s23 }
 0x874   : > { %7311 = vrot.lane.b32.xlu0 %v11581_v3, %s8434_s23 }
 0x876   : > { %6660 = vrot.lane.b32.xlu1 %v11607_v56, %s8430_s19 }
 0x878   : > { %6668 = vrot.lane.b32.xlu0 %v11611_v50, %s8430_s19 }
 0x87a   : > { %7301 = vrot.lane.b32.xlu1 %v11551_v55, %s8434_s23 }
 0x87c   : > { %7309 = vrot.lane.b32.xlu0 %v11556_v45, %s8434_s23 }
 0x87e   : > { %6624 = vrot.lane.b32.xlu1 %v11607_v56, %s8431_s20 }
 0x880   : > { %7457 = vrot.lane.b32.xlu0 %v11581_v3, %s12338_s24 }
 0x882   : > { %6899 = vrot.lane.b32.xlu1 %v11607_v56, %s8432_s21 }
 0x884   : > { %6632 = vrot.lane.b32.xlu0 %v11611_v50, %s8431_s20 }
 0x886   : > { %7045 = vrot.lane.b32.xlu1 %v11607_v56, %s8433_s22 }
 0x888   : > { %6907 = vrot.lane.b32.xlu0 %v11611_v50, %s8432_s21 }
 0x88a   : > { %7305 = vrot.lane.b32.xlu1 %v11607_v56, %s8434_s23 }
 0x88c   : > { %7307 = vrot.lane.b32.xlu0 %v11521_v17, %s8434_s23 }
 0x88e   : > { %7451 = vrot.lane.b32.xlu1 %v11607_v56, %s12338_s24 }
 0x890   : > { %7455 = vrot.lane.b32.xlu0 %v11556_v45, %s12338_s24 }
 0x892   : > { %7449 = vrot.lane.b32.xlu1 %v11575_v5, %s12338_s24 }
 0x894   : > { %7453 = vrot.lane.b32.xlu0 %v11521_v17, %s12338_s24 }
 0x896   : > { %7299 = vrot.lane.b32.xlu1 %v11519_v21, %s8434_s23 }
 0x898   : > { %7053 = vrot.lane.b32.xlu0 %v11611_v50, %s8433_s22 }
 0x89a   : > { %7447 = vrot.lane.b32.xlu1 %v11551_v55, %s12338_s24 }
 0x89c   : > { %7603 = vrot.lane.b32.xlu0 %v11581_v3, %s12339_s25 }
 0x89e   : > { %7445 = vrot.lane.b32.xlu1 %v11519_v21, %s12338_s24 }
 0x8a0   : > { %7601 = vrot.lane.b32.xlu0 %v11556_v45, %s12339_s25 }
 0x8a2   : > { %7597 = vrot.lane.b32.xlu1 %v11607_v56, %s12339_s25 }
 0x8a4   : > { %7313 = vrot.lane.b32.xlu0 %v11611_v50, %s8434_s23 }
 0x8a6   : > { %7595 = vrot.lane.b32.xlu1 %v11575_v5, %s12339_s25 }
 0x8a8   : > { %7459 = vrot.lane.b32.xlu0 %v11611_v50, %s12338_s24 }
 0x8aa   : > { %7743 = vrot.lane.b32.xlu1 %v11607_v56, %s8437_s26 }
 0x8ac   : > { %7749 = vrot.lane.b32.xlu0 %v11581_v3, %s8437_s26 }
 0x8ae   : > { %7593 = vrot.lane.b32.xlu1 %v11551_v55, %s12339_s25 }
 0x8b0   : > { %7599 = vrot.lane.b32.xlu0 %v11521_v17, %s12339_s25 }
 0x8b2   : > { %7741 = vrot.lane.b32.xlu1 %v11575_v5, %s8437_s26 }
 0x8b4   : > { %7605 = vrot.lane.b32.xlu0 %v11611_v50, %s12339_s25  ;;  %v11677_v37 = vpop.permute.xlu1 %6654 }
 0x8b6   : > { %v11679_v48 = vpop.permute.xlu0 %6662  ;;  %7591 = vrot.lane.b32.xlu1 %v11519_v21, %s12339_s25 }
 0x8b8   : > { %7751 = vrot.lane.b32.xlu0 %v11611_v50, %s8437_s26  ;;  %v6619_v43 = vpop.permute.xlu1 %6618 }
 0x8ba   : > { %v6627_v15 = vpop.permute.xlu0 %6626  ;;  %7739 = vrot.lane.b32.xlu1 %v11551_v55, %s8437_s26 }
 0x8bb   : > { %v11689_v51 = vsel %vm493_vm1, %v6619_v43, %v6627_v15  ;;  %v11693_v28 = vsel %vm493_vm1, %v6627_v15, %v6619_v43 }
 0x8bc   : > { %7747 = vrot.lane.b32.xlu0 %v11556_v45, %s8437_s26  ;;  %v6894_v39 = vpop.permute.xlu1 %6893 }
 0x8be   : > { %v6902_v49 = vpop.permute.xlu0 %6901  ;;  %7737 = vrot.lane.b32.xlu1 %v11519_v21, %s8437_s26 }
 0x8bf   : > { %v11701_v27 = vsel %vm718_vm2, %v6894_v39, %v6902_v49  ;;  %v11705_v7 = vsel %vm718_vm2, %v6902_v49, %v6894_v39  ;;  %v6670_v49 = vsel %vm515_vm0, %v11677_v37, %v11679_v48 }
 0x8c0   : > { %7745 = vrot.lane.b32.xlu0 %v11521_v17, %s8437_s26  ;;  %v7040_v38 = vpop.permute.xlu1 %7039 }
 0x8c2   : > { %v7048_v32 = vpop.permute.xlu0 %7047  ;;  %7889 = vperm.xlu1 %8419, %v7883_v0  }
 0x8c3   : > { %v11717_v53 = vsel %vm834_vm5, %v7040_v38, %v7048_v32  ;;  %v11721_v29 = vsel %vm834_vm5, %v7048_v32, %v7040_v38  ;;  %v6674_v38 = vsel %vm515_vm0, %v11679_v48, %v11677_v37 }
 0x8c4   : > { %7894 = vperm.xlu0 %8418, %v7884_v59   ;;  %v6657_v47 = vpop.permute.xlu1 %6656 }
 0x8c6   : > { %v6665_v25 = vpop.permute.xlu0 %6664  ;;  %7899 = vperm.xlu1 %8419, %v7885_v20  }
 0x8c7   : > { %v6671_v13 = vsel %vm515_vm0, %v6657_v47, %v6665_v25  ;;  %v6675_v43 = vsel %vm515_vm0, %v6665_v25, %v6657_v47  ;;  %v6679_v47 = vmul.f32 %v6670_v49, %v8601_v19  ;;  %v6678_v25 = vmul.f32 %v6674_v38, %v8598_v18 }
 0x8c8   : > { %7904 = vperm.xlu0 %8418, %v7886_v54   ;;  %v6621_v22 = vpop.permute.xlu1 %6620  ;;  %v6681_v59 = vmul.f32 %v6671_v13, %v8601_v19  ;;  %v6680_v20 = vmul.f32 %v6675_v43, %v8598_v18 }
 0x8ca   : > { %v6629_v34 = vpop.permute.xlu0 %6628 }
 0x8cc   : > { %v11729_v10 = vpop.permute.xlu1 %6895 }
 0x8ce   : > { %v11731_v1 = vpop.permute.xlu0 %6903 }
 0x8d0   : > { %v11733_v61 = vpop.permute.xlu1 %7041 }
 0x8d2   : > { %v11735_v4 = vpop.permute.xlu0 %7049 }
 0x8d4   : > { %v6659_v42 = vpop.permute.xlu1 %6658 }
 0x8d6   : > { %v6667_v9 = vpop.permute.xlu0 %6666 }
 0x8d7   : > { %v6672_v62 = vsel %vm515_vm0, %v6659_v42, %v6667_v9  ;;  %v6676_v52 = vsel %vm515_vm0, %v6667_v9, %v6659_v42  ;;  %v8326_v42 = vld [vmem:[%s12262_s12 + $0x20] sm:$0xff] }
 0x8d8   : > { %v6623_v57 = vpop.permute.xlu1 %6622  ;;  %v6683_v15 = vmul.f32 %v6672_v62, %v8601_v19  ;;  %v6682_v0 = vmul.f32 %v6676_v52, %v8598_v18  ;;  %v6635_v52 = vsel %vm493_vm1, %v6621_v22, %v6629_v34 }
 0x8da   : > { %v6631_v58 = vpop.permute.xlu0 %6630 }
 0x8db   : > { %v6636_v9 = vsel %vm493_vm1, %v6623_v57, %v6631_v58 }
 0x8dc   : > { %v11737_v44 = vpop.permute.xlu1 %6897 }
 0x8de   : > { %v11739_v30 = vpop.permute.xlu0 %6905 }
 0x8e0   : > { %v11741_v46 = vpop.permute.xlu1 %7043 }
 0x8e2   : > { %v11743_v40 = vpop.permute.xlu0 %7051 }
 0x8e4   : > { %v11745_v41 = vpop.permute.xlu1 %7303 }
 0x8e6   : > { %v11747_v11 = vpop.permute.xlu0 %7311 }
 0x8e8   : > { %v6661_v60 = vpop.permute.xlu1 %6660 }
 0x8ea   : > { %v6669_v35 = vpop.permute.xlu0 %6668 }
 0x8eb   : > { %v6673_v63 = vsel %vm515_vm0, %v6661_v60, %v6669_v35  ;;  %v6677_v33 = vsel %vm515_vm0, %v6669_v35, %v6661_v60  ;;  %v8327_v60 = vld [vmem:[%s12262_s12 + $0x28] sm:$0xff]  ;;  %v6640_v35 = vsel %vm493_vm1, %v6631_v58, %v6623_v57 }
 0x8ec   : > { %v6684_v6 = vmul.f32 %v6677_v33, %v8598_v18  ;;  %v6685_v26 = vmul.f32 %v6673_v63, %v8601_v19  ;;  %v11759_v36 = vpop.permute.xlu1 %7301  ;;  %v6646_v57 = vmul.f32 %v6640_v35, %v8592_v16 }
 0x8ee   : > { %v11766_v39 = vpop.permute.xlu0 %7309  ;;  %6727 = vmatprep.subr.mxu1 %v6685_v26  ;;  %v6647_v26 = vmul.f32 %v6636_v9, %v12341_v24 }
 0x8ef   : > { %6728 = vmatpush1.msra.mxu1 %v6684_v6  ;;  %v6639_v6 = vsel %vm493_vm1, %v6629_v34, %v6621_v22  ;;  %v8328_v22 = vld [vmem:[%s12262_s12 + $0x30] sm:$0xff]  ;;  %v6645_v34 = vmul.f32 %v6635_v52, %v12341_v24  ;;  %v7061_v52 = vsel %vm834_vm5, %v11743_v40, %v11741_v46 }
 0x8f0   : > { %6729 = vmatprep.subr.mxu1 %v6683_v15  ;;  %v6625_v32 = vpop.permute.xlu1 %6624  ;;  %v6911_v15 = vsel %vm718_vm2, %v11737_v44, %v11739_v30 }
 0x8f1   : > { %6730 = vmatpush1.msra.mxu1 %v6682_v0 }
 0x8f2   : > { %v11780_v54 = vpop.permute.xlu0 %7457  ;;  %6731 = vmatprep.subr.mxu1 %v6681_v59  ;;  %v6644_v59 = vmul.f32 %v6639_v6, %v8592_v16 }
 0x8f3   : > { %6732 = vmatpush1.msra.mxu1 %v6680_v20  ;;  %v6643_v20 = vmul.f32 %v11689_v51, %v12341_v24 }
 0x8f4   : > { %6733 = vmatprep.subr.mxu1 %v6679_v47  ;;  %v6900_v37 = vpop.permute.xlu1 %6899 }
 0x8f5   : > { %6734 = vmatpush1.msra.mxu1 %v6678_v25  ;;  %v6910_v25 = vsel %vm718_vm2, %v11729_v10, %v11731_v1 }
 0x8f6   : > { %v6633_v48 = vpop.permute.xlu0 %6632  ;;  %8330 = vmatmul.mubr.msk.f32.vlgmr.msra.gmra.mxu1 %vm2775_vm11, %v8326_v42  ;;  %v6922_v42 = vmul.f32 %v6911_v15, %v12355_v31  ;;  %v7321_v15 = vsel %vm1044_vm6, %v11747_v11, %v11745_v41 }
 0x8f7   : > { %v6637_v19 = vsel %vm493_vm1, %v6625_v32, %v6633_v48  ;;  %v6641_v18 = vsel %vm493_vm1, %v6633_v48, %v6625_v32  ;;  %6773 = vmatprep.mubr.f32.mxu1 %v12340_v2  ;;  %v6915_v32 = vsel %vm718_vm2, %v11739_v30, %v11737_v44  ;;  %v6642_v44 = vmul.f32 %v11693_v28, %v8592_v16  ;;  %v6650_v48 = vld [vmem:[%s12262_s12] sm:$0xff] }
 0x8f8   : > { %v6648_v62 = vmul.f32 %v6641_v18, %v8592_v16  ;;  %v6649_v63 = vmul.f32 %v6637_v19, %v12341_v24  ;;  %v11801_v33 = vpop.permute.xlu1 %7045  ;;  %v6914_v24 = vsel %vm718_vm2, %v11731_v1, %v11729_v10  ;;  %v6921_v51 = vmul.f32 %v6915_v32, %v12354_v23  ;;  %v6651_v19 = vld [vmem:[%s12262_s12 + $0x8] sm:$0xff] }
 0x8f9   : > { %v6920_v16 = vmul.f32 %v6910_v25, %v12355_v31  ;;  %v6919_v10 = vmul.f32 %v6914_v24, %v12354_v23  ;;  %v6918_v1 = vmul.f32 %v11701_v27, %v12355_v31  ;;  %v6917_v18 = vmul.f32 %v11705_v7, %v12354_v23  ;;  %v8339_v7 = vld [vmem:[%s12262_s12 + $0x48] sm:$0xff] }
 0x8fa   : > { %v6908_v13 = vpop.permute.xlu0 %6907  ;;  %8331 = vmatmul.mubr.msk.f32.gmra.mxu1 %vm2775_vm11, %v8327_v60  ;;  %6828 = vmatprep.subr.mxu0 %v6649_v63  ;;  %v8338_v60 = vld [vmem:[%s12262_s12 + $0x40] sm:$0xff]  ;;  %v7057_v63 = vsel %vm834_vm5, %v11741_v46, %v11743_v40  ;;  %v7060_v46 = vsel %vm834_vm5, %v11735_v4, %v11733_v61 }
 0x8fb   : > { %v6912_v58 = vsel %vm718_vm2, %v6900_v37, %v6908_v13  ;;  %v6916_v43 = vsel %vm718_vm2, %v6908_v13, %v6900_v37  ;;  %6829 = vmatpush1.msra.mxu0 %v6648_v62  ;;  %6779 = vmatprep.mubr.f32.mxu1 %v12340_v2  ;;  %v8329_v37 = vld [vmem:[%s12262_s12 + $0x38] sm:$0xff] }
 0x8fc   : > { %v6923_v49 = vmul.f32 %v6916_v43, %v12354_v23  ;;  %v6924_v0 = vmul.f32 %v6912_v58, %v12355_v31  ;;  %6830 = vmatprep.subr.mxu0 %v6647_v26  ;;  %v11825_v38 = vpop.permute.xlu1 %7305  ;;  %v6652_v23 = vld [vmem:[%s12262_s12 + $0x10] sm:$0xff]  ;;  %v7067_v26 = vmul.f32 %v7061_v52, %v12357_v12  ;;  %v7063_v43 = vmul.f32 %v11721_v29, %v12357_v12 }
 0x8fd   : > { %6831 = vmatpush1.msra.mxu0 %v6646_v57  ;;  %v7064_v57 = vmul.f32 %v11717_v53, %v12356_v14  ;;  %v7317_v53 = vsel %vm1044_vm6, %v11745_v41, %v11747_v11  ;;  %v8355_v41 = vld [vmem:[%s12262_s12 + $0x88] sm:$0xff]  ;;  %v7320_v11 = vsel %vm1044_vm6, %v11766_v39, %v11759_v36 }
 0x8fe   : > { %v11834_v47 = vpop.permute.xlu0 %7307  ;;  %8332 = vmatmul.mubr.msk.f32.gmra.mxu1 %vm2775_vm11, %v8328_v22  ;;  %6832 = vmatprep.subr.mxu0 %v6645_v34  ;;  %v8346_v22 = vld [vmem:[%s12262_s12 + $0x60] sm:$0xff] }
 0x8ff   : > { %6966 = vmatprep.subr.mxu1 %v6924_v0  ;;  %6833 = vmatpush1.msra.mxu0 %v6644_v59  ;;  %v8354_v34 = vld [vmem:[%s12262_s12 + $0x80] sm:$0xff]  ;;  %v12375_v59 = vld [vmem:[#allocation7_spill] sm:$0xff] }
 0x900   : > { %6967 = vmatpush1.msra.mxu1 %v6923_v49  ;;  %6834 = vmatprep.subr.mxu0 %v6643_v20  ;;  %v11849_v30 = vpop.permute.xlu1 %7451  ;;  %v12374_v49 = vld [vmem:[#allocation8_spill] sm:$0xff] }
 0x901   : > { %6968 = vmatprep.subr.mxu1 %v6922_v42  ;;  %6785 = vmatprep.mubr.f32.mxu1 %v12340_v2  ;;  %v7327_v42 = vmul.f32 %v7317_v53, %v12374_v49 }
 0x902   : > { %6835 = vmatpush1.msra.mxu0 %v6642_v44  ;;  %6969 = vmatpush1.msra.mxu1 %v6921_v51  ;;  %v11859_v28 = vpop.permute.xlu0 %7455  ;;  %v7328_v44 = vmul.f32 %v7321_v15, %v12375_v59 }
 0x903   : > { %8333 = vmatmul.mubr.msk.f32.gmra.mxu1 %vm2775_vm11, %v8329_v37  ;;  %8334 = vmatmul.mubr.msk.f32.vlgmr.msra.gmra.mxu0 %vm2775_vm11, %v6650_v48  ;;  %v7316_v37 = vsel %vm1044_vm6, %v11759_v36, %v11766_v39  ;;  %v12376_v48 = vld [vmem:[#allocation12_spill] sm:$0xff] }
 0x904   : > { %6970 = vmatprep.subr.mxu1 %v6920_v16  ;;  %v11866_v9 = vpop.permute.xlu1 %7449  ;;  %6874 = vmatprep.mubr.f32.mxu0 %v12340_v2  ;;  %v8348_v39 = vld [vmem:[%s12262_s12 + $0x70] sm:$0xff] }
 0x905   : > { %6971 = vmatpush1.msra.mxu1 %v6919_v10  ;;  %7006 = vmatprep.mubr.f32.mxu1 %v12340_v2  ;;  %v12377_v10 = vld [vmem:[#allocation9_spill] sm:$0xff] }
 0x906   : > { %6972 = vmatprep.subr.mxu1 %v6918_v1  ;;  %v11878_v31 = vpop.permute.xlu0 %7453 }
 0x907   : > { %6973 = vmatpush1.msra.mxu1 %v6917_v18  ;;  %8335 = vmatmul.mubr.msk.f32.gmra.mxu0 %vm2775_vm11, %v6651_v19  ;;  %v7326_v18 = vmul.f32 %v7320_v11, %v12375_v59 }
 0x908   : > { %8342 = vmatmul.mubr.msk.f32.vlgmr.msra.gmra.mxu1 %vm2775_vm11, %v8338_v60  ;;  %7226 = vmatprep.subr.mxu1 %v11611_v50  ;;  %v11883_v27 = vpop.permute.xlu1 %7299 }
 0x909   : > { %7227 = vmatpush1.msra.mxu1 %v11607_v56  ;;  %6880 = vmatprep.mubr.f32.mxu0 %v12340_v2  ;;  %v7319_v36 = vsel %vm1044_vm6, %v11834_v47, %v11883_v27  ;;  %v7315_v60 = vsel %vm1044_vm6, %v11883_v27, %v11834_v47 }
 0x90a   : > { %7228 = vmatprep.subr.mxu1 %v11581_v3  ;;  %7012 = vmatprep.mubr.f32.mxu1 %v12340_v2  ;;  %v7054_v35 = vpop.permute.xlu0 %7053  ;;  %v7324_v27 = vmul.f32 %v7319_v36, %v12375_v59  ;;  %v8372_v36 = vld [vmem:[%s12262_s12 + $0xd0] sm:$0xff] }
 0x90b   : > { %7229 = vmatpush1.msra.mxu1 %v11575_v5  ;;  %v7058_v50 = vsel %vm834_vm5, %v11801_v33, %v7054_v35  ;;  %v7062_v56 = vsel %vm834_vm5, %v7054_v35, %v11801_v33  ;;  %8336 = vmatmul.mubr.msk.f32.gmra.mxu0 %vm2775_vm11, %v6652_v23  ;;  %v6653_v5 = vld [vmem:[%s12262_s12 + $0x18] sm:$0xff]  ;;  %v7325_v35 = vmul.f32 %v7316_v37, %v12374_v49 }
 0x90c   : > { %v7070_v62 = vmul.f32 %v7058_v50, %v12356_v14  ;;  %8343 = vmatmul.mubr.msk.f32.gmra.mxu1 %vm2775_vm11, %v8339_v7  ;;  %7230 = vmatprep.subr.mxu1 %v11556_v45  ;;  %v11906_v3 = vpop.permute.xlu1 %7447  ;;  %v7069_v33 = vmul.f32 %v7062_v56, %v12357_v12  ;;  %v8340_v45 = vld [vmem:[%s12262_s12 + $0x50] sm:$0xff]  ;;  %v7463_v50 = vsel %vm1160_vm7, %v11866_v9, %v11780_v54 }
 0x90d   : > { %7231 = vmatpush1.msra.mxu1 %v11551_v55  ;;  %6886 = vmatprep.mubr.f32.mxu0 %v12340_v2  ;;  %v7056_v55 = vsel %vm834_vm5, %v11733_v61, %v11735_v4  ;;  %v7065_v4 = vmul.f32 %v7060_v46, %v12357_v12  ;;  %v8356_v7 = vld [vmem:[%s12262_s12 + $0x90] sm:$0xff]  ;;  %v7466_v56 = vsel %vm1160_vm7, %v11859_v28, %v11906_v3 }
 0x90e   : > { %7232 = vmatprep.subr.mxu1 %v11521_v17  ;;  %7018 = vmatprep.mubr.f32.mxu1 %v12340_v2  ;;  %v11927_v6 = vpop.permute.xlu0 %7603  ;;  %v7068_v17 = vmul.f32 %v7057_v63, %v12356_v14  ;;  %v7066_v13 = vmul.f32 %v7056_v55, %v12356_v14  ;;  %v7473_v63 = vmul.f32 %v7463_v50, %v12376_v48  ;;  %v8357_v55 = vld [vmem:[%s12262_s12 + $0x98] sm:$0xff] }
 0x90f   : > { %7233 = vmatpush1.msra.mxu1 %v11519_v21  ;;  %8337 = vmatmul.mubr.msk.f32.gmra.mxu0 %vm2775_vm11, %v6653_v5  ;;  %v8341_v21 = vld [vmem:[%s12262_s12 + $0x58] sm:$0xff]  ;;  %v7323_v5 = vmul.f32 %v7315_v60, %v12374_v49  ;;  %v7472_v52 = vmul.f32 %v7466_v56, %v12377_v10 }
 0x910   : > { %8344 = vmatmul.mubr.msk.f32.gmra.mxu1 %vm2775_vm11, %v8340_v45  ;;  %7112 = vmatprep.subr.mxu0 %v7070_v62  ;;  %v11941_v40 = vpop.permute.xlu1 %7445 }
 0x911   : > { %7113 = vmatpush1.msra.mxu0 %v7069_v33  ;;  %7024 = vmatprep.mubr.f32.mxu1 %v12340_v2  ;;  %v7465_v33 = vsel %vm1160_vm7, %v11878_v31, %v11941_v40 }
 0x912   : > { %7114 = vmatprep.subr.mxu0 %v7068_v17  ;;  %v11949_v61 = vpop.permute.xlu0 %7601  ;;  %7152 = vmatprep.mubr.f32.mxu0 %v12340_v2  ;;  %v7470_v17 = vmul.f32 %v7465_v33, %v12377_v10  ;;  %v8387_v33 = vld [vmem:[%s12262_s12 + $0x108] sm:$0xff] }
 0x913   : > { %7115 = vmatpush1.msra.mxu0 %v7067_v26 }
 0x914   : > { %8345 = vmatmul.mubr.msk.f32.gmra.mxu1 %vm2775_vm11, %v8341_v21  ;;  %7116 = vmatprep.subr.mxu0 %v7066_v13  ;;  %v11956_v58 = vpop.permute.xlu1 %7597 }
 0x915   : > { %7117 = vmatpush1.msra.mxu0 %v7065_v4  ;;  %7266 = vmatprep.mubr.f32.mxu1 %v12340_v2 }
 0x916   : > { %7118 = vmatprep.subr.mxu0 %v7064_v57  ;;  %v7314_v14 = vpop.permute.xlu0 %7313  ;;  %v12378_v57 = vld [vmem:[#allocation10_spill] sm:$0xff] }
 0x917   : > { %7119 = vmatpush1.msra.mxu0 %v7063_v43  ;;  %v7318_v12 = vsel %vm1044_vm6, %v11825_v38, %v7314_v14  ;;  %v7322_v29 = vsel %vm1044_vm6, %v7314_v14, %v11825_v38  ;;  %v8347_v38 = vld [vmem:[%s12262_s12 + $0x68] sm:$0xff]  ;;  %v8370_v14 = vld [vmem:[%s12262_s12 + $0xc0] sm:$0xff] }
 0x918   : > { %v7329_v0 = vmul.f32 %v7318_v12, %v12374_v49  ;;  %v7330_v32 = vmul.f32 %v7322_v29, %v12375_v59  ;;  %8350 = vmatmul.mubr.msk.f32.vlgmr.msra.gmra.mxu0 %vm2775_vm11, %v8346_v22  ;;  %8358 = vmatmul.mubr.msk.f32.vlgmr.msra.gmra.mxu1 %vm2775_vm11, %v8354_v34  ;;  %v11985_v20 = vpop.permute.xlu1 %7595  ;;  %v12379_v22 = vld [vmem:[#allocation11_spill] sm:$0xff] }
 0x919   : > { %7158 = vmatprep.mubr.f32.mxu0 %v12340_v2  ;;  %7272 = vmatprep.mubr.f32.mxu1 %v12340_v2  ;;  %v7613_v21 = vsel %vm1276_vm8, %v11927_v6, %v11985_v20  ;;  %v7609_v12 = vsel %vm1276_vm8, %v11985_v20, %v11927_v6  ;;  %v8363_v29 = vld [vmem:[%s12262_s12 + $0xa8] sm:$0xff] }
 0x91a   : > { %v7460_v25 = vpop.permute.xlu0 %7459  ;;  %7372 = vmatprep.subr.mxu0 %v7330_v32  ;;  %v7620_v15 = vmul.f32 %v7613_v21, %v12379_v22  ;;  %v7619_v32 = vmul.f32 %v7609_v12, %v12378_v57 }
 0x91b   : > { %v7464_v24 = vsel %vm1160_vm7, %v11849_v30, %v7460_v25  ;;  %v7468_v51 = vsel %vm1160_vm7, %v7460_v25, %v11849_v30  ;;  %7373 = vmatpush1.msra.mxu0 %v7329_v0  ;;  %v7467_v30 = vsel %vm1160_vm7, %v11780_v54, %v11866_v9  ;;  %v7462_v54 = vsel %vm1160_vm7, %v11906_v3, %v11859_v28  ;;  %v8349_v9 = vld [vmem:[%s12262_s12 + $0x78] sm:$0xff] }
 0x91c   : > { %v7475_v16 = vmul.f32 %v7464_v24, %v12376_v48  ;;  %v7476_v1 = vmul.f32 %v7468_v51, %v12377_v10  ;;  %8351 = vmatmul.mubr.msk.f32.gmra.mxu0 %vm2775_vm11, %v8347_v38  ;;  %8359 = vmatmul.mubr.msk.f32.gmra.mxu1 %vm2775_vm11, %v8355_v41  ;;  %v12015_v19 = vpop.permute.xlu1 %7743  ;;  %v7474_v47 = vmul.f32 %v7467_v30, %v12377_v10  ;;  %v12380_v38 = vld [vmem:[#allocation13_spill] sm:$0xff]  ;;  %v8364_v51 = vld [vmem:[%s12262_s12 + $0xb0] sm:$0xff] }
 0x91d   : > { %7374 = vmatprep.subr.mxu0 %v7328_v44  ;;  %7164 = vmatprep.mubr.f32.mxu0 %v12340_v2  ;;  %v7461_v28 = vsel %vm1160_vm7, %v11941_v40, %v11878_v31  ;;  %v7471_v3 = vmul.f32 %v7462_v54, %v12376_v48  ;;  %v8362_v31 = vld [vmem:[%s12262_s12 + $0xa0] sm:$0xff] }
 0x91e   : > { %7375 = vmatpush1.msra.mxu0 %v7327_v42  ;;  %v12034_v23 = vpop.permute.xlu0 %7749  ;;  %7518 = vmatprep.subr.mxu1 %v7476_v1  ;;  %v7469_v40 = vmul.f32 %v7461_v28, %v12376_v48  ;;  %v12381_v44 = vld [vmem:[#allocation14_spill] sm:$0xff]  ;;  %v8381_v28 = vld [vmem:[%s12262_s12 + $0xf8] sm:$0xff] }
 0x91f   : > { %7376 = vmatprep.subr.mxu0 %v7326_v18  ;;  %7278 = vmatprep.mubr.f32.mxu1 %v12340_v2 }
 0x920   : > { %8352 = vmatmul.mubr.msk.f32.gmra.mxu0 %vm2775_vm11, %v8348_v39  ;;  %7519 = vmatpush1.msra.mxu1 %v7475_v16  ;;  %v7594_v62 = vpop.permute.xlu1 %7593 }
 0x921   : > { %7377 = vmatpush1.msra.mxu0 %v7325_v35  ;;  %8360 = vmatmul.mubr.msk.f32.gmra.mxu1 %vm2775_vm11, %v8356_v7  ;;  %v7608_v6 = vsel %vm1276_vm8, %v7594_v62, %v11949_v61 }
 0x922   : > { %7378 = vmatprep.subr.mxu0 %v7324_v27  ;;  %7520 = vmatprep.subr.mxu1 %v7474_v47  ;;  %v7600_v45 = vpop.permute.xlu0 %7599  ;;  %v7617_v37 = vmul.f32 %v7608_v6, %v12378_v57  ;;  %v8365_v47 = vld [vmem:[%s12262_s12 + $0xb8] sm:$0xff] }
 0x923   : > { %7170 = vmatprep.mubr.f32.mxu0 %v12340_v2  ;;  %7379 = vmatpush1.msra.mxu0 %v7323_v5  ;;  %v8373_v5 = vld [vmem:[%s12262_s12 + $0xd8] sm:$0xff] }
 0x924   : > { %7521 = vmatpush1.msra.mxu1 %v7473_v63  ;;  %8353 = vmatmul.mubr.msk.f32.gmra.mxu0 %vm2775_vm11, %v8349_v9  ;;  %v7742_v46 = vpop.permute.xlu1 %7741  ;;  %v8386_v9 = vld [vmem:[%s12262_s12 + $0x100] sm:$0xff]  ;;  %v8379_v63 = vld [vmem:[%s12262_s12 + $0xe8] sm:$0xff] }
 0x925   : > { %7522 = vmatprep.subr.mxu1 %v7472_v52  ;;  %7284 = vmatprep.mubr.f32.mxu1 %v12340_v2  ;;  %v7759_v25 = vsel %vm1392_vm9, %v12034_v23, %v7742_v46  ;;  %v7755_v48 = vsel %vm1392_vm9, %v7742_v46, %v12034_v23  ;;  %v8388_v52 = vld [vmem:[%s12262_s12 + $0x110] sm:$0xff] }
 0x926   : > { %7523 = vmatpush1.msra.mxu1 %v7471_v3  ;;  %7412 = vmatprep.mubr.f32.mxu0 %v12340_v2  ;;  %v7606_v26 = vpop.permute.xlu0 %7605  ;;  %v7766_v18 = vmul.f32 %v7759_v25, %v12380_v38  ;;  %v7765_v60 = vmul.f32 %v7755_v48, %v12381_v44  ;;  %v8389_v3 = vld [vmem:[%s12262_s12 + $0x118] sm:$0xff] }
 0x927   : > { %8361 = vmatmul.mubr.msk.f32.gmra.mxu1 %vm2775_vm11, %v8357_v55  ;;  %7524 = vmatprep.subr.mxu1 %v7470_v17  ;;  %v7610_v13 = vsel %vm1276_vm8, %v11956_v58, %v7606_v26  ;;  %v7614_v4 = vsel %vm1276_vm8, %v7606_v26, %v11956_v58  ;;  %v7612_v58 = vsel %vm1276_vm8, %v11949_v61, %v7594_v62  ;;  %v8371_v61 = vld [vmem:[%s12262_s12 + $0xc8] sm:$0xff] }
 0x928   : > { %7525 = vmatpush1.msra.mxu1 %v7469_v40  ;;  %v7621_v43 = vmul.f32 %v7610_v13, %v12378_v57  ;;  %v7622_v34 = vmul.f32 %v7614_v4, %v12379_v22  ;;  %8366 = vmatmul.mubr.msk.f32.vlgmr.msra.gmra.mxu0 %vm2775_vm11, %v8362_v31  ;;  %v7592_v53 = vpop.permute.xlu1 %7591  ;;  %v7618_v20 = vmul.f32 %v7612_v58, %v12379_v22 }
 0x929   : > { %7558 = vmatprep.mubr.f32.mxu1 %v12340_v2  ;;  %7418 = vmatprep.mubr.f32.mxu0 %v12340_v2  ;;  %v7611_v42 = vsel %vm1276_vm8, %v7600_v45, %v7592_v53  ;;  %v7607_v10 = vsel %vm1276_vm8, %v7592_v53, %v7600_v45  ;;  %v8380_v45 = vld [vmem:[%s12262_s12 + $0xf0] sm:$0xff] }
 0x92a   : > { %v7752_v49 = vpop.permute.xlu0 %7751  ;;  %7664 = vmatprep.subr.mxu0 %v7622_v34  ;;  %v7616_v30 = vmul.f32 %v7611_v42, %v12379_v22  ;;  %v7615_v23 = vmul.f32 %v7607_v10, %v12378_v57 }
 0x92b   : > { %8374 = vmatmul.mubr.msk.f32.vlgmr.msra.gmra.mxu1 %vm2775_vm11, %v8370_v14  ;;  %v7756_v0 = vsel %vm1392_vm9, %v12015_v19, %v7752_v49  ;;  %v7760_v59 = vsel %vm1392_vm9, %v7752_v49, %v12015_v19  ;;  %7665 = vmatpush1.msra.mxu0 %v7621_v43 }
 0x92c   : > { %v7768_v41 = vmul.f32 %v7760_v59, %v12380_v38  ;;  %8367 = vmatmul.mubr.msk.f32.gmra.mxu0 %vm2775_vm11, %v8363_v29  ;;  %7564 = vmatprep.mubr.f32.mxu1 %v12340_v2  ;;  %v7740_v11 = vpop.permute.xlu1 %7739  ;;  %v7767_v24 = vmul.f32 %v7756_v0, %v12381_v44 }
 0x92d   : > { %7666 = vmatprep.subr.mxu0 %v7620_v15  ;;  %7424 = vmatprep.mubr.f32.mxu0 %v12340_v2 }
 0x92e   : > { %7667 = vmatpush1.msra.mxu0 %v7619_v32  ;;  %v7748_v16 = vpop.permute.xlu0 %7747  ;;  %7810 = vmatprep.subr.mxu1 %v7768_v41 }
 0x92f   : > { %8375 = vmatmul.mubr.msk.f32.gmra.mxu1 %vm2775_vm11, %v8371_v61  ;;  %v7754_v1 = vsel %vm1392_vm9, %v7740_v11, %v7748_v16  ;;  %v7758_v19 = vsel %vm1392_vm9, %v7748_v16, %v7740_v11  ;;  %7668 = vmatprep.subr.mxu0 %v7618_v20 }
 0x930   : > { %8368 = vmatmul.mubr.msk.f32.gmra.mxu0 %vm2775_vm11, %v8364_v51  ;;  %7570 = vmatprep.mubr.f32.mxu1 %v12340_v2  ;;  %v7764_v39 = vmul.f32 %v7758_v19, %v12380_v38  ;;  %v7763_v7 = vmul.f32 %v7754_v1, %v12381_v44  ;;  %v7738_v35 = vpop.permute.xlu1 %7737 }
 0x931   : > { %7669 = vmatpush1.msra.mxu0 %v7617_v37  ;;  %7811 = vmatpush1.msra.mxu1 %v7767_v24 }
 0x932   : > { %7670 = vmatprep.subr.mxu0 %v7616_v30  ;;  %7812 = vmatprep.subr.mxu1 %v7766_v18  ;;  %v7746_v50 = vpop.permute.xlu0 %7745 }
 0x933   : > { %8376 = vmatmul.mubr.msk.f32.gmra.mxu1 %vm2775_vm11, %v8372_v36  ;;  %7430 = vmatprep.mubr.f32.mxu0 %v12340_v2  ;;  %v7753_v27 = vsel %vm1392_vm9, %v7738_v35, %v7746_v50  ;;  %v7757_v56 = vsel %vm1392_vm9, %v7746_v50, %v7738_v35 }
 0x934   : > { %7671 = vmatpush1.msra.mxu0 %v7615_v23  ;;  %7813 = vmatpush1.msra.mxu1 %v7765_v60  ;;  %v7762_v62 = vmul.f32 %v7757_v56, %v12380_v38  ;;  %v7761_v54 = vmul.f32 %v7753_v27, %v12381_v44 }
 0x935   : > { %8369 = vmatmul.mubr.msk.f32.gmra.mxu0 %vm2775_vm11, %v8365_v47  ;;  %7814 = vmatprep.subr.mxu1 %v7764_v39 }
 0x936   : > { %7576 = vmatprep.mubr.f32.mxu1 %v12340_v2  ;;  %7815 = vmatpush1.msra.mxu1 %v7763_v7 }
 0x937   : > { %8377 = vmatmul.mubr.msk.f32.gmra.mxu1 %vm2775_vm11, %v8373_v5  ;;  %7704 = vmatprep.mubr.f32.mxu0 %v12340_v2 }
 0x938   : > { %7816 = vmatprep.subr.mxu1 %v7762_v62  ;;  %7850 = vmatprep.mubr.f32.mxu1 %v12340_v2 }
 0x939   : > { %8382 = vmatmul.mubr.msk.f32.vlgmr.msra.gmra.mxu0 %vm2775_vm11, %v8378_v8  ;;  %7817 = vmatpush1.msra.mxu1 %v7761_v54 }
 0x93a   : > { %7710 = vmatprep.mubr.f32.mxu0 %v12340_v2 }
 0x93b   : > { %8390 = vmatmul.mubr.msk.f32.vlgmr.msra.gmra.mxu1 %vm2775_vm11, %v8386_v9 }
 0x93c   : > { %7856 = vmatprep.mubr.f32.mxu1 %v12340_v2 }
 0x93d   : > { %8383 = vmatmul.mubr.msk.f32.gmra.mxu0 %vm2775_vm11, %v8379_v63 }
 0x93e   : > { %7716 = vmatprep.mubr.f32.mxu0 %v12340_v2 }
 0x93f   : > { %8391 = vmatmul.mubr.msk.f32.gmra.mxu1 %vm2775_vm11, %v8387_v33 }
 0x940   : > { %7862 = vmatprep.mubr.f32.mxu1 %v12340_v2 }
 0x941   : > { %8384 = vmatmul.mubr.msk.f32.gmra.mxu0 %vm2775_vm11, %v8380_v45 }
 0x942   : > { %7722 = vmatprep.mubr.f32.mxu0 %v12340_v2 }
 0x943   : > { %8392 = vmatmul.mubr.msk.f32.gmra.mxu1 %vm2775_vm11, %v8388_v52 }
 0x944   : > { %7868 = vmatprep.mubr.f32.mxu1 %v12340_v2 }
 0x945   : > { %8385 = vmatmul.mubr.msk.f32.gmra.mxu0 %vm2775_vm11, %v8381_v28 }
 0x947   : > { %8393 = vmatmul.mubr.msk.f32.gmra.mxu1 %vm2775_vm11, %v8389_v3 }
 0x9b6   : > { %v6769_v55 = vpop.f32.mrf.mxu1 }
 0x9b8   : > { %v6771_v46 = vpop.f32.mrf.mxu1 }
 0x9ba   : > { %v6775_v17 = vpop.f32.mrf.mxu1 }
 0x9bc   : > { %v6777_v31 = vpop.f32.mrf.mxu1 }
 0x9be   : > { %v6781_v40 = vpop.f32.mrf.mxu1 }
 0x9c0   : > { %v6783_v26 = vpop.f32.mrf.mxu1 }
 0x9c3   : > { %v12221_v21 = vpop.f32.mrf.mxu1  ;;  %v6870_v13 = vpop.f32.mrf.mxu0 }
 0x9c4   : > { %v6871_v18 = vadd.f32 %v6870_v13, %v6769_v55 }
 0x9c5   : > { %v12223_v4 = vpop.f32.mrf.mxu1  ;;  %v6872_v2 = vpop.f32.mrf.mxu0 }
 0x9c6   : > { %v6873_v39 = vadd.f32 %v6872_v2, %v6771_v46 }
 0x9c7   : > { %v6876_v57 = vpop.f32.mrf.mxu0 }
 0x9c8   : > { %v7008_v43 = vpop.f32.mrf.mxu1  ;;  %v6877_v35 = vadd.f32 %v6876_v57, %v6775_v17 }
 0x9c9   : > { %v6878_v22 = vpop.f32.mrf.mxu0  ;;  %v7031_v60 = vadd.f32 %v7008_v43, %v6871_v18 }
 0x9ca   : > { %v7010_v34 = vpop.f32.mrf.mxu1  ;;  %v6879_v62 = vadd.f32 %v6878_v22, %v6777_v31 }
 0x9cb   : > { %v6882_v14 = vpop.f32.mrf.mxu0  ;;  %v7032_v50 = vadd.f32 %v7010_v34, %v6873_v39 }
 0x9cc   : > { %v7014_v53 = vpop.f32.mrf.mxu1  ;;  %v6883_v9 = vadd.f32 %v6882_v14, %v6781_v40 }
 0x9cd   : > { %v6884_v12 = vpop.f32.mrf.mxu0  ;;  %v7033_v5 = vadd.f32 %v7014_v53, %v6877_v35 }
 0x9ce   : > { %v7016_v58 = vpop.f32.mrf.mxu1  ;;  %v6885_v3 = vadd.f32 %v6884_v12, %v6783_v26 }
 0x9cf   : > { %v6888_v15 = vpop.f32.mrf.mxu0  ;;  %v7034_v33 = vadd.f32 %v7016_v58, %v6879_v62 }
 0x9d0   : > { %v7020_v29 = vpop.f32.mrf.mxu1  ;;  %v6889_v57 = vadd.f32 %v6888_v15, %v12221_v21 }
 0x9d1   : > { %v6890_v0 = vpop.f32.mrf.mxu0  ;;  %v7035_v55 = vadd.f32 %v7020_v29, %v6883_v9 }
 0x9d2   : > { %v7022_v49 = vpop.f32.mrf.mxu1  ;;  %v6891_v40 = vadd.f32 %v6890_v0, %v12223_v4  ;;  %v7890_v0 = vpop.permute.xlu1 %7889 }
 0x9d3   : > { %v7036_v43 = vadd.f32 %v7022_v49, %v6885_v3 }
 0x9d4   : > { %v7026_v6 = vpop.f32.mrf.mxu1 }
 0x9d5   : > { %v7037_v14 = vadd.f32 %v7026_v6, %v6889_v57 }
 0x9d6   : > { %v7028_v59 = vpop.f32.mrf.mxu1 }
 0x9d8   : > { %v7154_v32 = vpop.f32.mrf.mxu0  ;;  %v7268_v20 = vpop.f32.mrf.mxu1 }
 0x9d9   : > { %v7177_v47 = vadd.f32 %v7154_v32, %v7031_v60 }
 0x9da   : > { %v7156_v38 = vpop.f32.mrf.mxu0  ;;  %v7270_v41 = vpop.f32.mrf.mxu1 }
 0x9db   : > { %v7178_v54 = vadd.f32 %v7156_v38, %v7032_v50  ;;  %v7291_v45 = vadd.f32 %v7268_v20, %v7177_v47 }
 0x9dc   : > { %v7160_v61 = vpop.f32.mrf.mxu0  ;;  %v7274_v11 = vpop.f32.mrf.mxu1 }
 0x9dd   : > { %v7179_v52 = vadd.f32 %v7160_v61, %v7033_v5  ;;  %v7292_v13 = vadd.f32 %v7270_v41, %v7178_v54  ;;  %v7038_v41 = vadd.f32 %v7028_v59, %v6891_v40 }
 0x9de   : > { %v7162_v25 = vpop.f32.mrf.mxu0  ;;  %v7276_v42 = vpop.f32.mrf.mxu1 }
 0x9df   : > { %v7180_v2 = vadd.f32 %v7162_v25, %v7034_v33  ;;  %v7293_v53 = vadd.f32 %v7274_v11, %v7179_v52 }
 0x9e0   : > { %v7166_v44 = vpop.f32.mrf.mxu0 }
 0x9e1   : > { %v7280_v24 = vpop.f32.mrf.mxu1  ;;  %v7181_v34 = vadd.f32 %v7166_v44, %v7035_v55  ;;  %v7294_v26 = vadd.f32 %v7276_v42, %v7180_v2 }
 0x9e2   : > { %v7168_v51 = vpop.f32.mrf.mxu0 }
 0x9e3   : > { %v7282_v37 = vpop.f32.mrf.mxu1  ;;  %v7182_v58 = vadd.f32 %v7168_v51, %v7036_v43  ;;  %v7295_v61 = vadd.f32 %v7280_v24, %v7181_v34 }
 0x9e4   : > { %v7172_v48 = vpop.f32.mrf.mxu0 }
 0x9e5   : > { %v7183_v25 = vadd.f32 %v7172_v48, %v7037_v14  ;;  %v7296_v11 = vadd.f32 %v7282_v37, %v7182_v58 }
 0x9e6   : > { %v7174_v16 = vpop.f32.mrf.mxu0 }
 0x9e7   : > { %v12225_v10 = vpop.f32.mrf.mxu1  ;;  %v7184_v18 = vadd.f32 %v7174_v16, %v7038_v41 }
 0x9e8   : > { %v7414_v1 = vpop.f32.mrf.mxu0  ;;  %v7297_v59 = vadd.f32 %v12225_v10, %v7183_v25  ;;  %v7895_v10 = vpop.permute.xlu0 %7894 }
 0x9e9   : > { %v12227_v19 = vpop.f32.mrf.mxu1  ;;  %v7437_v17 = vadd.f32 %v7414_v1, %v7291_v45 }
 0x9ea   : > { %v7416_v30 = vpop.f32.mrf.mxu0  ;;  %v7298_v37 = vadd.f32 %v12227_v19, %v7184_v18 }
 0x9eb   : > { %v7560_v36 = vpop.f32.mrf.mxu1  ;;  %v7438_v32 = vadd.f32 %v7416_v30, %v7292_v13  ;;  %v7900_v13 = vpop.permute.xlu1 %7899 }
 0x9ec   : > { %v7420_v23 = vpop.f32.mrf.mxu0  ;;  %v7583_v12 = vadd.f32 %v7560_v36, %v7437_v17  ;;  %v7905_v41 = vpop.permute.xlu0 %7904 }
 0x9ed   : > { %v7562_v7 = vpop.f32.mrf.mxu1  ;;  %v7439_v29 = vadd.f32 %v7420_v23, %v7293_v53 }
 0x9ee   : > { %v7422_v27 = vpop.f32.mrf.mxu0  ;;  %v7584_v49 = vadd.f32 %v7562_v7, %v7438_v32 }
 0x9ef   : > { %v7566_v56 = vpop.f32.mrf.mxu1  ;;  %v7440_v44 = vadd.f32 %v7422_v27, %v7294_v26 }
 0x9f0   : > { %v7426_v8 = vpop.f32.mrf.mxu0  ;;  %v7585_v51 = vadd.f32 %v7566_v56, %v7439_v29 }
 0x9f1   : > { %v7568_v63 = vpop.f32.mrf.mxu1  ;;  %v7441_v30 = vadd.f32 %v7426_v8, %v7295_v61 }
 0x9f2   : > { %v7428_v28 = vpop.f32.mrf.mxu0  ;;  %v7586_v60 = vadd.f32 %v7568_v63, %v7440_v44 }
 0x9f3   : > { %v7572_v46 = vpop.f32.mrf.mxu1  ;;  %v7442_v36 = vadd.f32 %v7428_v28, %v7296_v11 }
 0x9f4   : > { %v7587_v16 = vadd.f32 %v7572_v46, %v7441_v30 }
 0x9f5   : > { %v7432_v31 = vpop.f32.mrf.mxu0  ;;  %v7574_v22 = vpop.f32.mrf.mxu1 }
 0x9f6   : > { %v7443_v50 = vadd.f32 %v7432_v31, %v7297_v59  ;;  %v7588_v8 = vadd.f32 %v7574_v22, %v7442_v36 }
 0x9f7   : > { %v7434_v20 = vpop.f32.mrf.mxu0  ;;  %v7578_v38 = vpop.f32.mrf.mxu1 }
 0x9f8   : > { %v7444_v9 = vadd.f32 %v7434_v20, %v7298_v37  ;;  %v7589_v3 = vadd.f32 %v7578_v38, %v7443_v50 }
 0x9f9   : > { %v7580_v21 = vpop.f32.mrf.mxu1  ;;  %v7706_v15 = vpop.f32.mrf.mxu0 }
 0x9fa   : > { %v7729_v1 = vadd.f32 %v7706_v15, %v7583_v12  ;;  %v7590_v34 = vadd.f32 %v7580_v21, %v7444_v9 }
 0x9fb   : > { %v7708_v4 = vpop.f32.mrf.mxu0  ;;  %v7852_v6 = vpop.f32.mrf.mxu1 }
 0x9fc   : > { %v7730_v39 = vadd.f32 %v7708_v4, %v7584_v49  ;;  %v7875_v42 = vadd.f32 %v7852_v6, %v7729_v1 }
 0x9fd   : > { %v7712_v24 = vpop.f32.mrf.mxu0  ;;  %v7854_v48 = vpop.f32.mrf.mxu1 }
 0x9fe   : > { %v7907_v23 = vadd.f32 %v7890_v0, %v7875_v42  ;;  %v7731_v7 = vadd.f32 %v7712_v24, %v7585_v51  ;;  %v7876_v35 = vadd.f32 %v7854_v48, %v7730_v39 }
 0x9ff   : > { %v7714_v47 = vpop.f32.mrf.mxu0  ;;  %v7858_v27 = vpop.f32.mrf.mxu1 }
 0xa00   : > { %v7915_v56 = vmax.f32 %v7907_v23, 0.0  ;;  %v7908_v62 = vadd.f32 %v7890_v0, %v7876_v35  ;;  %v7732_v5 = vadd.f32 %v7714_v47, %v7586_v60  ;;  %v7877_v54 = vadd.f32 %v7858_v27, %v7731_v7 }
 0xa01   : > { %v7718_v63 = vpop.f32.mrf.mxu0  ;;  %v7860_v19 = vpop.f32.mrf.mxu1 }
 0xa02   : > { %7923 = vst [vmem:[%s12237_s28] sm:$0xff] %v7915_v56  ;;  %v7916_v33 = vmax.f32 %v7908_v62, 0.0  ;;  %v7909_v45 = vadd.f32 %v7895_v10, %v7877_v54  ;;  %v7733_v52 = vadd.f32 %v7718_v63, %v7587_v16  ;;  %v7878_v28 = vadd.f32 %v7860_v19, %v7732_v5 }
 0xa03   : > { %v7720_v55 = vpop.f32.mrf.mxu0  ;;  %v7864_v46 = vpop.f32.mrf.mxu1 }
 0xa04   : > { %7924 = vst [vmem:[%s12237_s28 + $0x8] sm:$0xff] %v7916_v33  ;;  %v7917_v2 = vmax.f32 %v7909_v45, 0.0  ;;  %v7910_v17 = vadd.f32 %v7895_v10, %v7878_v28  ;;  %v7734_v57 = vadd.f32 %v7720_v55, %v7588_v8  ;;  %v7879_v43 = vadd.f32 %v7864_v46, %v7733_v52 }
 0xa05   : > { %v7724_v31 = vpop.f32.mrf.mxu0  ;;  %v7866_v22 = vpop.f32.mrf.mxu1 }
 0xa06   : > { %7925 = vst [vmem:[%s12237_s28 + $0x10] sm:$0xff] %v7917_v2  ;;  %v7918_v53 = vmax.f32 %v7910_v17, 0.0  ;;  %v7911_v32 = vadd.f32 %v7900_v13, %v7879_v43  ;;  %v7735_v40 = vadd.f32 %v7724_v31, %v7589_v3  ;;  %v7880_v14 = vadd.f32 %v7866_v22, %v7734_v57 }
 0xa07   : > { %v7726_v58 = vpop.f32.mrf.mxu0  ;;  %v7870_v20 = vpop.f32.mrf.mxu1 }
 0xa08   : > { %7926 = vst [vmem:[%s12237_s28 + $0x18] sm:$0xff] %v7918_v53  ;;  %v7919_v38 = vmax.f32 %v7911_v32, 0.0  ;;  %v7912_v26 = vadd.f32 %v7900_v13, %v7880_v14  ;;  %v7736_v12 = vadd.f32 %v7726_v58, %v7590_v34  ;;  %v7881_v29 = vadd.f32 %v7870_v20, %v7735_v40 }
 0xa09   : > { %v7872_v61 = vpop.f32.mrf.mxu1 }
 0xa0a   : > { %7927 = vst [vmem:[%s12237_s28 + $0x20] sm:$0xff] %v7919_v38  ;;  %v7920_v25 = vmax.f32 %v7912_v26, 0.0  ;;  %v7913_v21 = vadd.f32 %v7905_v41, %v7881_v29  ;;  %v7882_v15 = vadd.f32 %v7872_v61, %v7736_v12 }
 0xa0c   : > { %7928 = vst [vmem:[%s12237_s28 + $0x28] sm:$0xff] %v7920_v25  ;;  %v7921_v49 = vmax.f32 %v7913_v21, 0.0  ;;  %v7914_v44 = vadd.f32 %v7905_v41, %v7882_v15 }
 0xa0e   : > { %7929 = vst [vmem:[%s12237_s28 + $0x30] sm:$0xff] %v7921_v49  ;;  %v7922_v1 = vmax.f32 %v7914_v44, 0.0 }
 0xa10   : > { %7930 = vst [vmem:[%s12237_s28 + $0x38] sm:$0xff] %v7922_v1 }
 0xa11 PF: > { %s24_s29 = sadd.s32 1, %s8427_s29  }
 0xa12   : > { %p21_p4 = scmp.ge.s32.totalorder %s24_s29, 4  }
 0xa14   :  { %23 = sbr.rel (!%p21_p4) target bundleno = 1 (0x1), region = 161 }

</bundles_post_ra>
